<compile_context>
chip_gen: v7x
topology: tpu7x:2x2x1
jax: 0.10.0
libtpu: 0.0.40
codegen_flags: <defaults>
</compile_context>

<pallas_src>
import math
import functools

import jax
import jax.numpy as jnp
from jax.experimental import pallas as pl
from jax.experimental.pallas import tpu as pltpu


# --------------------------------------------------------------------------- #
# In-kernel helpers
# --------------------------------------------------------------------------- #
def _layer_norm(x, gamma, beta, eps=1e-5):
    mu = jnp.mean(x, axis=-1, keepdims=True)
    var = jnp.mean(jnp.square(x - mu), axis=-1, keepdims=True)
    return (x - mu) * jax.lax.rsqrt(var + eps) * gamma + beta


# --------------------------------------------------------------------------- #
# Fused decoder stack kernel (no grid: everything VMEM-resident, layers unrolled)
# --------------------------------------------------------------------------- #
def fused_decoder_stack_kernel(
        q_ref, enc_ref,
        # self attention: fused QKV weight/bias, output proj
        s_wqkv_ref, s_bqkv_ref, s_wo_ref,
        # encoder-decoder attention: Q, fused KV, output proj
        e_wq_ref, e_bq_ref, e_wkv_ref, e_bkv_ref, e_wo_ref,
        # feedforward
        w1_ref, b1_ref, w2_ref,
        # packed D-wide biases [s_bo, e_bo, b2, beta1, beta2, beta3] and LN gammas
        bias_d_ref, gamma_ref,
        out_ref,
        *, n_heads, dim_qk, dim_v):
    B, Tq, D = q_ref.shape
    Te = enc_ref.shape[1]
    Hq = n_heads * dim_qk
    depth = s_wqkv_ref.shape[0]

    x = q_ref[...].astype(jnp.float32)          # residual stream, f32
    enc2 = enc_ref[...].reshape(B * Te, D)      # bf16, only ever an MXU operand

    def split_heads(rows, T, off, dh):
        # rows: (B*T, width) f32 -> (H*B, T, dh) head-major batch (leading-dim concat only)
        parts = [rows[:, off + h * dh: off + (h + 1) * dh].reshape(B, T, dh)
                 for h in range(n_heads)]
        return jnp.concatenate(parts, axis=0)

    def merge_heads(ctx, dh):
        # ctx: (H*B, Tq, dh) -> (B*Tq, H*dh) with heads fused back on lanes
        return jnp.concatenate(
            [ctx[h * B:(h + 1) * B].reshape(B * Tq, dh) for h in range(n_heads)],
            axis=-1)

    def attend(qh, kh, vh):
        # 1/sqrt(dim_qk) is folded into the Q weights host-side.
        s = jnp.einsum('gqe,gke->gqk',
                       qh.astype(jnp.bfloat16), kh.astype(jnp.bfloat16),
                       preferred_element_type=jnp.float32)
        s = s - jnp.max(s, axis=-1, keepdims=True)
        p = jnp.exp(s)
        a = p * pl.reciprocal(jnp.sum(p, axis=-1, keepdims=True), approx=True)
        return jnp.einsum('gqk,gke->gqe',
                          a.astype(jnp.bfloat16), vh.astype(jnp.bfloat16),
                          preferred_element_type=jnp.float32)

    # TODO(synk): unrolled layer loop (static per-layer ref slices); revert to a streaming
    #             layer grid once the stacked weights no longer fit VMEM.
    for l in range(depth):
        bias_d = bias_d_ref[l]      # (6, D): s_bo, e_bo, b2, beta1, beta2, beta3
        gam = gamma_ref[l]          # (3, D)

        # --- self attention (ONE fused QKV matmul) + residual + LayerNorm ---
        x2b = x.reshape(B * Tq, D).astype(jnp.bfloat16)
        qkv = jnp.dot(x2b, s_wqkv_ref[l],
                      preferred_element_type=jnp.float32) + s_bqkv_ref[l]
        ctx = attend(split_heads(qkv, Tq, 0, dim_qk),
                     split_heads(qkv, Tq, Hq, dim_qk),
                     split_heads(qkv, Tq, 2 * Hq, dim_v))
        sa = (jnp.dot(merge_heads(ctx, dim_v).astype(jnp.bfloat16), s_wo_ref[l],
                      preferred_element_type=jnp.float32) + bias_d[0:1]).reshape(B, Tq, D)
        x = _layer_norm(x + sa, gam[0:1], bias_d[3:4])

        # --- encoder-decoder attention (fused KV matmul) + residual + LayerNorm ---
        x2b = x.reshape(B * Tq, D).astype(jnp.bfloat16)
        qe = jnp.dot(x2b, e_wq_ref[l],
                     preferred_element_type=jnp.float32) + e_bq_ref[l]
        kv = jnp.dot(enc2, e_wkv_ref[l],
                     preferred_element_type=jnp.float32) + e_bkv_ref[l]
        ctx = attend(split_heads(qe, Tq, 0, dim_qk),
                     split_heads(kv, Te, 0, dim_qk),
                     split_heads(kv, Te, Hq, dim_v))
        ea = (jnp.dot(merge_heads(ctx, dim_v).astype(jnp.bfloat16), e_wo_ref[l],
                      preferred_element_type=jnp.float32) + bias_d[1:2]).reshape(B, Tq, D)
        x = _layer_norm(x + ea, gam[1:2], bias_d[4:5])

        # --- position-wise feedforward + residual + LayerNorm ---
        x2b = x.reshape(B * Tq, D).astype(jnp.bfloat16)
        h = jnp.maximum(jnp.dot(x2b, w1_ref[l],
                                preferred_element_type=jnp.float32) + b1_ref[l], 0.0)
        ff = (jnp.dot(h.astype(jnp.bfloat16), w2_ref[l],
                      preferred_element_type=jnp.float32) + bias_d[2:3]).reshape(B, Tq, D)
        x = _layer_norm(x + ff, gam[2:3], bias_d[5:6])

    out_ref[...] = x.astype(out_ref.dtype)


def flexible_decoder_forward(query, encoded, packed_params, *, n_heads, dim_qk):
    """Single no-grid pallas_call over the whole decoder stack. Returns (B, Tq, D)."""
    B, Tq, D = query.shape
    dim_v = D // n_heads
    kernel = functools.partial(fused_decoder_stack_kernel,
                               n_heads=n_heads, dim_qk=dim_qk, dim_v=dim_v)
    return pl.pallas_call(
        kernel,
        out_shape=jax.ShapeDtypeStruct((B, Tq, D), query.dtype),
        compiler_params=pltpu.CompilerParams(vmem_limit_bytes=32 * 1024 * 1024),
    )(query, encoded.astype(jnp.bfloat16), *packed_params)


# --------------------------------------------------------------------------- #
# Parameter init (raw f32, per-layer leading axis, heads fused on lanes)
# --------------------------------------------------------------------------- #
def _init_stacked_params(key, depth, dim_in, n_heads, dim_qk, dim_ff):
    dim_v = dim_in // n_heads
    hq, hv = n_heads * dim_qk, n_heads * dim_v
    keys = iter(jax.random.split(key, 32))

    def w(shape, fan):
        return jax.random.normal(next(keys), shape, jnp.float32) / math.sqrt(fan)

    def bias(shape):
        return 0.1 * jax.random.normal(next(keys), shape, jnp.float32)

    def attn():
        return (w((depth, dim_in, hq), dim_in), bias((depth, 1, hq)),      # wq, bq
                w((depth, dim_in, hq), dim_in), bias((depth, 1, hq)),      # wk, bk
                w((depth, dim_in, hv), dim_in), bias((depth, 1, hv)),      # wv, bv
                w((depth, hv, dim_in), hv),     bias((depth, 1, dim_in)))  # wo, bo

    def layer_norm():
        gamma = 1.0 + 0.1 * jax.random.normal(next(keys), (depth, 1, dim_in), jnp.float32)
        return (gamma, bias((depth, 1, dim_in)))

    return attn() + attn() + (
        w((depth, dim_in, dim_ff), dim_in), bias((depth, 1, dim_ff)),      # w1, b1
        w((depth, dim_ff, dim_in), dim_ff), bias((depth, 1, dim_in)),      # w2, b2
    ) + layer_norm() + layer_norm() + layer_norm()


def _pack_params(raw, *, dim_qk):
    """Host-side packing: fused QKV / KV weights (bf16), packed biases/LN params (f32)."""
    (s_wq, s_bq, s_wk, s_bk, s_wv, s_bv, s_wo, s_bo,
     e_wq, e_bq, e_wk, e_bk, e_wv, e_bv, e_wo, e_bo,
     w1, b1, w2, b2, g1, be1, g2, be2, g3, be3) = raw
    scale = 1.0 / math.sqrt(dim_qk)
    bf = lambda a: a.astype(jnp.bfloat16)

    s_wqkv = bf(jnp.concatenate([s_wq * scale, s_wk, s_wv], axis=-1))
    s_bqkv = jnp.concatenate([s_bq * scale, s_bk, s_bv], axis=-1)
    e_wkv = bf(jnp.concatenate([e_wk, e_wv], axis=-1))
    e_bkv = jnp.concatenate([e_bk, e_bv], axis=-1)
    bias_d = jnp.concatenate([s_bo, e_bo, b2, be1, be2, be3], axis=1)   # (depth, 6, D)
    gamma = jnp.concatenate([g1, g2, g3], axis=1)                       # (depth, 3, D)

    return (s_wqkv, s_bqkv, bf(s_wo),
            bf(e_wq * scale), e_bq * scale, e_wkv, e_bkv, bf(e_wo),
            bf(w1), b1, bf(w2),
            bias_d, gamma)


# --------------------------------------------------------------------------- #
# Pure-JAX reference (per-head formulation on the raw unpacked params)
# --------------------------------------------------------------------------- #
def _reference_forward(query, encoded, raw, *, n_heads, dim_qk, matmul_dtype=jnp.float32):
    (s_wq, s_bq, s_wk, s_bk, s_wv, s_bv, s_wo, s_bo,
     e_wq, e_bq, e_wk, e_bk, e_wv, e_bv, e_wo, e_bo,
     w1, b1, w2, b2, g1, be1, g2, be2, g3, be3) = raw
    depth = s_wq.shape[0]
    B, Tq, D = query.shape
    dim_v = D // n_heads

    def mm(a, b):
        return jnp.dot(a.astype(matmul_dtype), b.astype(matmul_dtype),
                       preferred_element_type=jnp.float32)

    def ln(x, g, b):
        mu = x.mean(-1, keepdims=True)
        var = ((x - mu) ** 2).mean(-1, keepdims=True)
        return (x - mu) / jnp.sqrt(var + 1e-5) * g + b

    def mha(q_in, kv_in, wq, bq, wk, bk, wv, bv, wo, bo):
        b_, tq, d = q_in.shape
        tk = kv_in.shape[1]
        qa = mm(q_in.reshape(b_ * tq, d), wq) + bq
        ka = mm(kv_in.reshape(b_ * tk, d), wk) + bk
        va = mm(kv_in.reshape(b_ * tk, d), wv) + bv
        ctxs = []
        for h in range(n_heads):
            qh = qa[:, h * dim_qk:(h + 1) * dim_qk].reshape(b_, tq, dim_qk)
            kh = ka[:, h * dim_qk:(h + 1) * dim_qk].reshape(b_, tk, dim_qk)
            vh = va[:, h * dim_v:(h + 1) * dim_v].reshape(b_, tk, dim_v)
            s = jnp.einsum('bqe,bke->bqk',
                           qh.astype(matmul_dtype), kh.astype(matmul_dtype),
                           preferred_element_type=jnp.float32) / math.sqrt(dim_qk)
            a = jax.nn.softmax(s, axis=-1)
            ctx = jnp.einsum('bqk,bke->bqe',
                             a.astype(matmul_dtype), vh.astype(matmul_dtype),
                             preferred_element_type=jnp.float32)
            ctxs.append(ctx.reshape(b_ * tq, dim_v))
        return (mm(jnp.concatenate(ctxs, axis=-1), wo) + bo).reshape(b_, tq, d)

    x = query
    for l in range(depth):
        x = ln(x + mha(x, x, s_wq[l], s_bq[l], s_wk[l], s_bk[l],
                       s_wv[l], s_bv[l], s_wo[l], s_bo[l]), g1[l], be1[l])
        x = ln(x + mha(x, encoded, e_wq[l], e_bq[l], e_wk[l], e_bk[l],
                       e_wv[l], e_bv[l], e_wo[l], e_bo[l]), g2[l], be2[l])
        h = jnp.maximum(mm(x.reshape(B * Tq, D), w1[l]) + b1[l], 0.0)
        ff = (mm(h, w2[l]) + b2[l]).reshape(B, Tq, D)
        x = ln(x + ff, g3[l], be3[l])
    return x


if __name__ == "__main__":
    # Small shapes consistent with the module's forward:
    #   forward(x) where x = (query, encoded_sequence), both (B, T, dim_in).
    B, Tq, Te = 2, 8, 8
    dim_in = 32          # dim_in
    dim_qk = 16          # dim_qk
    dim_ff = 64          # dim_feedforward
    n_heads = 2          # mha_instance_kwargs['n_heads']
    num_layers = [1, 2]  # NAS depth choices; run the max depth
    depth = max(num_layers)

    root = jax.random.PRNGKey(0)
    k_q, k_e, k_p = jax.random.split(root, 3)
    query = jax.random.normal(k_q, (B, Tq, dim_in), jnp.float32)
    encoded = jax.random.normal(k_e, (B, Te, dim_in), jnp.float32)

    raw_params = _init_stacked_params(k_p, depth, dim_in, n_heads, dim_qk, dim_ff)
    packed = _pack_params(raw_params, dim_qk=dim_qk)

    out = flexible_decoder_forward(query, encoded, packed,
                                   n_heads=n_heads, dim_qk=dim_qk)
    out = jax.block_until_ready(out)
    assert out.shape == (B, Tq, dim_in)
    assert bool(jnp.all(jnp.isfinite(out)))

    # Tight check vs a bf16-matmul-matched reference (catches packing / head-indexing /
    # bias-broadcast bugs; only approx-reciprocal + op-order differ), plus a loose check
    # vs the pure-f32 reference for overall numerics sanity.
    ref_bf16 = _reference_forward(query, encoded, raw_params, n_heads=n_heads,
                                  dim_qk=dim_qk, matmul_dtype=jnp.bfloat16)
    ref_f32 = _reference_forward(query, encoded, raw_params, n_heads=n_heads,
                                 dim_qk=dim_qk, matmul_dtype=jnp.float32)
    err_b = float(jnp.max(jnp.abs(out - ref_bf16)))
    err_f = float(jnp.max(jnp.abs(out - ref_f32)))
    assert err_b < 3e-2, f"kernel vs bf16-matched reference: max abs err = {err_b}"
    assert err_f < 1.5e-1, f"kernel vs f32 reference: max abs err = {err_f}"

    print("KERNEL_OK")
</pallas_src>

<mosaic_0001>
module attributes {stable_mosaic.version = 11 : i64} {
  func.func @fused_decoder_stack_kernel(%arg0: memref<2x8x32xf32, #tpu.memory_space<vmem>>, %arg1: memref<2x8x32xbf16, #tpu.memory_space<vmem>>, %arg2: memref<2x32x96xbf16, #tpu.memory_space<vmem>>, %arg3: memref<2x1x96xf32, #tpu.memory_space<vmem>>, %arg4: memref<2x32x32xbf16, #tpu.memory_space<vmem>>, %arg5: memref<2x32x32xbf16, #tpu.memory_space<vmem>>, %arg6: memref<2x1x32xf32, #tpu.memory_space<vmem>>, %arg7: memref<2x32x64xbf16, #tpu.memory_space<vmem>>, %arg8: memref<2x1x64xf32, #tpu.memory_space<vmem>>, %arg9: memref<2x32x32xbf16, #tpu.memory_space<vmem>>, %arg10: memref<2x32x64xbf16, #tpu.memory_space<vmem>>, %arg11: memref<2x1x64xf32, #tpu.memory_space<vmem>>, %arg12: memref<2x64x32xbf16, #tpu.memory_space<vmem>>, %arg13: memref<2x6x32xf32, #tpu.memory_space<vmem>>, %arg14: memref<2x3x32xf32, #tpu.memory_space<vmem>>, %arg15: memref<2x8x32xf32, #tpu.memory_space<vmem>>) attributes {dimension_semantics = [], scalar_prefetch = 0 : i64, scratch_operands = 0 : i64, tpu.core_type = #tpu.core_type<tc>} {
    %c0 = arith.constant 0 : index
    %c0_0 = arith.constant 0 : index
    %c0_1 = arith.constant 0 : index
    %0 = vector.load %arg0[%c0, %c0_0, %c0_1] : memref<2x8x32xf32, #tpu.memory_space<vmem>>, vector<2x8x32xf32>
    %c0_2 = arith.constant 0 : index
    %c0_3 = arith.constant 0 : index
    %c0_4 = arith.constant 0 : index
    %1 = vector.load %arg1[%c0_2, %c0_3, %c0_4] : memref<2x8x32xbf16, #tpu.memory_space<vmem>>, vector<2x8x32xbf16>
    %2 = vector.shape_cast %1 : vector<2x8x32xbf16> to vector<16x32xbf16>
    %c0_5 = arith.constant 0 : index
    %c0_6 = arith.constant 0 : index
    %c0_7 = arith.constant 0 : index
    %3 = vector.load %arg13[%c0_5, %c0_6, %c0_7] : memref<2x6x32xf32, #tpu.memory_space<vmem>>, vector<1x6x32xf32>
    %4 = vector.shape_cast %3 : vector<1x6x32xf32> to vector<6x32xf32>
    %c0_8 = arith.constant 0 : index
    %c0_9 = arith.constant 0 : index
    %c0_10 = arith.constant 0 : index
    %5 = vector.load %arg14[%c0_8, %c0_9, %c0_10] : memref<2x3x32xf32, #tpu.memory_space<vmem>>, vector<1x3x32xf32>
    %6 = vector.shape_cast %5 : vector<1x3x32xf32> to vector<3x32xf32>
    %7 = vector.shape_cast %0 : vector<2x8x32xf32> to vector<16x32xf32>
    %8 = arith.truncf %7 : vector<16x32xf32> to vector<16x32xbf16>
    %c0_11 = arith.constant 0 : index
    %c0_12 = arith.constant 0 : index
    %c0_13 = arith.constant 0 : index
    %9 = vector.load %arg2[%c0_11, %c0_12, %c0_13] : memref<2x32x96xbf16, #tpu.memory_space<vmem>>, vector<1x32x96xbf16>
    %10 = vector.shape_cast %9 : vector<1x32x96xbf16> to vector<32x96xbf16>
    %cst = arith.constant dense<0.000000e+00> : vector<16x96xf32>
    %11 = tpu.matmul %8, %10, %cst {dimension_numbers = #tpu.dot_dimension_numbers<[1], [0], [0], [1], [0, 0, 1, 1], [], []>} : vector<16x32xbf16>, vector<32x96xbf16>, vector<16x96xf32> -> vector<16x96xf32>
    %c0_14 = arith.constant 0 : index
    %c0_15 = arith.constant 0 : index
    %c0_16 = arith.constant 0 : index
    %12 = vector.load %arg3[%c0_14, %c0_15, %c0_16] : memref<2x1x96xf32, #tpu.memory_space<vmem>>, vector<1x1x96xf32>
    %13 = vector.shape_cast %12 : vector<1x1x96xf32> to vector<1x96xf32>
    %14 = vector.broadcast %13 : vector<1x96xf32> to vector<16x96xf32>
    %15 = arith.addf %11, %14 : vector<16x96xf32>
    %16 = vector.extract_strided_slice %15 {offsets = [0, 0], sizes = [16, 16], strides = [1, 1]} : vector<16x96xf32> to vector<16x16xf32>
    %17 = vector.shape_cast %16 : vector<16x16xf32> to vector<2x8x16xf32>
    %18 = vector.extract_strided_slice %15 {offsets = [0, 16], sizes = [16, 16], strides = [1, 1]} : vector<16x96xf32> to vector<16x16xf32>
    %19 = vector.shape_cast %18 : vector<16x16xf32> to vector<2x8x16xf32>
    %20 = tpu.concatenate %17, %19 in 0 : vector<2x8x16xf32>, vector<2x8x16xf32> -> vector<4x8x16xf32>
    %21 = vector.extract_strided_slice %15 {offsets = [0, 32], sizes = [16, 16], strides = [1, 1]} : vector<16x96xf32> to vector<16x16xf32>
    %22 = vector.shape_cast %21 : vector<16x16xf32> to vector<2x8x16xf32>
    %23 = vector.extract_strided_slice %15 {offsets = [0, 48], sizes = [16, 16], strides = [1, 1]} : vector<16x96xf32> to vector<16x16xf32>
    %24 = vector.shape_cast %23 : vector<16x16xf32> to vector<2x8x16xf32>
    %25 = tpu.concatenate %22, %24 in 0 : vector<2x8x16xf32>, vector<2x8x16xf32> -> vector<4x8x16xf32>
    %26 = vector.extract_strided_slice %15 {offsets = [0, 64], sizes = [16, 16], strides = [1, 1]} : vector<16x96xf32> to vector<16x16xf32>
    %27 = vector.shape_cast %26 : vector<16x16xf32> to vector<2x8x16xf32>
    %28 = vector.extract_strided_slice %15 {offsets = [0, 80], sizes = [16, 16], strides = [1, 1]} : vector<16x96xf32> to vector<16x16xf32>
    %29 = vector.shape_cast %28 : vector<16x16xf32> to vector<2x8x16xf32>
    %30 = tpu.concatenate %27, %29 in 0 : vector<2x8x16xf32>, vector<2x8x16xf32> -> vector<4x8x16xf32>
    %31 = arith.truncf %20 : vector<4x8x16xf32> to vector<4x8x16xbf16>
    %32 = arith.truncf %25 : vector<4x8x16xf32> to vector<4x8x16xbf16>
    "tpu.trace_start"() <{level = 10 : i32, message = "gqe,gke->gqk"}> : () -> ()
    %cst_17 = arith.constant dense<0.000000e+00> : vector<4x8x8xf32>
    %33 = tpu.matmul %31, %32, %cst_17 {dimension_numbers = #tpu.dot_dimension_numbers<[2], [2], [1], [1], [0, 0, 0, 1, 1, 1], [0], [0]>} : vector<4x8x16xbf16>, vector<4x8x16xbf16>, vector<4x8x8xf32> -> vector<4x8x8xf32>
    "tpu.trace_stop"() : () -> ()
    %cst_18 = arith.constant dense<0xFF800000> : vector<4x8xf32>
    %34 = vector.multi_reduction <maximumf>, %33, %cst_18 [2] : vector<4x8x8xf32> to vector<4x8xf32>
    %35 = vector.shape_cast %34 : vector<4x8xf32> to vector<4x8x1xf32>
    %36 = vector.broadcast %35 : vector<4x8x1xf32> to vector<4x8x8xf32>
    %37 = arith.subf %33, %36 : vector<4x8x8xf32>
    %38 = math.exp %37 : vector<4x8x8xf32>
    %cst_19 = arith.constant dense<0.000000e+00> : vector<4x8xf32>
    %39 = vector.multi_reduction <add>, %38, %cst_19 [2] : vector<4x8x8xf32> to vector<4x8xf32>
    %40 = vector.shape_cast %39 : vector<4x8xf32> to vector<4x8x1xf32>
    %41 = tpu.reciprocal %40 {approx = true} : vector<4x8x1xf32> -> vector<4x8x1xf32>
    %42 = vector.broadcast %41 : vector<4x8x1xf32> to vector<4x8x8xf32>
    %43 = arith.mulf %38, %42 : vector<4x8x8xf32>
    %44 = arith.truncf %43 : vector<4x8x8xf32> to vector<4x8x8xbf16>
    %45 = arith.truncf %30 : vector<4x8x16xf32> to vector<4x8x16xbf16>
    "tpu.trace_start"() <{level = 10 : i32, message = "gqk,gke->gqe"}> : () -> ()
    %cst_20 = arith.constant dense<0.000000e+00> : vector<4x8x16xf32>
    %46 = tpu.matmul %44, %45, %cst_20 {dimension_numbers = #tpu.dot_dimension_numbers<[2], [1], [1], [2], [0, 0, 0, 1, 1, 2], [0], [0]>} : vector<4x8x8xbf16>, vector<4x8x16xbf16>, vector<4x8x16xf32> -> vector<4x8x16xf32>
    "tpu.trace_stop"() : () -> ()
    %47 = vector.extract_strided_slice %46 {offsets = [0, 0, 0], sizes = [2, 8, 16], strides = [1, 1, 1]} : vector<4x8x16xf32> to vector<2x8x16xf32>
    %48 = vector.shape_cast %47 : vector<2x8x16xf32> to vector<16x16xf32>
    %49 = vector.extract_strided_slice %46 {offsets = [2, 0, 0], sizes = [2, 8, 16], strides = [1, 1, 1]} : vector<4x8x16xf32> to vector<2x8x16xf32>
    %50 = vector.shape_cast %49 : vector<2x8x16xf32> to vector<16x16xf32>
    %51 = tpu.concatenate %48, %50 in 1 : vector<16x16xf32>, vector<16x16xf32> -> vector<16x32xf32>
    %52 = arith.truncf %51 : vector<16x32xf32> to vector<16x32xbf16>
    %c0_21 = arith.constant 0 : index
    %c0_22 = arith.constant 0 : index
    %c0_23 = arith.constant 0 : index
    %53 = vector.load %arg4[%c0_21, %c0_22, %c0_23] : memref<2x32x32xbf16, #tpu.memory_space<vmem>>, vector<1x32x32xbf16>
    %54 = vector.shape_cast %53 : vector<1x32x32xbf16> to vector<32x32xbf16>
    %cst_24 = arith.constant dense<0.000000e+00> : vector<16x32xf32>
    %55 = tpu.matmul %52, %54, %cst_24 {dimension_numbers = #tpu.dot_dimension_numbers<[1], [0], [0], [1], [0, 0, 1, 1], [], []>} : vector<16x32xbf16>, vector<32x32xbf16>, vector<16x32xf32> -> vector<16x32xf32>
    %56 = vector.extract_strided_slice %4 {offsets = [0, 0], sizes = [1, 32], strides = [1, 1]} : vector<6x32xf32> to vector<1x32xf32>
    %57 = vector.broadcast %56 : vector<1x32xf32> to vector<16x32xf32>
    %58 = arith.addf %55, %57 : vector<16x32xf32>
    %59 = vector.shape_cast %58 : vector<16x32xf32> to vector<2x8x32xf32>
    %60 = arith.addf %0, %59 : vector<2x8x32xf32>
    %61 = vector.extract_strided_slice %6 {offsets = [0, 0], sizes = [1, 32], strides = [1, 1]} : vector<3x32xf32> to vector<1x32xf32>
    %62 = vector.extract_strided_slice %4 {offsets = [3, 0], sizes = [1, 32], strides = [1, 1]} : vector<6x32xf32> to vector<1x32xf32>
    %cst_25 = arith.constant dense<0.000000e+00> : vector<2x8xf32>
    %63 = vector.multi_reduction <add>, %60, %cst_25 [2] : vector<2x8x32xf32> to vector<2x8xf32>
    %64 = vector.shape_cast %63 : vector<2x8xf32> to vector<2x8x1xf32>
    %cst_26 = arith.constant 3.200000e+01 : f32
    %65 = vector.broadcast %cst_26 : f32 to vector<2x8x1xf32>
    %66 = arith.divf %64, %65 : vector<2x8x1xf32>
    %67 = vector.broadcast %66 : vector<2x8x1xf32> to vector<2x8x32xf32>
    %68 = arith.subf %60, %67 : vector<2x8x32xf32>
    %69 = arith.mulf %68, %68 : vector<2x8x32xf32>
    %cst_27 = arith.constant dense<0.000000e+00> : vector<2x8xf32>
    %70 = vector.multi_reduction <add>, %69, %cst_27 [2] : vector<2x8x32xf32> to vector<2x8xf32>
    %71 = vector.shape_cast %70 : vector<2x8xf32> to vector<2x8x1xf32>
    %cst_28 = arith.constant 3.200000e+01 : f32
    %72 = vector.broadcast %cst_28 : f32 to vector<2x8x1xf32>
    %73 = arith.divf %71, %72 : vector<2x8x1xf32>
    %74 = vector.broadcast %66 : vector<2x8x1xf32> to vector<2x8x32xf32>
    %75 = arith.subf %60, %74 : vector<2x8x32xf32>
    %cst_29 = arith.constant 9.99999974E-6 : f32
    %76 = vector.broadcast %cst_29 : f32 to vector<2x8x1xf32>
    %77 = arith.addf %73, %76 : vector<2x8x1xf32>
    %78 = math.rsqrt %77 : vector<2x8x1xf32>
    %79 = vector.broadcast %78 : vector<2x8x1xf32> to vector<2x8x32xf32>
    %80 = arith.mulf %75, %79 : vector<2x8x32xf32>
    %81 = vector.shape_cast %61 : vector<1x32xf32> to vector<1x1x32xf32>
    %82 = vector.broadcast %81 : vector<1x1x32xf32> to vector<2x8x32xf32>
    %83 = arith.mulf %80, %82 : vector<2x8x32xf32>
    %84 = vector.shape_cast %62 : vector<1x32xf32> to vector<1x1x32xf32>
    %85 = vector.broadcast %84 : vector<1x1x32xf32> to vector<2x8x32xf32>
    %86 = arith.addf %83, %85 : vector<2x8x32xf32>
    %87 = vector.shape_cast %86 : vector<2x8x32xf32> to vector<16x32xf32>
    %88 = arith.truncf %87 : vector<16x32xf32> to vector<16x32xbf16>
    %c0_30 = arith.constant 0 : index
    %c0_31 = arith.constant 0 : index
    %c0_32 = arith.constant 0 : index
    %89 = vector.load %arg5[%c0_30, %c0_31, %c0_32] : memref<2x32x32xbf16, #tpu.memory_space<vmem>>, vector<1x32x32xbf16>
    %90 = vector.shape_cast %89 : vector<1x32x32xbf16> to vector<32x32xbf16>
    %cst_33 = arith.constant dense<0.000000e+00> : vector<16x32xf32>
    %91 = tpu.matmul %88, %90, %cst_33 {dimension_numbers = #tpu.dot_dimension_numbers<[1], [0], [0], [1], [0, 0, 1, 1], [], []>} : vector<16x32xbf16>, vector<32x32xbf16>, vector<16x32xf32> -> vector<16x32xf32>
    %c0_34 = arith.constant 0 : index
    %c0_35 = arith.constant 0 : index
    %c0_36 = arith.constant 0 : index
    %92 = vector.load %arg6[%c0_34, %c0_35, %c0_36] : memref<2x1x32xf32, #tpu.memory_space<vmem>>, vector<1x1x32xf32>
    %93 = vector.shape_cast %92 : vector<1x1x32xf32> to vector<1x32xf32>
    %94 = vector.broadcast %93 : vector<1x32xf32> to vector<16x32xf32>
    %95 = arith.addf %91, %94 : vector<16x32xf32>
    %c0_37 = arith.constant 0 : index
    %c0_38 = arith.constant 0 : index
    %c0_39 = arith.constant 0 : index
    %96 = vector.load %arg7[%c0_37, %c0_38, %c0_39] : memref<2x32x64xbf16, #tpu.memory_space<vmem>>, vector<1x32x64xbf16>
    %97 = vector.shape_cast %96 : vector<1x32x64xbf16> to vector<32x64xbf16>
    %cst_40 = arith.constant dense<0.000000e+00> : vector<16x64xf32>
    %98 = tpu.matmul %2, %97, %cst_40 {dimension_numbers = #tpu.dot_dimension_numbers<[1], [0], [0], [1], [0, 0, 1, 1], [], []>} : vector<16x32xbf16>, vector<32x64xbf16>, vector<16x64xf32> -> vector<16x64xf32>
    %c0_41 = arith.constant 0 : index
    %c0_42 = arith.constant 0 : index
    %c0_43 = arith.constant 0 : index
    %99 = vector.load %arg8[%c0_41, %c0_42, %c0_43] : memref<2x1x64xf32, #tpu.memory_space<vmem>>, vector<1x1x64xf32>
    %100 = vector.shape_cast %99 : vector<1x1x64xf32> to vector<1x64xf32>
    %101 = vector.broadcast %100 : vector<1x64xf32> to vector<16x64xf32>
    %102 = arith.addf %98, %101 : vector<16x64xf32>
    %103 = vector.extract_strided_slice %95 {offsets = [0, 0], sizes = [16, 16], strides = [1, 1]} : vector<16x32xf32> to vector<16x16xf32>
    %104 = vector.shape_cast %103 : vector<16x16xf32> to vector<2x8x16xf32>
    %105 = vector.extract_strided_slice %95 {offsets = [0, 16], sizes = [16, 16], strides = [1, 1]} : vector<16x32xf32> to vector<16x16xf32>
    %106 = vector.shape_cast %105 : vector<16x16xf32> to vector<2x8x16xf32>
    %107 = tpu.concatenate %104, %106 in 0 : vector<2x8x16xf32>, vector<2x8x16xf32> -> vector<4x8x16xf32>
    %108 = vector.extract_strided_slice %102 {offsets = [0, 0], sizes = [16, 16], strides = [1, 1]} : vector<16x64xf32> to vector<16x16xf32>
    %109 = vector.shape_cast %108 : vector<16x16xf32> to vector<2x8x16xf32>
    %110 = vector.extract_strided_slice %102 {offsets = [0, 16], sizes = [16, 16], strides = [1, 1]} : vector<16x64xf32> to vector<16x16xf32>
    %111 = vector.shape_cast %110 : vector<16x16xf32> to vector<2x8x16xf32>
    %112 = tpu.concatenate %109, %111 in 0 : vector<2x8x16xf32>, vector<2x8x16xf32> -> vector<4x8x16xf32>
    %113 = vector.extract_strided_slice %102 {offsets = [0, 32], sizes = [16, 16], strides = [1, 1]} : vector<16x64xf32> to vector<16x16xf32>
    %114 = vector.shape_cast %113 : vector<16x16xf32> to vector<2x8x16xf32>
    %115 = vector.extract_strided_slice %102 {offsets = [0, 48], sizes = [16, 16], strides = [1, 1]} : vector<16x64xf32> to vector<16x16xf32>
    %116 = vector.shape_cast %115 : vector<16x16xf32> to vector<2x8x16xf32>
    %117 = tpu.concatenate %114, %116 in 0 : vector<2x8x16xf32>, vector<2x8x16xf32> -> vector<4x8x16xf32>
    %118 = arith.truncf %107 : vector<4x8x16xf32> to vector<4x8x16xbf16>
    %119 = arith.truncf %112 : vector<4x8x16xf32> to vector<4x8x16xbf16>
    "tpu.trace_start"() <{level = 10 : i32, message = "gqe,gke->gqk"}> : () -> ()
    %cst_44 = arith.constant dense<0.000000e+00> : vector<4x8x8xf32>
    %120 = tpu.matmul %118, %119, %cst_44 {dimension_numbers = #tpu.dot_dimension_numbers<[2], [2], [1], [1], [0, 0, 0, 1, 1, 1], [0], [0]>} : vector<4x8x16xbf16>, vector<4x8x16xbf16>, vector<4x8x8xf32> -> vector<4x8x8xf32>
    "tpu.trace_stop"() : () -> ()
    %cst_45 = arith.constant dense<0xFF800000> : vector<4x8xf32>
    %121 = vector.multi_reduction <maximumf>, %120, %cst_45 [2] : vector<4x8x8xf32> to vector<4x8xf32>
    %122 = vector.shape_cast %121 : vector<4x8xf32> to vector<4x8x1xf32>
    %123 = vector.broadcast %122 : vector<4x8x1xf32> to vector<4x8x8xf32>
    %124 = arith.subf %120, %123 : vector<4x8x8xf32>
    %125 = math.exp %124 : vector<4x8x8xf32>
    %cst_46 = arith.constant dense<0.000000e+00> : vector<4x8xf32>
    %126 = vector.multi_reduction <add>, %125, %cst_46 [2] : vector<4x8x8xf32> to vector<4x8xf32>
    %127 = vector.shape_cast %126 : vector<4x8xf32> to vector<4x8x1xf32>
    %128 = tpu.reciprocal %127 {approx = true} : vector<4x8x1xf32> -> vector<4x8x1xf32>
    %129 = vector.broadcast %128 : vector<4x8x1xf32> to vector<4x8x8xf32>
    %130 = arith.mulf %125, %129 : vector<4x8x8xf32>
    %131 = arith.truncf %130 : vector<4x8x8xf32> to vector<4x8x8xbf16>
    %132 = arith.truncf %117 : vector<4x8x16xf32> to vector<4x8x16xbf16>
    "tpu.trace_start"() <{level = 10 : i32, message = "gqk,gke->gqe"}> : () -> ()
    %cst_47 = arith.constant dense<0.000000e+00> : vector<4x8x16xf32>
    %133 = tpu.matmul %131, %132, %cst_47 {dimension_numbers = #tpu.dot_dimension_numbers<[2], [1], [1], [2], [0, 0, 0, 1, 1, 2], [0], [0]>} : vector<4x8x8xbf16>, vector<4x8x16xbf16>, vector<4x8x16xf32> -> vector<4x8x16xf32>
    "tpu.trace_stop"() : () -> ()
    %134 = vector.extract_strided_slice %133 {offsets = [0, 0, 0], sizes = [2, 8, 16], strides = [1, 1, 1]} : vector<4x8x16xf32> to vector<2x8x16xf32>
    %135 = vector.shape_cast %134 : vector<2x8x16xf32> to vector<16x16xf32>
    %136 = vector.extract_strided_slice %133 {offsets = [2, 0, 0], sizes = [2, 8, 16], strides = [1, 1, 1]} : vector<4x8x16xf32> to vector<2x8x16xf32>
    %137 = vector.shape_cast %136 : vector<2x8x16xf32> to vector<16x16xf32>
    %138 = tpu.concatenate %135, %137 in 1 : vector<16x16xf32>, vector<16x16xf32> -> vector<16x32xf32>
    %139 = arith.truncf %138 : vector<16x32xf32> to vector<16x32xbf16>
    %c0_48 = arith.constant 0 : index
    %c0_49 = arith.constant 0 : index
    %c0_50 = arith.constant 0 : index
    %140 = vector.load %arg9[%c0_48, %c0_49, %c0_50] : memref<2x32x32xbf16, #tpu.memory_space<vmem>>, vector<1x32x32xbf16>
    %141 = vector.shape_cast %140 : vector<1x32x32xbf16> to vector<32x32xbf16>
    %cst_51 = arith.constant dense<0.000000e+00> : vector<16x32xf32>
    %142 = tpu.matmul %139, %141, %cst_51 {dimension_numbers = #tpu.dot_dimension_numbers<[1], [0], [0], [1], [0, 0, 1, 1], [], []>} : vector<16x32xbf16>, vector<32x32xbf16>, vector<16x32xf32> -> vector<16x32xf32>
    %143 = vector.extract_strided_slice %4 {offsets = [1, 0], sizes = [1, 32], strides = [1, 1]} : vector<6x32xf32> to vector<1x32xf32>
    %144 = vector.broadcast %143 : vector<1x32xf32> to vector<16x32xf32>
    %145 = arith.addf %142, %144 : vector<16x32xf32>
    %146 = vector.shape_cast %145 : vector<16x32xf32> to vector<2x8x32xf32>
    %147 = arith.addf %86, %146 : vector<2x8x32xf32>
    %148 = vector.extract_strided_slice %6 {offsets = [1, 0], sizes = [1, 32], strides = [1, 1]} : vector<3x32xf32> to vector<1x32xf32>
    %149 = vector.extract_strided_slice %4 {offsets = [4, 0], sizes = [1, 32], strides = [1, 1]} : vector<6x32xf32> to vector<1x32xf32>
    %cst_52 = arith.constant dense<0.000000e+00> : vector<2x8xf32>
    %150 = vector.multi_reduction <add>, %147, %cst_52 [2] : vector<2x8x32xf32> to vector<2x8xf32>
    %151 = vector.shape_cast %150 : vector<2x8xf32> to vector<2x8x1xf32>
    %cst_53 = arith.constant 3.200000e+01 : f32
    %152 = vector.broadcast %cst_53 : f32 to vector<2x8x1xf32>
    %153 = arith.divf %151, %152 : vector<2x8x1xf32>
    %154 = vector.broadcast %153 : vector<2x8x1xf32> to vector<2x8x32xf32>
    %155 = arith.subf %147, %154 : vector<2x8x32xf32>
    %156 = arith.mulf %155, %155 : vector<2x8x32xf32>
    %cst_54 = arith.constant dense<0.000000e+00> : vector<2x8xf32>
    %157 = vector.multi_reduction <add>, %156, %cst_54 [2] : vector<2x8x32xf32> to vector<2x8xf32>
    %158 = vector.shape_cast %157 : vector<2x8xf32> to vector<2x8x1xf32>
    %cst_55 = arith.constant 3.200000e+01 : f32
    %159 = vector.broadcast %cst_55 : f32 to vector<2x8x1xf32>
    %160 = arith.divf %158, %159 : vector<2x8x1xf32>
    %161 = vector.broadcast %153 : vector<2x8x1xf32> to vector<2x8x32xf32>
    %162 = arith.subf %147, %161 : vector<2x8x32xf32>
    %cst_56 = arith.constant 9.99999974E-6 : f32
    %163 = vector.broadcast %cst_56 : f32 to vector<2x8x1xf32>
    %164 = arith.addf %160, %163 : vector<2x8x1xf32>
    %165 = math.rsqrt %164 : vector<2x8x1xf32>
    %166 = vector.broadcast %165 : vector<2x8x1xf32> to vector<2x8x32xf32>
    %167 = arith.mulf %162, %166 : vector<2x8x32xf32>
    %168 = vector.shape_cast %148 : vector<1x32xf32> to vector<1x1x32xf32>
    %169 = vector.broadcast %168 : vector<1x1x32xf32> to vector<2x8x32xf32>
    %170 = arith.mulf %167, %169 : vector<2x8x32xf32>
    %171 = vector.shape_cast %149 : vector<1x32xf32> to vector<1x1x32xf32>
    %172 = vector.broadcast %171 : vector<1x1x32xf32> to vector<2x8x32xf32>
    %173 = arith.addf %170, %172 : vector<2x8x32xf32>
    %174 = vector.shape_cast %173 : vector<2x8x32xf32> to vector<16x32xf32>
    %175 = arith.truncf %174 : vector<16x32xf32> to vector<16x32xbf16>
    %c0_57 = arith.constant 0 : index
    %c0_58 = arith.constant 0 : index
    %c0_59 = arith.constant 0 : index
    %176 = vector.load %arg10[%c0_57, %c0_58, %c0_59] : memref<2x32x64xbf16, #tpu.memory_space<vmem>>, vector<1x32x64xbf16>
    %177 = vector.shape_cast %176 : vector<1x32x64xbf16> to vector<32x64xbf16>
    %cst_60 = arith.constant dense<0.000000e+00> : vector<16x64xf32>
    %178 = tpu.matmul %175, %177, %cst_60 {dimension_numbers = #tpu.dot_dimension_numbers<[1], [0], [0], [1], [0, 0, 1, 1], [], []>} : vector<16x32xbf16>, vector<32x64xbf16>, vector<16x64xf32> -> vector<16x64xf32>
    %c0_61 = arith.constant 0 : index
    %c0_62 = arith.constant 0 : index
    %c0_63 = arith.constant 0 : index
    %179 = vector.load %arg11[%c0_61, %c0_62, %c0_63] : memref<2x1x64xf32, #tpu.memory_space<vmem>>, vector<1x1x64xf32>
    %180 = vector.shape_cast %179 : vector<1x1x64xf32> to vector<1x64xf32>
    %181 = vector.broadcast %180 : vector<1x64xf32> to vector<16x64xf32>
    %182 = arith.addf %178, %181 : vector<16x64xf32>
    %cst_64 = arith.constant 0.000000e+00 : f32
    %183 = vector.broadcast %cst_64 : f32 to vector<16x64xf32>
    %184 = arith.maximumf %182, %183 : vector<16x64xf32>
    %185 = arith.truncf %184 : vector<16x64xf32> to vector<16x64xbf16>
    %c0_65 = arith.constant 0 : index
    %c0_66 = arith.constant 0 : index
    %c0_67 = arith.constant 0 : index
    %186 = vector.load %arg12[%c0_65, %c0_66, %c0_67] : memref<2x64x32xbf16, #tpu.memory_space<vmem>>, vector<1x64x32xbf16>
    %187 = vector.shape_cast %186 : vector<1x64x32xbf16> to vector<64x32xbf16>
    %cst_68 = arith.constant dense<0.000000e+00> : vector<16x32xf32>
    %188 = tpu.matmul %185, %187, %cst_68 {dimension_numbers = #tpu.dot_dimension_numbers<[1], [0], [0], [1], [0, 0, 1, 1], [], []>} : vector<16x64xbf16>, vector<64x32xbf16>, vector<16x32xf32> -> vector<16x32xf32>
    %189 = vector.extract_strided_slice %4 {offsets = [2, 0], sizes = [1, 32], strides = [1, 1]} : vector<6x32xf32> to vector<1x32xf32>
    %190 = vector.broadcast %189 : vector<1x32xf32> to vector<16x32xf32>
    %191 = arith.addf %188, %190 : vector<16x32xf32>
    %192 = vector.shape_cast %191 : vector<16x32xf32> to vector<2x8x32xf32>
    %193 = arith.addf %173, %192 : vector<2x8x32xf32>
    %194 = vector.extract_strided_slice %6 {offsets = [2, 0], sizes = [1, 32], strides = [1, 1]} : vector<3x32xf32> to vector<1x32xf32>
    %195 = vector.extract_strided_slice %4 {offsets = [5, 0], sizes = [1, 32], strides = [1, 1]} : vector<6x32xf32> to vector<1x32xf32>
    %cst_69 = arith.constant dense<0.000000e+00> : vector<2x8xf32>
    %196 = vector.multi_reduction <add>, %193, %cst_69 [2] : vector<2x8x32xf32> to vector<2x8xf32>
    %197 = vector.shape_cast %196 : vector<2x8xf32> to vector<2x8x1xf32>
    %cst_70 = arith.constant 3.200000e+01 : f32
    %198 = vector.broadcast %cst_70 : f32 to vector<2x8x1xf32>
    %199 = arith.divf %197, %198 : vector<2x8x1xf32>
    %200 = vector.broadcast %199 : vector<2x8x1xf32> to vector<2x8x32xf32>
    %201 = arith.subf %193, %200 : vector<2x8x32xf32>
    %202 = arith.mulf %201, %201 : vector<2x8x32xf32>
    %cst_71 = arith.constant dense<0.000000e+00> : vector<2x8xf32>
    %203 = vector.multi_reduction <add>, %202, %cst_71 [2] : vector<2x8x32xf32> to vector<2x8xf32>
    %204 = vector.shape_cast %203 : vector<2x8xf32> to vector<2x8x1xf32>
    %cst_72 = arith.constant 3.200000e+01 : f32
    %205 = vector.broadcast %cst_72 : f32 to vector<2x8x1xf32>
    %206 = arith.divf %204, %205 : vector<2x8x1xf32>
    %207 = vector.broadcast %199 : vector<2x8x1xf32> to vector<2x8x32xf32>
    %208 = arith.subf %193, %207 : vector<2x8x32xf32>
    %cst_73 = arith.constant 9.99999974E-6 : f32
    %209 = vector.broadcast %cst_73 : f32 to vector<2x8x1xf32>
    %210 = arith.addf %206, %209 : vector<2x8x1xf32>
    %211 = math.rsqrt %210 : vector<2x8x1xf32>
    %212 = vector.broadcast %211 : vector<2x8x1xf32> to vector<2x8x32xf32>
    %213 = arith.mulf %208, %212 : vector<2x8x32xf32>
    %214 = vector.shape_cast %194 : vector<1x32xf32> to vector<1x1x32xf32>
    %215 = vector.broadcast %214 : vector<1x1x32xf32> to vector<2x8x32xf32>
    %216 = arith.mulf %213, %215 : vector<2x8x32xf32>
    %217 = vector.shape_cast %195 : vector<1x32xf32> to vector<1x1x32xf32>
    %218 = vector.broadcast %217 : vector<1x1x32xf32> to vector<2x8x32xf32>
    %219 = arith.addf %216, %218 : vector<2x8x32xf32>
    %c1 = arith.constant 1 : index
    %c0_74 = arith.constant 0 : index
    %c0_75 = arith.constant 0 : index
    %220 = vector.load %arg13[%c1, %c0_74, %c0_75] : memref<2x6x32xf32, #tpu.memory_space<vmem>>, vector<1x6x32xf32>
    %221 = vector.shape_cast %220 : vector<1x6x32xf32> to vector<6x32xf32>
    %c1_76 = arith.constant 1 : index
    %c0_77 = arith.constant 0 : index
    %c0_78 = arith.constant 0 : index
    %222 = vector.load %arg14[%c1_76, %c0_77, %c0_78] : memref<2x3x32xf32, #tpu.memory_space<vmem>>, vector<1x3x32xf32>
    %223 = vector.shape_cast %222 : vector<1x3x32xf32> to vector<3x32xf32>
    %224 = vector.shape_cast %219 : vector<2x8x32xf32> to vector<16x32xf32>
    %225 = arith.truncf %224 : vector<16x32xf32> to vector<16x32xbf16>
    %c1_79 = arith.constant 1 : index
    %c0_80 = arith.constant 0 : index
    %c0_81 = arith.constant 0 : index
    %226 = vector.load %arg2[%c1_79, %c0_80, %c0_81] : memref<2x32x96xbf16, #tpu.memory_space<vmem>>, vector<1x32x96xbf16>
    %227 = vector.shape_cast %226 : vector<1x32x96xbf16> to vector<32x96xbf16>
    %cst_82 = arith.constant dense<0.000000e+00> : vector<16x96xf32>
    %228 = tpu.matmul %225, %227, %cst_82 {dimension_numbers = #tpu.dot_dimension_numbers<[1], [0], [0], [1], [0, 0, 1, 1], [], []>} : vector<16x32xbf16>, vector<32x96xbf16>, vector<16x96xf32> -> vector<16x96xf32>
    %c1_83 = arith.constant 1 : index
    %c0_84 = arith.constant 0 : index
    %c0_85 = arith.constant 0 : index
    %229 = vector.load %arg3[%c1_83, %c0_84, %c0_85] : memref<2x1x96xf32, #tpu.memory_space<vmem>>, vector<1x1x96xf32>
    %230 = vector.shape_cast %229 : vector<1x1x96xf32> to vector<1x96xf32>
    %231 = vector.broadcast %230 : vector<1x96xf32> to vector<16x96xf32>
    %232 = arith.addf %228, %231 : vector<16x96xf32>
    %233 = vector.extract_strided_slice %232 {offsets = [0, 0], sizes = [16, 16], strides = [1, 1]} : vector<16x96xf32> to vector<16x16xf32>
    %234 = vector.shape_cast %233 : vector<16x16xf32> to vector<2x8x16xf32>
    %235 = vector.extract_strided_slice %232 {offsets = [0, 16], sizes = [16, 16], strides = [1, 1]} : vector<16x96xf32> to vector<16x16xf32>
    %236 = vector.shape_cast %235 : vector<16x16xf32> to vector<2x8x16xf32>
    %237 = tpu.concatenate %234, %236 in 0 : vector<2x8x16xf32>, vector<2x8x16xf32> -> vector<4x8x16xf32>
    %238 = vector.extract_strided_slice %232 {offsets = [0, 32], sizes = [16, 16], strides = [1, 1]} : vector<16x96xf32> to vector<16x16xf32>
    %239 = vector.shape_cast %238 : vector<16x16xf32> to vector<2x8x16xf32>
    %240 = vector.extract_strided_slice %232 {offsets = [0, 48], sizes = [16, 16], strides = [1, 1]} : vector<16x96xf32> to vector<16x16xf32>
    %241 = vector.shape_cast %240 : vector<16x16xf32> to vector<2x8x16xf32>
    %242 = tpu.concatenate %239, %241 in 0 : vector<2x8x16xf32>, vector<2x8x16xf32> -> vector<4x8x16xf32>
    %243 = vector.extract_strided_slice %232 {offsets = [0, 64], sizes = [16, 16], strides = [1, 1]} : vector<16x96xf32> to vector<16x16xf32>
    %244 = vector.shape_cast %243 : vector<16x16xf32> to vector<2x8x16xf32>
    %245 = vector.extract_strided_slice %232 {offsets = [0, 80], sizes = [16, 16], strides = [1, 1]} : vector<16x96xf32> to vector<16x16xf32>
    %246 = vector.shape_cast %245 : vector<16x16xf32> to vector<2x8x16xf32>
    %247 = tpu.concatenate %244, %246 in 0 : vector<2x8x16xf32>, vector<2x8x16xf32> -> vector<4x8x16xf32>
    %248 = arith.truncf %237 : vector<4x8x16xf32> to vector<4x8x16xbf16>
    %249 = arith.truncf %242 : vector<4x8x16xf32> to vector<4x8x16xbf16>
    "tpu.trace_start"() <{level = 10 : i32, message = "gqe,gke->gqk"}> : () -> ()
    %cst_86 = arith.constant dense<0.000000e+00> : vector<4x8x8xf32>
    %250 = tpu.matmul %248, %249, %cst_86 {dimension_numbers = #tpu.dot_dimension_numbers<[2], [2], [1], [1], [0, 0, 0, 1, 1, 1], [0], [0]>} : vector<4x8x16xbf16>, vector<4x8x16xbf16>, vector<4x8x8xf32> -> vector<4x8x8xf32>
    "tpu.trace_stop"() : () -> ()
    %cst_87 = arith.constant dense<0xFF800000> : vector<4x8xf32>
    %251 = vector.multi_reduction <maximumf>, %250, %cst_87 [2] : vector<4x8x8xf32> to vector<4x8xf32>
    %252 = vector.shape_cast %251 : vector<4x8xf32> to vector<4x8x1xf32>
    %253 = vector.broadcast %252 : vector<4x8x1xf32> to vector<4x8x8xf32>
    %254 = arith.subf %250, %253 : vector<4x8x8xf32>
    %255 = math.exp %254 : vector<4x8x8xf32>
    %cst_88 = arith.constant dense<0.000000e+00> : vector<4x8xf32>
    %256 = vector.multi_reduction <add>, %255, %cst_88 [2] : vector<4x8x8xf32> to vector<4x8xf32>
    %257 = vector.shape_cast %256 : vector<4x8xf32> to vector<4x8x1xf32>
    %258 = tpu.reciprocal %257 {approx = true} : vector<4x8x1xf32> -> vector<4x8x1xf32>
    %259 = vector.broadcast %258 : vector<4x8x1xf32> to vector<4x8x8xf32>
    %260 = arith.mulf %255, %259 : vector<4x8x8xf32>
    %261 = arith.truncf %260 : vector<4x8x8xf32> to vector<4x8x8xbf16>
    %262 = arith.truncf %247 : vector<4x8x16xf32> to vector<4x8x16xbf16>
    "tpu.trace_start"() <{level = 10 : i32, message = "gqk,gke->gqe"}> : () -> ()
    %cst_89 = arith.constant dense<0.000000e+00> : vector<4x8x16xf32>
    %263 = tpu.matmul %261, %262, %cst_89 {dimension_numbers = #tpu.dot_dimension_numbers<[2], [1], [1], [2], [0, 0, 0, 1, 1, 2], [0], [0]>} : vector<4x8x8xbf16>, vector<4x8x16xbf16>, vector<4x8x16xf32> -> vector<4x8x16xf32>
    "tpu.trace_stop"() : () -> ()
    %264 = vector.extract_strided_slice %263 {offsets = [0, 0, 0], sizes = [2, 8, 16], strides = [1, 1, 1]} : vector<4x8x16xf32> to vector<2x8x16xf32>
    %265 = vector.shape_cast %264 : vector<2x8x16xf32> to vector<16x16xf32>
    %266 = vector.extract_strided_slice %263 {offsets = [2, 0, 0], sizes = [2, 8, 16], strides = [1, 1, 1]} : vector<4x8x16xf32> to vector<2x8x16xf32>
    %267 = vector.shape_cast %266 : vector<2x8x16xf32> to vector<16x16xf32>
    %268 = tpu.concatenate %265, %267 in 1 : vector<16x16xf32>, vector<16x16xf32> -> vector<16x32xf32>
    %269 = arith.truncf %268 : vector<16x32xf32> to vector<16x32xbf16>
    %c1_90 = arith.constant 1 : index
    %c0_91 = arith.constant 0 : index
    %c0_92 = arith.constant 0 : index
    %270 = vector.load %arg4[%c1_90, %c0_91, %c0_92] : memref<2x32x32xbf16, #tpu.memory_space<vmem>>, vector<1x32x32xbf16>
    %271 = vector.shape_cast %270 : vector<1x32x32xbf16> to vector<32x32xbf16>
    %cst_93 = arith.constant dense<0.000000e+00> : vector<16x32xf32>
    %272 = tpu.matmul %269, %271, %cst_93 {dimension_numbers = #tpu.dot_dimension_numbers<[1], [0], [0], [1], [0, 0, 1, 1], [], []>} : vector<16x32xbf16>, vector<32x32xbf16>, vector<16x32xf32> -> vector<16x32xf32>
    %273 = vector.extract_strided_slice %221 {offsets = [0, 0], sizes = [1, 32], strides = [1, 1]} : vector<6x32xf32> to vector<1x32xf32>
    %274 = vector.broadcast %273 : vector<1x32xf32> to vector<16x32xf32>
    %275 = arith.addf %272, %274 : vector<16x32xf32>
    %276 = vector.shape_cast %275 : vector<16x32xf32> to vector<2x8x32xf32>
    %277 = arith.addf %219, %276 : vector<2x8x32xf32>
    %278 = vector.extract_strided_slice %223 {offsets = [0, 0], sizes = [1, 32], strides = [1, 1]} : vector<3x32xf32> to vector<1x32xf32>
    %279 = vector.extract_strided_slice %221 {offsets = [3, 0], sizes = [1, 32], strides = [1, 1]} : vector<6x32xf32> to vector<1x32xf32>
    %cst_94 = arith.constant dense<0.000000e+00> : vector<2x8xf32>
    %280 = vector.multi_reduction <add>, %277, %cst_94 [2] : vector<2x8x32xf32> to vector<2x8xf32>
    %281 = vector.shape_cast %280 : vector<2x8xf32> to vector<2x8x1xf32>
    %cst_95 = arith.constant 3.200000e+01 : f32
    %282 = vector.broadcast %cst_95 : f32 to vector<2x8x1xf32>
    %283 = arith.divf %281, %282 : vector<2x8x1xf32>
    %284 = vector.broadcast %283 : vector<2x8x1xf32> to vector<2x8x32xf32>
    %285 = arith.subf %277, %284 : vector<2x8x32xf32>
    %286 = arith.mulf %285, %285 : vector<2x8x32xf32>
    %cst_96 = arith.constant dense<0.000000e+00> : vector<2x8xf32>
    %287 = vector.multi_reduction <add>, %286, %cst_96 [2] : vector<2x8x32xf32> to vector<2x8xf32>
    %288 = vector.shape_cast %287 : vector<2x8xf32> to vector<2x8x1xf32>
    %cst_97 = arith.constant 3.200000e+01 : f32
    %289 = vector.broadcast %cst_97 : f32 to vector<2x8x1xf32>
    %290 = arith.divf %288, %289 : vector<2x8x1xf32>
    %291 = vector.broadcast %283 : vector<2x8x1xf32> to vector<2x8x32xf32>
    %292 = arith.subf %277, %291 : vector<2x8x32xf32>
    %cst_98 = arith.constant 9.99999974E-6 : f32
    %293 = vector.broadcast %cst_98 : f32 to vector<2x8x1xf32>
    %294 = arith.addf %290, %293 : vector<2x8x1xf32>
    %295 = math.rsqrt %294 : vector<2x8x1xf32>
    %296 = vector.broadcast %295 : vector<2x8x1xf32> to vector<2x8x32xf32>
    %297 = arith.mulf %292, %296 : vector<2x8x32xf32>
    %298 = vector.shape_cast %278 : vector<1x32xf32> to vector<1x1x32xf32>
    %299 = vector.broadcast %298 : vector<1x1x32xf32> to vector<2x8x32xf32>
    %300 = arith.mulf %297, %299 : vector<2x8x32xf32>
    %301 = vector.shape_cast %279 : vector<1x32xf32> to vector<1x1x32xf32>
    %302 = vector.broadcast %301 : vector<1x1x32xf32> to vector<2x8x32xf32>
    %303 = arith.addf %300, %302 : vector<2x8x32xf32>
    %304 = vector.shape_cast %303 : vector<2x8x32xf32> to vector<16x32xf32>
    %305 = arith.truncf %304 : vector<16x32xf32> to vector<16x32xbf16>
    %c1_99 = arith.constant 1 : index
    %c0_100 = arith.constant 0 : index
    %c0_101 = arith.constant 0 : index
    %306 = vector.load %arg5[%c1_99, %c0_100, %c0_101] : memref<2x32x32xbf16, #tpu.memory_space<vmem>>, vector<1x32x32xbf16>
    %307 = vector.shape_cast %306 : vector<1x32x32xbf16> to vector<32x32xbf16>
    %cst_102 = arith.constant dense<0.000000e+00> : vector<16x32xf32>
    %308 = tpu.matmul %305, %307, %cst_102 {dimension_numbers = #tpu.dot_dimension_numbers<[1], [0], [0], [1], [0, 0, 1, 1], [], []>} : vector<16x32xbf16>, vector<32x32xbf16>, vector<16x32xf32> -> vector<16x32xf32>
    %c1_103 = arith.constant 1 : index
    %c0_104 = arith.constant 0 : index
    %c0_105 = arith.constant 0 : index
    %309 = vector.load %arg6[%c1_103, %c0_104, %c0_105] : memref<2x1x32xf32, #tpu.memory_space<vmem>>, vector<1x1x32xf32>
    %310 = vector.shape_cast %309 : vector<1x1x32xf32> to vector<1x32xf32>
    %311 = vector.broadcast %310 : vector<1x32xf32> to vector<16x32xf32>
    %312 = arith.addf %308, %311 : vector<16x32xf32>
    %c1_106 = arith.constant 1 : index
    %c0_107 = arith.constant 0 : index
    %c0_108 = arith.constant 0 : index
    %313 = vector.load %arg7[%c1_106, %c0_107, %c0_108] : memref<2x32x64xbf16, #tpu.memory_space<vmem>>, vector<1x32x64xbf16>
    %314 = vector.shape_cast %313 : vector<1x32x64xbf16> to vector<32x64xbf16>
    %cst_109 = arith.constant dense<0.000000e+00> : vector<16x64xf32>
    %315 = tpu.matmul %2, %314, %cst_109 {dimension_numbers = #tpu.dot_dimension_numbers<[1], [0], [0], [1], [0, 0, 1, 1], [], []>} : vector<16x32xbf16>, vector<32x64xbf16>, vector<16x64xf32> -> vector<16x64xf32>
    %c1_110 = arith.constant 1 : index
    %c0_111 = arith.constant 0 : index
    %c0_112 = arith.constant 0 : index
    %316 = vector.load %arg8[%c1_110, %c0_111, %c0_112] : memref<2x1x64xf32, #tpu.memory_space<vmem>>, vector<1x1x64xf32>
    %317 = vector.shape_cast %316 : vector<1x1x64xf32> to vector<1x64xf32>
    %318 = vector.broadcast %317 : vector<1x64xf32> to vector<16x64xf32>
    %319 = arith.addf %315, %318 : vector<16x64xf32>
    %320 = vector.extract_strided_slice %312 {offsets = [0, 0], sizes = [16, 16], strides = [1, 1]} : vector<16x32xf32> to vector<16x16xf32>
    %321 = vector.shape_cast %320 : vector<16x16xf32> to vector<2x8x16xf32>
    %322 = vector.extract_strided_slice %312 {offsets = [0, 16], sizes = [16, 16], strides = [1, 1]} : vector<16x32xf32> to vector<16x16xf32>
    %323 = vector.shape_cast %322 : vector<16x16xf32> to vector<2x8x16xf32>
    %324 = tpu.concatenate %321, %323 in 0 : vector<2x8x16xf32>, vector<2x8x16xf32> -> vector<4x8x16xf32>
    %325 = vector.extract_strided_slice %319 {offsets = [0, 0], sizes = [16, 16], strides = [1, 1]} : vector<16x64xf32> to vector<16x16xf32>
    %326 = vector.shape_cast %325 : vector<16x16xf32> to vector<2x8x16xf32>
    %327 = vector.extract_strided_slice %319 {offsets = [0, 16], sizes = [16, 16], strides = [1, 1]} : vector<16x64xf32> to vector<16x16xf32>
    %328 = vector.shape_cast %327 : vector<16x16xf32> to vector<2x8x16xf32>
    %329 = tpu.concatenate %326, %328 in 0 : vector<2x8x16xf32>, vector<2x8x16xf32> -> vector<4x8x16xf32>
    %330 = vector.extract_strided_slice %319 {offsets = [0, 32], sizes = [16, 16], strides = [1, 1]} : vector<16x64xf32> to vector<16x16xf32>
    %331 = vector.shape_cast %330 : vector<16x16xf32> to vector<2x8x16xf32>
    %332 = vector.extract_strided_slice %319 {offsets = [0, 48], sizes = [16, 16], strides = [1, 1]} : vector<16x64xf32> to vector<16x16xf32>
    %333 = vector.shape_cast %332 : vector<16x16xf32> to vector<2x8x16xf32>
    %334 = tpu.concatenate %331, %333 in 0 : vector<2x8x16xf32>, vector<2x8x16xf32> -> vector<4x8x16xf32>
    %335 = arith.truncf %324 : vector<4x8x16xf32> to vector<4x8x16xbf16>
    %336 = arith.truncf %329 : vector<4x8x16xf32> to vector<4x8x16xbf16>
    "tpu.trace_start"() <{level = 10 : i32, message = "gqe,gke->gqk"}> : () -> ()
    %cst_113 = arith.constant dense<0.000000e+00> : vector<4x8x8xf32>
    %337 = tpu.matmul %335, %336, %cst_113 {dimension_numbers = #tpu.dot_dimension_numbers<[2], [2], [1], [1], [0, 0, 0, 1, 1, 1], [0], [0]>} : vector<4x8x16xbf16>, vector<4x8x16xbf16>, vector<4x8x8xf32> -> vector<4x8x8xf32>
    "tpu.trace_stop"() : () -> ()
    %cst_114 = arith.constant dense<0xFF800000> : vector<4x8xf32>
    %338 = vector.multi_reduction <maximumf>, %337, %cst_114 [2] : vector<4x8x8xf32> to vector<4x8xf32>
    %339 = vector.shape_cast %338 : vector<4x8xf32> to vector<4x8x1xf32>
    %340 = vector.broadcast %339 : vector<4x8x1xf32> to vector<4x8x8xf32>
    %341 = arith.subf %337, %340 : vector<4x8x8xf32>
    %342 = math.exp %341 : vector<4x8x8xf32>
    %cst_115 = arith.constant dense<0.000000e+00> : vector<4x8xf32>
    %343 = vector.multi_reduction <add>, %342, %cst_115 [2] : vector<4x8x8xf32> to vector<4x8xf32>
    %344 = vector.shape_cast %343 : vector<4x8xf32> to vector<4x8x1xf32>
    %345 = tpu.reciprocal %344 {approx = true} : vector<4x8x1xf32> -> vector<4x8x1xf32>
    %346 = vector.broadcast %345 : vector<4x8x1xf32> to vector<4x8x8xf32>
    %347 = arith.mulf %342, %346 : vector<4x8x8xf32>
    %348 = arith.truncf %347 : vector<4x8x8xf32> to vector<4x8x8xbf16>
    %349 = arith.truncf %334 : vector<4x8x16xf32> to vector<4x8x16xbf16>
    "tpu.trace_start"() <{level = 10 : i32, message = "gqk,gke->gqe"}> : () -> ()
    %cst_116 = arith.constant dense<0.000000e+00> : vector<4x8x16xf32>
    %350 = tpu.matmul %348, %349, %cst_116 {dimension_numbers = #tpu.dot_dimension_numbers<[2], [1], [1], [2], [0, 0, 0, 1, 1, 2], [0], [0]>} : vector<4x8x8xbf16>, vector<4x8x16xbf16>, vector<4x8x16xf32> -> vector<4x8x16xf32>
    "tpu.trace_stop"() : () -> ()
    %351 = vector.extract_strided_slice %350 {offsets = [0, 0, 0], sizes = [2, 8, 16], strides = [1, 1, 1]} : vector<4x8x16xf32> to vector<2x8x16xf32>
    %352 = vector.shape_cast %351 : vector<2x8x16xf32> to vector<16x16xf32>
    %353 = vector.extract_strided_slice %350 {offsets = [2, 0, 0], sizes = [2, 8, 16], strides = [1, 1, 1]} : vector<4x8x16xf32> to vector<2x8x16xf32>
    %354 = vector.shape_cast %353 : vector<2x8x16xf32> to vector<16x16xf32>
    %355 = tpu.concatenate %352, %354 in 1 : vector<16x16xf32>, vector<16x16xf32> -> vector<16x32xf32>
    %356 = arith.truncf %355 : vector<16x32xf32> to vector<16x32xbf16>
    %c1_117 = arith.constant 1 : index
    %c0_118 = arith.constant 0 : index
    %c0_119 = arith.constant 0 : index
    %357 = vector.load %arg9[%c1_117, %c0_118, %c0_119] : memref<2x32x32xbf16, #tpu.memory_space<vmem>>, vector<1x32x32xbf16>
    %358 = vector.shape_cast %357 : vector<1x32x32xbf16> to vector<32x32xbf16>
    %cst_120 = arith.constant dense<0.000000e+00> : vector<16x32xf32>
    %359 = tpu.matmul %356, %358, %cst_120 {dimension_numbers = #tpu.dot_dimension_numbers<[1], [0], [0], [1], [0, 0, 1, 1], [], []>} : vector<16x32xbf16>, vector<32x32xbf16>, vector<16x32xf32> -> vector<16x32xf32>
    %360 = vector.extract_strided_slice %221 {offsets = [1, 0], sizes = [1, 32], strides = [1, 1]} : vector<6x32xf32> to vector<1x32xf32>
    %361 = vector.broadcast %360 : vector<1x32xf32> to vector<16x32xf32>
    %362 = arith.addf %359, %361 : vector<16x32xf32>
    %363 = vector.shape_cast %362 : vector<16x32xf32> to vector<2x8x32xf32>
    %364 = arith.addf %303, %363 : vector<2x8x32xf32>
    %365 = vector.extract_strided_slice %223 {offsets = [1, 0], sizes = [1, 32], strides = [1, 1]} : vector<3x32xf32> to vector<1x32xf32>
    %366 = vector.extract_strided_slice %221 {offsets = [4, 0], sizes = [1, 32], strides = [1, 1]} : vector<6x32xf32> to vector<1x32xf32>
    %cst_121 = arith.constant dense<0.000000e+00> : vector<2x8xf32>
    %367 = vector.multi_reduction <add>, %364, %cst_121 [2] : vector<2x8x32xf32> to vector<2x8xf32>
    %368 = vector.shape_cast %367 : vector<2x8xf32> to vector<2x8x1xf32>
    %cst_122 = arith.constant 3.200000e+01 : f32
    %369 = vector.broadcast %cst_122 : f32 to vector<2x8x1xf32>
    %370 = arith.divf %368, %369 : vector<2x8x1xf32>
    %371 = vector.broadcast %370 : vector<2x8x1xf32> to vector<2x8x32xf32>
    %372 = arith.subf %364, %371 : vector<2x8x32xf32>
    %373 = arith.mulf %372, %372 : vector<2x8x32xf32>
    %cst_123 = arith.constant dense<0.000000e+00> : vector<2x8xf32>
    %374 = vector.multi_reduction <add>, %373, %cst_123 [2] : vector<2x8x32xf32> to vector<2x8xf32>
    %375 = vector.shape_cast %374 : vector<2x8xf32> to vector<2x8x1xf32>
    %cst_124 = arith.constant 3.200000e+01 : f32
    %376 = vector.broadcast %cst_124 : f32 to vector<2x8x1xf32>
    %377 = arith.divf %375, %376 : vector<2x8x1xf32>
    %378 = vector.broadcast %370 : vector<2x8x1xf32> to vector<2x8x32xf32>
    %379 = arith.subf %364, %378 : vector<2x8x32xf32>
    %cst_125 = arith.constant 9.99999974E-6 : f32
    %380 = vector.broadcast %cst_125 : f32 to vector<2x8x1xf32>
    %381 = arith.addf %377, %380 : vector<2x8x1xf32>
    %382 = math.rsqrt %381 : vector<2x8x1xf32>
    %383 = vector.broadcast %382 : vector<2x8x1xf32> to vector<2x8x32xf32>
    %384 = arith.mulf %379, %383 : vector<2x8x32xf32>
    %385 = vector.shape_cast %365 : vector<1x32xf32> to vector<1x1x32xf32>
    %386 = vector.broadcast %385 : vector<1x1x32xf32> to vector<2x8x32xf32>
    %387 = arith.mulf %384, %386 : vector<2x8x32xf32>
    %388 = vector.shape_cast %366 : vector<1x32xf32> to vector<1x1x32xf32>
    %389 = vector.broadcast %388 : vector<1x1x32xf32> to vector<2x8x32xf32>
    %390 = arith.addf %387, %389 : vector<2x8x32xf32>
    %391 = vector.shape_cast %390 : vector<2x8x32xf32> to vector<16x32xf32>
    %392 = arith.truncf %391 : vector<16x32xf32> to vector<16x32xbf16>
    %c1_126 = arith.constant 1 : index
    %c0_127 = arith.constant 0 : index
    %c0_128 = arith.constant 0 : index
    %393 = vector.load %arg10[%c1_126, %c0_127, %c0_128] : memref<2x32x64xbf16, #tpu.memory_space<vmem>>, vector<1x32x64xbf16>
    %394 = vector.shape_cast %393 : vector<1x32x64xbf16> to vector<32x64xbf16>
    %cst_129 = arith.constant dense<0.000000e+00> : vector<16x64xf32>
    %395 = tpu.matmul %392, %394, %cst_129 {dimension_numbers = #tpu.dot_dimension_numbers<[1], [0], [0], [1], [0, 0, 1, 1], [], []>} : vector<16x32xbf16>, vector<32x64xbf16>, vector<16x64xf32> -> vector<16x64xf32>
    %c1_130 = arith.constant 1 : index
    %c0_131 = arith.constant 0 : index
    %c0_132 = arith.constant 0 : index
    %396 = vector.load %arg11[%c1_130, %c0_131, %c0_132] : memref<2x1x64xf32, #tpu.memory_space<vmem>>, vector<1x1x64xf32>
    %397 = vector.shape_cast %396 : vector<1x1x64xf32> to vector<1x64xf32>
    %398 = vector.broadcast %397 : vector<1x64xf32> to vector<16x64xf32>
    %399 = arith.addf %395, %398 : vector<16x64xf32>
    %cst_133 = arith.constant 0.000000e+00 : f32
    %400 = vector.broadcast %cst_133 : f32 to vector<16x64xf32>
    %401 = arith.maximumf %399, %400 : vector<16x64xf32>
    %402 = arith.truncf %401 : vector<16x64xf32> to vector<16x64xbf16>
    %c1_134 = arith.constant 1 : index
    %c0_135 = arith.constant 0 : index
    %c0_136 = arith.constant 0 : index
    %403 = vector.load %arg12[%c1_134, %c0_135, %c0_136] : memref<2x64x32xbf16, #tpu.memory_space<vmem>>, vector<1x64x32xbf16>
    %404 = vector.shape_cast %403 : vector<1x64x32xbf16> to vector<64x32xbf16>
    %cst_137 = arith.constant dense<0.000000e+00> : vector<16x32xf32>
    %405 = tpu.matmul %402, %404, %cst_137 {dimension_numbers = #tpu.dot_dimension_numbers<[1], [0], [0], [1], [0, 0, 1, 1], [], []>} : vector<16x64xbf16>, vector<64x32xbf16>, vector<16x32xf32> -> vector<16x32xf32>
    %406 = vector.extract_strided_slice %221 {offsets = [2, 0], sizes = [1, 32], strides = [1, 1]} : vector<6x32xf32> to vector<1x32xf32>
    %407 = vector.broadcast %406 : vector<1x32xf32> to vector<16x32xf32>
    %408 = arith.addf %405, %407 : vector<16x32xf32>
    %409 = vector.shape_cast %408 : vector<16x32xf32> to vector<2x8x32xf32>
    %410 = arith.addf %390, %409 : vector<2x8x32xf32>
    %411 = vector.extract_strided_slice %223 {offsets = [2, 0], sizes = [1, 32], strides = [1, 1]} : vector<3x32xf32> to vector<1x32xf32>
    %412 = vector.extract_strided_slice %221 {offsets = [5, 0], sizes = [1, 32], strides = [1, 1]} : vector<6x32xf32> to vector<1x32xf32>
    %cst_138 = arith.constant dense<0.000000e+00> : vector<2x8xf32>
    %413 = vector.multi_reduction <add>, %410, %cst_138 [2] : vector<2x8x32xf32> to vector<2x8xf32>
    %414 = vector.shape_cast %413 : vector<2x8xf32> to vector<2x8x1xf32>
    %cst_139 = arith.constant 3.200000e+01 : f32
    %415 = vector.broadcast %cst_139 : f32 to vector<2x8x1xf32>
    %416 = arith.divf %414, %415 : vector<2x8x1xf32>
    %417 = vector.broadcast %416 : vector<2x8x1xf32> to vector<2x8x32xf32>
    %418 = arith.subf %410, %417 : vector<2x8x32xf32>
    %419 = arith.mulf %418, %418 : vector<2x8x32xf32>
    %cst_140 = arith.constant dense<0.000000e+00> : vector<2x8xf32>
    %420 = vector.multi_reduction <add>, %419, %cst_140 [2] : vector<2x8x32xf32> to vector<2x8xf32>
    %421 = vector.shape_cast %420 : vector<2x8xf32> to vector<2x8x1xf32>
    %cst_141 = arith.constant 3.200000e+01 : f32
    %422 = vector.broadcast %cst_141 : f32 to vector<2x8x1xf32>
    %423 = arith.divf %421, %422 : vector<2x8x1xf32>
    %424 = vector.broadcast %416 : vector<2x8x1xf32> to vector<2x8x32xf32>
    %425 = arith.subf %410, %424 : vector<2x8x32xf32>
    %cst_142 = arith.constant 9.99999974E-6 : f32
    %426 = vector.broadcast %cst_142 : f32 to vector<2x8x1xf32>
    %427 = arith.addf %423, %426 : vector<2x8x1xf32>
    %428 = math.rsqrt %427 : vector<2x8x1xf32>
    %429 = vector.broadcast %428 : vector<2x8x1xf32> to vector<2x8x32xf32>
    %430 = arith.mulf %425, %429 : vector<2x8x32xf32>
    %431 = vector.shape_cast %411 : vector<1x32xf32> to vector<1x1x32xf32>
    %432 = vector.broadcast %431 : vector<1x1x32xf32> to vector<2x8x32xf32>
    %433 = arith.mulf %430, %432 : vector<2x8x32xf32>
    %434 = vector.shape_cast %412 : vector<1x32xf32> to vector<1x1x32xf32>
    %435 = vector.broadcast %434 : vector<1x1x32xf32> to vector<2x8x32xf32>
    %436 = arith.addf %433, %435 : vector<2x8x32xf32>
    %c0_143 = arith.constant 0 : index
    %c0_144 = arith.constant 0 : index
    %c0_145 = arith.constant 0 : index
    %437 = vector.load %arg15[%c0_143, %c0_144, %c0_145] : memref<2x8x32xf32, #tpu.memory_space<vmem>>, vector<2x8x32xf32>
    tpu.vector_store %arg15[%c0_143, %c0_144, %c0_145], %436 {strides = array<i32>} : memref<2x8x32xf32, #tpu.memory_space<vmem>>, vector<2x8x32xf32>,
    return
  }
}

</mosaic_0001>

<bundles_post_ra>
// kernel: tpu_custom_call.1
= control target key start
LH: loop header
LB: loop body
LE: loop exit
PB: predicated region body
PF: predicated region fallthrough
CT: control target
= control target key end

     0   :  { %s5021_s0 = inlined_call_operand.hbm [shape: f32[2,8,32], index: 0, kind: input, shape index: {}]   ;;  %s5022_s1 = inlined_call_operand.hbm [shape: bf16[2,8,32], index: 1, kind: input, shape index: {}]   ;;  %s5023_s2 = inlined_call_operand.vmem [shape: bf16[2,32,96], index: 2, kind: input, shape index: {}]   ;;  %s5024_s3 = inlined_call_operand.hbm [shape: f32[2,1,96], index: 3, kind: input, shape index: {}]   ;;  %s5025_s4 = inlined_call_operand.vmem [shape: bf16[2,32,32], index: 4, kind: input, shape index: {}]   ;;  %s5026_s5 = inlined_call_operand.vmem [shape: bf16[2,32,32], index: 5, kind: input, shape index: {}]   ;;  %s5027_s6 = inlined_call_operand.hbm [shape: f32[2,1,32], index: 6, kind: input, shape index: {}]   ;;  %s5028_s7 = inlined_call_operand.vmem [shape: bf16[2,32,64], index: 7, kind: input, shape index: {}]   ;;  %s5029_s8 = inlined_call_operand.hbm [shape: f32[2,1,64], index: 8, kind: input, shape index: {}]   ;;  %s5030_s9 = inlined_call_operand.hbm [shape: bf16[2,32,32], index: 9, kind: input, shape index: {}]   ;;  %s5031_s10 = inlined_call_operand.hbm [shape: bf16[2,32,64], index: 10, kind: input, shape index: {}]   ;;  %s5032_s11 = inlined_call_operand.hbm [shape: f32[2,1,64], index: 11, kind: input, shape index: {}]   ;;  %s5033_s12 = inlined_call_operand.vmem [shape: bf16[2,64,32], index: 12, kind: input, shape index: {}]   ;;  %s5034_s13 = inlined_call_operand.vmem [shape: f32[2,6,32], index: 13, kind: input, shape index: {}]   ;;  %s5035_s14 = inlined_call_operand.vmem [shape: f32[2,3,32], index: 14, kind: input, shape index: {}]   ;;  %s5036_s15 = inlined_call_operand.hbm [shape: f32[2,8,32], index: 15, kind: output, shape index: {}]  }
   0x1   :  { %5040 = sst [smem:[#allocation23_spill]] %s5036_s15 }
   0x2   :  { %20 = vsyncpa [#allocation3], 0 }
   0x3   :  { %21 = vsyncpa [#allocation6], 0 }
   0x4   :  { %22 = vsyncpa [#allocation9], 0 }
   0x5   :  { %23 = vsyncpa [#allocation12], 0 }
   0x6   :  { %24 = vsyncpa [#allocation15], 0 }
   0x7   :  { %25 = vsyncpa [#allocation4], 0  ;;  %s4197_s18 = smov [#allocation5]   ;;  %s3987_s22 = scalar_lea.hbm %s5022_s1, 128 }
   0x8   :  { %s43_s19 = sshll.u32 %s4197_s18, 4  ;;  %p3988_p0 = scmp.ne.s32.totalorder %s5022_s1, %s3987_s22  ;;  %s44_s19 = int_to_ptr.vmem [resolvable:$true] %s43_s19 }
   0x9   :  { %p3991_p1 = scmp.lt.u32.totalorder %s3987_s22, %s5022_s1 }
   0xb   :  { %p3993_p2 = pnand %p3991_p1, %p3988_p0 }
   0xd   :  { %3996 = shalt.err (!%p3993_p2)
}
   0xe   :  { %s3997_s27 = scalar_lea.vmem %s44_s19, 128  ;;  %p4002_p4 = scmp.lt.s32.totalorder %s44_s19, %s44_s19 }
   0xf   :  { %p3998_p3 = scmp.ne.s32.totalorder %s44_s19, %s3997_s27  ;;  %p4003_p5 = scmp.lt.s32.totalorder %s3997_s27, %s3997_s27 }
  0x11   :  { %p4004_p6 = por %p4003_p5, %p4002_p4 }
  0x13   :  { %p4005_p7 = pnand %p4004_p6, %p3998_p3 }
  0x15   :  { %4008 = shalt.err (!%p4005_p7)
}
  0x16   :  { %s5038_s28 = smov 64   ;;  %s4199_s29 = smov 4  }
  0x17   :  { %49 = dma.hbm_to_vmem [thread:$0]  %s5022_s1, 128, %s44_s19, [#allocation6], %s5038_s28, %s5038_s28, %s4199_s29  }
  0x18   :  { %s4200_s17 = smov [#allocation8]   ;;  %s4201_s20 = smov [#allocation11]  }
  0x19   :  { %s73_s18 = sshll.u32 %s4200_s17, 4  ;;  %s99_s21 = sshll.u32 %s4201_s20, 4  ;;  %s74_s18 = int_to_ptr.vmem [resolvable:$true] %s73_s18  ;;  %s100_s21 = int_to_ptr.vmem [resolvable:$true] %s99_s21 }
  0x1a   :  { %s4009_s24 = scalar_lea.hbm %s5027_s6, 32 }
  0x1b   :  { %p4010_p8 = scmp.ne.s32.totalorder %s5027_s6, %s4009_s24  ;;  %p4013_p9 = scmp.lt.u32.totalorder %s4009_s24, %s5027_s6 }
  0x1d   :  { %p4015_p10 = pnand %p4013_p9, %p4010_p8 }
  0x1f   :  { %4018 = shalt.err (!%p4015_p10)
}
  0x20   :  { %s4019_s1 = scalar_lea.vmem %s74_s18, 32  ;;  %p4024_p12 = scmp.lt.s32.totalorder %s74_s18, %s74_s18 }
  0x21   :  { %p4020_p11 = scmp.ne.s32.totalorder %s74_s18, %s4019_s1  ;;  %p4025_p13 = scmp.lt.s32.totalorder %s4019_s1, %s4019_s1 }
  0x23   :  { %p4026_p0 = por %p4025_p13, %p4024_p12 }
  0x25   :  { %p4027_p1 = pnand %p4026_p0, %p4020_p11 }
  0x27   :  { %4030 = shalt.err (!%p4027_p1)
}
  0x28   :  { %s4202_s19 = smov 16   ;;  %s4203_s30 = smov 1  }
  0x29   :  { %79 = dma.hbm_to_vmem [thread:$0]  %s5027_s6, 32, %s74_s18, [#allocation9], %s4202_s19, %s4202_s19, %s4203_s30  }
  0x2a   :  { %s4031_s22 = scalar_lea.hbm %s5030_s9, 512 }
  0x2b   :  { %p4032_p2 = scmp.ne.s32.totalorder %s5030_s9, %s4031_s22  ;;  %p4035_p3 = scmp.lt.u32.totalorder %s4031_s22, %s5030_s9 }
  0x2d   :  { %p4037_p4 = pnand %p4035_p3, %p4032_p2 }
  0x2f   :  { %4040 = shalt.err (!%p4037_p4)
}
  0x30   :  { %s4041_s27 = scalar_lea.vmem %s100_s21, 512  ;;  %p4046_p6 = scmp.lt.s32.totalorder %s100_s21, %s100_s21 }
  0x31   :  { %p4042_p5 = scmp.ne.s32.totalorder %s100_s21, %s4041_s27  ;;  %p4047_p7 = scmp.lt.s32.totalorder %s4041_s27, %s4041_s27 }
  0x33   :  { %p4048_p8 = por %p4047_p7, %p4046_p6 }
  0x35   :  { %p4049_p9 = pnand %p4048_p8, %p4042_p5 }
  0x37   :  { %4052 = shalt.err (!%p4049_p9)
}
  0x38   :  { %105 = dma.hbm_to_vmem [thread:$0]  %s5030_s9, 512, %s100_s21, [#allocation12], %s5038_s28, %s5038_s28, %s4199_s29  }
  0x39   :  { %s4204_s1 = smov [#allocation2]   ;;  %s4053_s20 = scalar_lea.hbm %s5021_s0, 256 }
  0x3a   :  { %s31_s16 = sshll.u32 %s4204_s1, 4  ;;  %p4054_p10 = scmp.ne.s32.totalorder %s5021_s0, %s4053_s20  ;;  %s32_s16 = int_to_ptr.vmem [resolvable:$true] %s31_s16 }
  0x3b   :  { %p4057_p11 = scmp.lt.u32.totalorder %s4053_s20, %s5021_s0 }
  0x3d   :  { %p4059_p12 = pnand %p4057_p11, %p4054_p10 }
  0x3f   :  { %4062 = shalt.err (!%p4059_p12)
}
  0x40   :  { %s4063_s26 = scalar_lea.vmem %s32_s16, 256  ;;  %p4068_p0 = scmp.lt.s32.totalorder %s32_s16, %s32_s16 }
  0x41   :  { %p4064_p13 = scmp.ne.s32.totalorder %s32_s16, %s4063_s26  ;;  %p4069_p1 = scmp.lt.s32.totalorder %s4063_s26, %s4063_s26 }
  0x43   :  { %p4070_p2 = por %p4069_p1, %p4068_p0 }
  0x45   :  { %p4071_p3 = pnand %p4070_p2, %p4064_p13 }
  0x47   :  { %4074 = shalt.err (!%p4071_p3)
}
  0x48   :  { %s4205_s9 = smov 128   ;;  %s4206_s21 = smov 8  }
  0x49   :  { %37 = dma.hbm_to_vmem [thread:$0]  %s5021_s0, 256, %s32_s16, [#allocation3], %s4205_s9, %s4205_s9, %s4206_s21  }
  0x4a   :  { %s4207_s18 = smov [#allocation7]   ;;  %s4208_s17 = smov [#allocation10]  }
  0x4b   :  { %s57_s1 = sshll.u32 %s4207_s18, 4  ;;  %s87_s15 = sshll.u32 %s4208_s17, 4  ;;  %s58_s1 = int_to_ptr.vmem [resolvable:$true] %s57_s1  ;;  %s4356_s15 = int_to_ptr.vmem [resolvable:$true] %s87_s15 }
  0x4c   :  { %s4075_s23 = scalar_lea.hbm %s5024_s3, 32 }
  0x4d   :  { %p4076_p4 = scmp.ne.s32.totalorder %s5024_s3, %s4075_s23  ;;  %p4079_p5 = scmp.lt.u32.totalorder %s4075_s23, %s5024_s3 }
  0x4f   :  { %p4081_p6 = pnand %p4079_p5, %p4076_p4 }
  0x51   :  { %4084 = shalt.err (!%p4081_p6)
}
  0x52   :  { %s4085_s0 = scalar_lea.vmem %s58_s1, 32  ;;  %p4090_p8 = scmp.lt.s32.totalorder %s58_s1, %s58_s1 }
  0x53   :  { %p4086_p7 = scmp.ne.s32.totalorder %s58_s1, %s4085_s0  ;;  %p4091_p9 = scmp.lt.s32.totalorder %s4085_s0, %s4085_s0 }
  0x55   :  { %p4092_p10 = por %p4091_p9, %p4090_p8 }
  0x57   :  { %p4093_p11 = pnand %p4092_p10, %p4086_p7 }
  0x59   :  { %4096 = shalt.err (!%p4093_p11)
}
  0x5a   :  { %63 = dma.hbm_to_vmem [thread:$0]  %s5024_s3, 32, %s58_s1, [#allocation6], %s4202_s19, %s4202_s19, %s4203_s30  }
  0x5b   :  { %s4097_s28 = scalar_lea.hbm %s5029_s8, 32 }
  0x5c   :  { %p4098_p12 = scmp.ne.s32.totalorder %s5029_s8, %s4097_s28  ;;  %p4101_p13 = scmp.lt.u32.totalorder %s4097_s28, %s5029_s8 }
  0x5e   :  { %p4103_p0 = pnand %p4101_p13, %p4098_p12 }
  0x60   :  { %4106 = shalt.err (!%p4103_p0)
}
  0x61   :  { %s4107_s24 = scalar_lea.vmem %s4356_s15, 32  ;;  %p4112_p2 = scmp.lt.s32.totalorder %s4356_s15, %s4356_s15 }
  0x62   :  { %p4108_p1 = scmp.ne.s32.totalorder %s4356_s15, %s4107_s24  ;;  %p4113_p3 = scmp.lt.s32.totalorder %s4107_s24, %s4107_s24 }
  0x64   :  { %p4114_p4 = por %p4113_p3, %p4112_p2 }
  0x66   :  { %p4115_p5 = pnand %p4114_p4, %p4108_p1 }
  0x68   :  { %4118 = shalt.err (!%p4115_p5)
}
  0x69   :  { %93 = dma.hbm_to_vmem [thread:$0]  %s5029_s8, 32, %s4356_s15, [#allocation9], %s4202_s19, %s4202_s19, %s4203_s30  }
  0x6a   :  { %s4209_s25 = smov [#allocation13]   ;;  %s4210_s0 = smov [#allocation14]  }
  0x6b   :  { %s111_s26 = sshll.u32 %s4209_s25, 4  ;;  %s123_s16 = sshll.u32 %s4210_s0, 4  ;;  %s112_s26 = int_to_ptr.vmem [resolvable:$true] %s111_s26  ;;  %s4393_s16 = int_to_ptr.vmem [resolvable:$true] %s123_s16 }
  0x6c   :  { %s4119_s18 = scalar_lea.hbm %s5031_s10, 512 }
  0x6d   :  { %p4120_p6 = scmp.ne.s32.totalorder %s5031_s10, %s4119_s18  ;;  %p4123_p7 = scmp.lt.u32.totalorder %s4119_s18, %s5031_s10 }
  0x6f   :  { %p4125_p8 = pnand %p4123_p7, %p4120_p6 }
  0x71   :  { %4128 = shalt.err (!%p4125_p8)
}
  0x72   :  { %s4129_s8 = scalar_lea.vmem %s112_s26, 512  ;;  %p4134_p10 = scmp.lt.s32.totalorder %s112_s26, %s112_s26 }
  0x73   :  { %p4130_p9 = scmp.ne.s32.totalorder %s112_s26, %s4129_s8  ;;  %p4135_p11 = scmp.lt.s32.totalorder %s4129_s8, %s4129_s8 }
  0x75   :  { %p4136_p12 = por %p4135_p11, %p4134_p10 }
  0x77   :  { %p4137_p13 = pnand %p4136_p12, %p4130_p9 }
  0x79   :  { %4140 = shalt.err (!%p4137_p13)
}
  0x7a   :  { %s5041_s15 = smov 64   ;;  %s4141_s25 = scalar_lea.hbm %s5032_s11, 32 }
  0x7b   :  { %117 = dma.hbm_to_vmem [thread:$0]  %s5031_s10, 512, %s112_s26, [#allocation12], %s5041_s15, %s5041_s15, %s4199_s29  }
  0x7c   :  { %p4142_p0 = scmp.ne.s32.totalorder %s5032_s11, %s4141_s25  ;;  %p4145_p1 = scmp.lt.u32.totalorder %s4141_s25, %s5032_s11 }
  0x7e   :  { %p4147_p2 = pnand %p4145_p1, %p4142_p0 }
  0x80   :  { %4150 = shalt.err (!%p4147_p2)
}
  0x81   :  { %s4151_s28 = scalar_lea.vmem %s4393_s16, 32  ;;  %p4156_p4 = scmp.lt.s32.totalorder %s4393_s16, %s4393_s16 }
  0x82   :  { %p4152_p3 = scmp.ne.s32.totalorder %s4393_s16, %s4151_s28  ;;  %p4157_p5 = scmp.lt.s32.totalorder %s4151_s28, %s4151_s28 }
  0x84   :  { %p4158_p6 = por %p4157_p5, %p4156_p4 }
  0x86   :  { %p4159_p7 = pnand %p4158_p6, %p4152_p3 }
  0x88   :  { %4162 = shalt.err (!%p4159_p7)
}
  0x89   :  { %129 = dma.hbm_to_vmem [thread:$0]  %s5032_s11, 32, %s4393_s16, [#allocation15], %s4202_s19, %s4202_s19, %s4203_s30  }
  0x8a   :  { %4185 = dma.done.wait [#allocation3], 256  }
  0x8b   :  { %4186 = vsyncadd [#allocation3], 4294967040 }
  0x8c   :  { %4187 = dma.done.wait [#allocation6], 160  }
  0x8d   :  { %4188 = vsyncadd [#allocation6], 4294967136 }
  0x8e   :  { %4189 = dma.done.wait [#allocation9], 64  }
  0x8f   :  { %4190 = vsyncadd [#allocation9], 4294967232 }
  0x90   :  { %4191 = dma.done.wait [#allocation12], 1024  }
  0x91   :  { %4192 = vsyncadd [#allocation12], 4294966272 }
  0x92   :  { %4193 = dma.done.wait [#allocation15], 32  }
  0x93   :  { %4194 = vsyncadd [#allocation15], 4294967264  ;;  %v4211_v0 = vmov 0.0   ;;  %vm4212_vm0 = vmmov 0   ;;  %v3865_v1 = vld [vmem:[%s5023_s2] sm:$0xff]   ;;  %v3866_v2 = vld [vmem:[%s5023_s2 + $0x8] sm:$0xff]  }
  0x94   :  { %3484 = vmatprep.subr.bf16.mxu1 %v4211_v0  ;;  %3488 = vmatprep.mubr.msk.bf16.mxu1 %vm4212_vm0, %v4211_v0  ;;  %v4442_v3 = vld [vmem:[#allocation2] sm:$0xff]  ;;  %v4444_v4 = vld [vmem:[#allocation2 + $0x8] sm:$0xff]  ;;  %vm191_vm1 = vcmask 261120   ;;  %v3261_v6 = vld [vmem:[#allocation7] ss:$0 sm:$0xff]  ;;  %s4213_s17 = smov 112  }
  0x95   :  { %3498 = vmatprep.subr.bf16.mxu0 %v4211_v0  ;;  %3500 = vmatprep.mubr.msk.bf16.mxu0 %vm4212_vm0, %v4211_v0  ;;  %v167_v5 = vpack.c.bf16 %v4444_v4, %v4442_v3  ;;  %s4214_s20 = smov 96   ;;  %vm251_vm2 = vcmask 130048   ;;  %vm445_vm3 = vcmask 64512   ;;  %vm499_vm4 = vcmask 1043456  }
  0x96   :  { %3485 = vmatpush3.bf16.msra.mxu1 %v3865_v1  ;;  %vm1617_vm5 = vcmask 523264  }
  0x97   :  { %3486 = vmatprep.subr.bf16.mxu1 %v4211_v0 }
  0x9a   :  { %3487 = vmatpush3.bf16.msra.mxu1 %v3866_v2 }
  0x9b   :  { %3492 = vmatprep.subr.bf16.mxu1 %v4211_v0 }
  0x9d   :  { %3489 = vmatmul.mubr.msk.bf16.vlgmr.msra.gmra.mrb[0].mxu1 %vm191_vm1, %v167_v5 }
  0x9e   :  { %3494 = vmatprep.mubr.msk.bf16.mxu1 %vm4212_vm0, %v4211_v0 }
 0x170   :  { %v229_v7 = vpop.f32.mrb[0].mxu1 }
 0x171   :  { %v3490_v8 = vpop.f32.mrb[1].mxu1  ;;  %v230_v10 = vadd.f32 %v3261_v6, %v229_v7 }
 0x172   :  { %v232_v9 = vpop.f32.mrb[2].mxu1 }
 0x173   :  { %v233_v11 = vadd.f32 %v3261_v6, %v232_v9  ;;  %v3491_v12 = vpop.f32.mrb[3].mxu1  ;;  %v244_v15 = vpack.c.bf16 %v230_v10, %v230_v10 }
 0x175   :  { %v4453_v13 = vpack.c.bf16 %v233_v11, %v233_v11  ;;  %v3815_v14 = vpack.i.bf16 %v233_v11, %v230_v10 }
 0x177   :  { %3816 = vrot.lane.b32.xlu0 %v3815_v14, %s4213_s17  ;;  %299 = vrot.lane.b32.xlu1 %v4453_v13, %s4214_s20 }
 0x17b   :  { %249 = vrot.lane.b32.xlu0 %v244_v15, %s4214_s20 }
 0x1e9   :  { %v3817_v16 = vpop.permute.xlu0 %3816  ;;  %v300_v17 = vpop.permute.xlu1 %299 }
 0x1ea   :  { %v3819_v18 = vunpack.i.h.bf16 %v3817_v16  ;;  %v3818_v19 = vunpack.i.l.bf16 %v3817_v16  ;;  %v305_v20 = vsel %vm251_vm2, %v300_v17, 0 }
 0x1eb   :  { %3499 = vmatpush3.bf16.xpose.msra.mxu0 %v305_v20 }
 0x1ec   :  { %v4460_v21 = vpack.c.bf16 %v3819_v18, %v3819_v18  ;;  %v4462_v22 = vpack.c.bf16 %v3818_v19, %v3818_v19  ;;  %3510 = vmatprep.subr.bf16.mxu0 %v4211_v0 }
 0x1ed   :  { %v250_v23 = vpop.permute.xlu0 %249 }
 0x1ee   :  { %v256_v24 = vsel %vm251_vm2, %v250_v23, 0  ;;  %397 = vrot.lane.b32.xlu0 %v4460_v21, %s4214_s20  ;;  %348 = vrot.lane.b32.xlu1 %v4462_v22, %s4214_s20 }
 0x1ef   :  { %3493 = vmatpush3.bf16.xpose.msra.mxu1 %v256_v24 }
 0x1f0   :  { %3504 = vmatprep.subr.bf16.mxu1 %v4211_v0 }
 0x1f2   :  { %3501 = vmatmul.mubr.msk.bf16.vlgmr.msra.gmra.mrb[0].mxu0 %vm251_vm2, %v4453_v13 }
 0x1f3   :  { %3512 = vmatprep.mubr.msk.bf16.mxu0 %vm4212_vm0, %v4211_v0 }
 0x1f6   :  { %3495 = vmatmul.mubr.msk.bf16.vlgmr.msra.gmra.mrb[4].mxu1 %vm251_vm2, %v244_v15 }
 0x1f7   :  { %3506 = vmatprep.mubr.msk.bf16.mxu1 %vm4212_vm0, %v4211_v0 }
 0x260   :  { %v398_v25 = vpop.permute.xlu0 %397  ;;  %v349_v26 = vpop.permute.xlu1 %348 }
 0x261   :  { %v403_v27 = vsel %vm251_vm2, %v398_v25, 0  ;;  %v354_v28 = vsel %vm251_vm2, %v349_v26, 0 }
 0x262   :  { %3505 = vmatpush3.bf16.xpose.msra.mxu1 %v354_v28  ;;  %3511 = vmatpush3.bf16.xpose.msra.mxu0 %v403_v27 }
 0x263   :  { %3516 = vmatprep.subr.bf16.mxu1 %v4211_v0  ;;  %3522 = vmatprep.subr.bf16.mxu0 %v4211_v0 }
 0x269   :  { %3507 = vmatmul.mubr.msk.bf16.vlgmr.msra.gmra.mrb[8].mxu1 %vm251_vm2, %v4462_v22  ;;  %3513 = vmatmul.mubr.msk.bf16.vlgmr.msra.gmra.mrb[4].mxu0 %vm251_vm2, %v4460_v21 }
 0x26a   :  { %3518 = vmatprep.mubr.msk.bf16.mxu1 %vm4212_vm0, %v4211_v0  ;;  %3524 = vmatprep.mubr.msk.bf16.mxu0 %vm4212_vm0, %v4211_v0 }
 0x2c5   :  { %v341_v29 = vpop.f32.mrb[0].mxu0 }
 0x2c6   :  { %v3502_v30 = vpop.f32.mrb[1].mxu0  ;;  %v449_v31 = vsel %vm445_vm3, %v341_v29, -inf }
 0x2c7   :  { %450 = vmax.xlane.f32.xlu0 %v449_v31  ;;  %v344_v32 = vpop.f32.mrb[2].mxu0 }
 0x2c8   :  { %v3503_v33 = vpop.f32.mrb[3].mxu0  ;;  %v3867_v32 = vld [vmem:[%s5025_s4] sm:$0xff]  }
 0x2c9   :  { %v292_v34 = vpop.f32.mrb[4].mxu1 }
 0x2ca   :  { %v3496_v35 = vpop.f32.mrb[5].mxu1  ;;  %v446_v36 = vsel %vm445_vm3, %v292_v34, -inf }
 0x2cb   :  { %447 = vmax.xlane.f32.xlu1 %v446_v36  ;;  %v295_v37 = vpop.f32.mrb[6].mxu1 }
 0x2cc   :  { %v3497_v38 = vpop.f32.mrb[7].mxu1 }
 0x33c   :  { %v390_v39 = vpop.f32.mrb[8].mxu1  ;;  %v439_v40 = vpop.f32.mrb[4].mxu0 }
 0x33d   :  { %v3508_v41 = vpop.f32.mrb[9].mxu1  ;;  %v3514_v42 = vpop.f32.mrb[5].mxu0  ;;  %v455_v43 = vsel %vm445_vm3, %v439_v40, -inf  ;;  %v452_v44 = vsel %vm445_vm3, %v390_v39, -inf }
 0x33e   :  { %v442_v45 = vpop.f32.mrb[6].mxu0  ;;  %456 = vmax.xlane.f32.xlu1 %v455_v43  ;;  %453 = vmax.xlane.f32.xlu0 %v452_v44  ;;  %v393_v46 = vpop.f32.mrb[10].mxu1  ;;  %v3868_v41 = vld [vmem:[%s5025_s4 + $0x8] sm:$0xff]  }
 0x33f   :  { %v3509_v47 = vpop.f32.mrb[11].mxu1  ;;  %v3515_v48 = vpop.f32.mrb[7].mxu0 }
 0x34f   :  { %543 = vrot.lane.b32.xlu1 %v4453_v13, %s5041_s15 }
 0x354   :  { %494 = vrot.lane.b32.xlu0 %v244_v15, %s5041_s15  ;;  %v451_v49 = vpop.xlane.xlu0 %450 }
 0x355   :  { %v459_v51 = vsub.f32 %v341_v29, %v451_v49 }
 0x357   :  { %v464_v53 = vmul.f32 1.442695, %v459_v51 }
 0x358   :  { %v448_v50 = vpop.xlane.xlu1 %447 }
 0x359   :  { %v458_v52 = vsub.f32 %v292_v34, %v448_v50  ;;  %3898 = vpow2.f32 %v464_v53 }
 0x35b   :  { %v462_v54 = vmul.f32 1.442695, %v458_v52 }
 0x35d   :  { %3900 = vpow2.f32 %v462_v54 }
 0x363   :  { %v3899_v55 = vpop.eup %3898 }
 0x364   :  { %v473_v57 = vsel %vm445_vm3, %v3899_v55, 0.0 }
 0x367   :  { %v3901_v56 = vpop.eup %3900 }
 0x368   :  { %v470_v58 = vsel %vm445_vm3, %v3901_v56, 0.0 }
 0x373   :  { %474 = vadd.xlane.f32.xlu1 %v473_v57  ;;  %471 = vadd.xlane.f32.xlu0 %v470_v58  ;;  %v702_v57 = vlaneseq }
 0x375   :  { %v4539_v58 = vshrl.u32 %v702_v57, 7 }
 0x3cb   :  { %v457_v59 = vpop.xlane.xlu1 %456  ;;  %v454_v60 = vpop.xlane.xlu0 %453 }
 0x3cc   :  { %v461_v61 = vsub.f32 %v439_v40, %v457_v59  ;;  %v460_v62 = vsub.f32 %v390_v39, %v454_v60  ;;  %v4542_v59 = vsub.s32 0, %v4539_v58  ;;  %v4547_v60 = vld [vmem:[%s5034_s13] sm:$0x3f] }
 0x3ce   :  { %v468_v63 = vmul.f32 1.442695, %v461_v61  ;;  %v466_v1 = vmul.f32 1.442695, %v460_v62  ;;  %v705_v61 = vrot.slane %v4547_v60, %v4542_v59 }
 0x3cf   :  { %v544_v2 = vpop.permute.xlu1 %543  ;;  %v495_v5 = vpop.permute.xlu0 %494 }
 0x3d0   :  { %3902 = vpow2.f32 %v468_v63  ;;  %v549_v6 = vsel %vm499_vm4, %v544_v2, 0  ;;  %v501_v7 = vsel %vm499_vm4, %v495_v5, 0 }
 0x3d1   :  { %3904 = vpow2.f32 %v466_v1  ;;  %3517 = vmatpush3.bf16.msra.mxu1 %v501_v7  ;;  %3523 = vmatpush3.bf16.msra.mxu0 %v549_v6 }
 0x3d2   :  { %3528 = vmatprep.subr.bf16.mxu1 %v4211_v0  ;;  %3534 = vmatprep.subr.bf16.mxu0 %v4211_v0 }
 0x3da   :  { %v3903_v8 = vpop.eup %3902 }
 0x3db   :  { %v3905_v9 = vpop.eup %3904  ;;  %v479_v10 = vsel %vm445_vm3, %v3903_v8, 0.0 }
 0x3dc   :  { %480 = vadd.xlane.f32.xlu1 %v479_v10  ;;  %v476_v11 = vsel %vm445_vm3, %v3905_v9, 0.0 }
 0x3dd   :  { %477 = vadd.xlane.f32.xlu0 %v476_v11 }
 0x3ed   :  { %591 = vrot.lane.b32.xlu1 %v4462_v22, %s5041_s15 }
 0x3f3   :  { %639 = vrot.lane.b32.xlu0 %v4460_v21, %s5041_s15 }
 0x400   :  { %v475_v12 = vpop.xlane.xlu1 %474  ;;  %v472_v13 = vpop.xlane.xlu0 %471 }
 0x401   :  { %3906 = vrcp.f32 %v475_v12 }
 0x402   :  { %3908 = vrcp.f32 %v472_v13 }
 0x40b   :  { %v3907_v14 = vpop.eup %3906 }
 0x40c   :  { %v3909_v15 = vpop.eup %3908  ;;  %v487_v16 = vmul.f32 %v3907_v14, %v3899_v55 }
 0x40d   :  { %v486_v17 = vmul.f32 %v3909_v15, %v3901_v56 }
 0x40e   :  { %v491_v18 = vpack.c.bf16 %v487_v16, %v487_v16 }
 0x40f   :  { %v490_v19 = vpack.c.bf16 %v486_v17, %v486_v17 }
 0x410   :  { %3525 = vmatmul.mubr.msk.bf16.vlgmr.msra.gmra.mrb[8].mxu0 %vm445_vm3, %v491_v18 }
 0x411   :  { %3519 = vmatmul.mubr.msk.bf16.vlgmr.msra.gmra.mrb[12].mxu1 %vm445_vm3, %v490_v19  ;;  %3536 = vmatprep.mubr.msk.bf16.mxu0 %vm4212_vm0, %v4211_v0 }
 0x412   :  { %3530 = vmatprep.mubr.msk.bf16.mxu1 %vm4212_vm0, %v4211_v0 }
 0x469   :  { %v481_v20 = vpop.xlane.xlu1 %480 }
 0x46a   :  { %3910 = vrcp.f32 %v481_v20  ;;  %v478_v21 = vpop.xlane.xlu0 %477  ;;  %v3870_v20 = vld [vmem:[%s5028_s7 + $0x8] sm:$0xff]  }
 0x46b   :  { %3912 = vrcp.f32 %v478_v21  ;;  %v3871_v21 = vld [vmem:[#allocation5] sm:$0xff]  }
 0x46d   :  { %v592_v22 = vpop.permute.xlu1 %591 }
 0x46e   :  { %v597_v23 = vsel %vm499_vm4, %v592_v22, 0  ;;  %v640_v24 = vpop.permute.xlu0 %639  ;;  %v3872_v22 = vld [vmem:[%s5026_s5] sm:$0xff]  }
 0x46f   :  { %v645_v25 = vsel %vm499_vm4, %v640_v24, 0  ;;  %3529 = vmatpush3.bf16.msra.mxu1 %v597_v23  ;;  %v3873_v23 = vld [vmem:[%s5026_s5 + $0x8] sm:$0xff]  }
 0x470   :  { %3535 = vmatpush3.bf16.msra.mxu0 %v645_v25  ;;  %3540 = vmatprep.subr.bf16.mxu1 %v4211_v0 }
 0x471   :  { %3548 = vmatprep.subr.bf16.mxu0 %v4211_v0 }
 0x474   :  { %v3911_v26 = vpop.eup %3910 }
 0x475   :  { %v3913_v27 = vpop.eup %3912  ;;  %v489_v28 = vmul.f32 %v3911_v26, %v3903_v8 }
 0x476   :  { %v488_v29 = vmul.f32 %v3913_v27, %v3905_v9 }
 0x477   :  { %v493_v30 = vpack.c.bf16 %v489_v28, %v489_v28 }
 0x478   :  { %v492_v31 = vpack.c.bf16 %v488_v29, %v488_v29 }
 0x479   :  { %3537 = vmatmul.mubr.msk.bf16.vlgmr.msra.gmra.mrb[12].mxu0 %vm445_vm3, %v493_v30  ;;  %v4579_v30 = vld [vmem:[%s5035_s14] sm:$0x7] }
 0x47a   :  { %3531 = vmatmul.mubr.msk.bf16.vlgmr.msra.gmra.mrb[16].mxu1 %vm445_vm3, %v492_v31  ;;  %3552 = vmatprep.mubr.msk.bf16.mxu0 %vm4212_vm0, %v4211_v0 }
 0x47b   :  { %3544 = vmatprep.mubr.msk.bf16.mxu1 %vm4212_vm0, %v4211_v0  ;;  %3541 = vmatpush3.bf16.msra.mxu1 %v3867_v32  ;;  %v794_v32 = vrot.slane %v4579_v30, %v4542_v59 }
 0x47c   :  { %3542 = vmatprep.subr.bf16.mxu1 %v4211_v0  ;;  %3549 = vmatpush3.bf16.msra.mxu0 %v3872_v22 }
 0x47d   :  { %3550 = vmatprep.subr.bf16.mxu0 %v4211_v0 }
 0x47f   :  { %3543 = vmatpush3.bf16.msra.mxu1 %v3868_v41 }
 0x480   :  { %3556 = vmatprep.subr.bf16.mxu1 %v4211_v0  ;;  %3551 = vmatpush3.bf16.msra.mxu0 %v3873_v23 }
 0x481   :  { %3564 = vmatprep.subr.bf16.mxu0 %v4211_v0 }
 0x4e3   :  { %v585_v33 = vpop.f32.mrb[8].mxu0 }
 0x4e4   :  { %v537_v34 = vpop.f32.mrb[12].mxu1  ;;  %v3526_v35 = vpop.f32.mrb[9].mxu0 }
 0x4e5   :  { %v3520_v36 = vpop.f32.mrb[13].mxu1  ;;  %v588_v37 = vpop.f32.mrb[10].mxu0 }
 0x4e6   :  { %v540_v38 = vpop.f32.mrb[14].mxu1  ;;  %v3527_v39 = vpop.f32.mrb[11].mxu0 }
 0x4e7   :  { %v3521_v40 = vpop.f32.mrb[15].mxu1 }
 0x54c   :  { %v681_v42 = vpop.f32.mrb[12].mxu0 }
 0x54d   :  { %v633_v43 = vpop.f32.mrb[16].mxu1  ;;  %v3538_v44 = vpop.f32.mrb[13].mxu0 }
 0x54e   :  { %v3820_v45 = vpack.i.bf16 %v681_v42, %v633_v43  ;;  %v3532_v46 = vpop.f32.mrb[17].mxu1  ;;  %v684_v47 = vpop.f32.mrb[14].mxu0  ;;  %v3280_v43 = vld [vmem:[#allocation10] ss:$0 sm:$0xff] }
 0x54f   :  { %v636_v48 = vpop.f32.mrb[18].mxu1  ;;  %v3539_v49 = vpop.f32.mrb[15].mxu0 }
 0x550   :  { %3821 = vrot.lane.b32.xlu1 %v3820_v45, %s4202_s19  ;;  %v3533_v50 = vpop.f32.mrb[19].mxu1 }
 0x5c2   :  { %v3822_v51 = vpop.permute.xlu1 %3821 }
 0x5c3   :  { %v3824_v52 = vunpack.i.h.bf16 %v3822_v51  ;;  %v3823_v53 = vunpack.i.l.bf16 %v3822_v51 }
 0x5c5   :  { %v696_v54 = vsel %vm251_vm2, %v585_v33, %v3824_v52  ;;  %v695_v55 = vsel %vm251_vm2, %v537_v34, %v3823_v53  ;;  %v799_v34 = vsub.s32 3, %v4539_v58 }
 0x5c6   :  { %v697_v56 = vpack.c.bf16 %v696_v54, %v695_v55 }
 0x5c7   :  { %v800_v38 = vrot.slane %v4547_v60, %v799_v34 }
 0x5c8   :  { %3545 = vmatmul.mubr.msk.bf16.vlgmr.msra.gmra.mrb[20].mxu1 %vm191_vm1, %v697_v56 }
 0x5c9   :  { %3560 = vmatprep.mubr.msk.bf16.mxu1 %vm4212_vm0, %v4211_v0 }
 0x69b   :  { %v755_v62 = vpop.f32.mrb[20].mxu1 }
 0x69c   :  { %v756_v63 = vadd.f32 %v755_v62, %v705_v61  ;;  %v3546_v1 = vpop.f32.mrb[21].mxu1 }
 0x69d   :  { %v758_v2 = vpop.f32.mrb[22].mxu1 }
 0x69e   :  { %v759_v5 = vadd.f32 %v758_v2, %v705_v61  ;;  %v3547_v6 = vpop.f32.mrb[23].mxu1  ;;  %v762_v7 = vadd.f32 %v756_v63, %v4442_v3  ;;  %v3276_v61 = vld [vmem:[#allocation8] ss:$0 sm:$0xff] }
 0x6a0   :  { %v764_v8 = vsel %vm191_vm1, %v762_v7, 0.0  ;;  %v763_v9 = vadd.f32 %v759_v5, %v4444_v4  ;;  %v3869_v4 = vld [vmem:[%s5028_s7] sm:$0xff]  }
 0x6a1   :  { %765 = vadd.xlane.f32.xlu0 %v764_v8  ;;  %3557 = vmatpush3.bf16.msra.mxu1 %v3869_v4 }
 0x6a2   :  { %v767_v10 = vsel %vm191_vm1, %v763_v9, 0.0  ;;  %3558 = vmatprep.subr.bf16.mxu1 %v4211_v0 }
 0x6a3   :  { %768 = vadd.xlane.f32.xlu1 %v767_v10 }
 0x6a5   :  { %3559 = vmatpush3.bf16.msra.mxu1 %v3870_v20 }
 0x6a6   :  { %3570 = vmatprep.subr.bf16.mxu1 %v4211_v0 }
 0x6a8   :  { %3561 = vmatmul.mubr.msk.bf16.vlgmr.msra.gmra.mrb[24].mxu1 %vm191_vm1, %v3871_v21 }
 0x6a9   :  { %3572 = vmatprep.mubr.msk.bf16.mxu1 %vm4212_vm0, %v4211_v0 }
 0x72e   :  { %v766_v11 = vpop.xlane.xlu0 %765 }
 0x72f   :  { %v771_v12 = vmul.f32 0.03125, %v766_v11 }
 0x730   :  { %v769_v13 = vpop.xlane.xlu1 %768 }
 0x731   :  { %v773_v14 = vsub.f32 %v762_v7, %v771_v12  ;;  %v772_v15 = vmul.f32 0.03125, %v769_v13 }
 0x733   :  { %v774_v16 = vsub.f32 %v763_v9, %v772_v15  ;;  %v775_v17 = vmul.f32 %v773_v14, %v773_v14 }
 0x735   :  { %v777_v18 = vsel %vm191_vm1, %v775_v17, 0.0  ;;  %v776_v19 = vmul.f32 %v774_v16, %v774_v16 }
 0x736   :  { %778 = vadd.xlane.f32.xlu0 %v777_v18 }
 0x737   :  { %v780_v3 = vsel %vm191_vm1, %v776_v19, 0.0 }
 0x73a   :  { %781 = vadd.xlane.f32.xlu0 %v780_v3 }
 0x77b   :  { %v936_v44 = vpop.f32.mrb[24].mxu1 }
 0x77c   :  { %v937_v45 = vadd.f32 %v3280_v43, %v936_v44  ;;  %v3562_v46 = vpop.f32.mrb[25].mxu1 }
 0x77d   :  { %v939_v47 = vpop.f32.mrb[26].mxu1 }
 0x77e   :  { %v4596_v48 = vpack.c.bf16 %v937_v45, %v937_v45  ;;  %v940_v49 = vadd.f32 %v3280_v43, %v939_v47  ;;  %v3563_v50 = vpop.f32.mrb[27].mxu1 }
 0x780   :  { %v3825_v51 = vpack.i.bf16 %v940_v49, %v937_v45  ;;  %v4598_v52 = vpack.c.bf16 %v940_v49, %v940_v49  ;;  %v971_v53 = vsel %vm251_vm2, %v4596_v48, 0 }
 0x782   :  { %3826 = vrot.lane.b32.xlu1 %v3825_v51, %s4213_s17  ;;  %v1017_v54 = vsel %vm251_vm2, %v4598_v52, 0 }
 0x783   :  { %3571 = vmatpush3.bf16.xpose.msra.mxu1 %v1017_v54 }
 0x784   :  { %3582 = vmatprep.subr.bf16.mxu1 %v4211_v0 }
 0x7c3   :  { %v779_v24 = vpop.xlane.xlu0 %778 }
 0x7c4   :  { %v783_v25 = vmul.f32 0.03125, %v779_v24 }
 0x7c6   :  { %v785_v26 = vadd.f32 1e-05, %v783_v25 }
 0x7c7   :  { %v782_v27 = vpop.xlane.xlu0 %781 }
 0x7c8   :  { %3914 = vrsqrt.f32 %v785_v26  ;;  %v784_v28 = vmul.f32 0.03125, %v782_v27 }
 0x7ca   :  { %v786_v29 = vadd.f32 1e-05, %v784_v28 }
 0x7cc   :  { %3916 = vrsqrt.f32 %v786_v29 }
 0x7d2   :  { %v3915_v31 = vpop.eup %3914 }
 0x7d3   :  { %v789_v33 = vmul.f32 %v3915_v31, %v773_v14 }
 0x7d5   :  { %v795_v36 = vmul.f32 %v794_v32, %v789_v33 }
 0x7d6   :  { %v3917_v35 = vpop.eup %3916 }
 0x7d7   :  { %v790_v37 = vmul.f32 %v3917_v35, %v774_v16  ;;  %v4587_v40 = vadd.f32 %v800_v38, %v795_v36 }
 0x7d9   :  { %v796_v39 = vmul.f32 %v794_v32, %v790_v37 }
 0x7db   :  { %v4589_v41 = vadd.f32 %v800_v38, %v796_v39 }
 0x7dd   :  { %v803_v42 = vpack.c.bf16 %v4589_v41, %v4587_v40 }
 0x7df   :  { %3553 = vmatmul.mubr.msk.bf16.vlgmr.msra.gmra.mrb[16].mxu0 %vm191_vm1, %v803_v42 }
 0x7e0   :  { %3566 = vmatprep.mubr.msk.bf16.mxu0 %vm4212_vm0, %v4211_v0  ;;  %3565 = vmatpush3.bf16.xpose.msra.mxu0 %v971_v53 }
 0x7e1   :  { %3576 = vmatprep.subr.bf16.mxu0 %v4211_v0 }
 0x7f4   :  { %v3827_v55 = vpop.permute.xlu1 %3826 }
 0x7f5   :  { %v3828_v56 = vunpack.i.l.bf16 %v3827_v55  ;;  %v3829_v57 = vunpack.i.h.bf16 %v3827_v55 }
 0x7f7   :  { %v4607_v62 = vpack.c.bf16 %v3828_v56, %v3828_v56  ;;  %v4609_v5 = vpack.c.bf16 %v3829_v57, %v3829_v57 }
 0x7f9   :  { %v1063_v10 = vsel %vm251_vm2, %v4607_v62, 0  ;;  %v1109_v13 = vsel %vm251_vm2, %v4609_v5, 0 }
 0x8b2   :  { %v864_v63 = vpop.f32.mrb[16].mxu0 }
 0x8b3   :  { %v865_v1 = vadd.f32 %v3276_v61, %v864_v63  ;;  %v3554_v2 = vpop.f32.mrb[17].mxu0 }
 0x8b4   :  { %v867_v6 = vpop.f32.mrb[18].mxu0 }
 0x8b5   :  { %v959_v7 = vpack.c.bf16 %v865_v1, %v865_v1  ;;  %v868_v8 = vadd.f32 %v3276_v61, %v867_v6  ;;  %v3555_v9 = vpop.f32.mrb[19].mxu0 }
 0x8b7   :  { %v3830_v11 = vpack.i.bf16 %v868_v8, %v865_v1  ;;  %v960_v12 = vpack.c.bf16 %v868_v8, %v868_v8  ;;  %3567 = vmatmul.mubr.msk.bf16.vlgmr.msra.gmra.mrb[20].mxu0 %vm251_vm2, %v959_v7 }
 0x8b8   :  { %3577 = vmatpush3.bf16.xpose.msra.mxu0 %v1063_v10  ;;  %3578 = vmatprep.mubr.msk.bf16.mxu0 %vm4212_vm0, %v4211_v0 }
 0x8b9   :  { %3831 = vrot.lane.b32.xlu0 %v3830_v11, %s4213_s17  ;;  %3573 = vmatmul.mubr.msk.bf16.vlgmr.msra.gmra.mrb[28].mxu1 %vm251_vm2, %v960_v12 }
 0x8ba   :  { %3583 = vmatpush3.bf16.xpose.msra.mxu1 %v1109_v13  ;;  %3584 = vmatprep.mubr.msk.bf16.mxu1 %vm4212_vm0, %v4211_v0 }
 0x8bb   :  { %3588 = vmatprep.subr.bf16.mxu0 %v4211_v0  ;;  %3594 = vmatprep.subr.bf16.mxu1 %v4211_v0 }
 0x92b   :  { %v3832_v14 = vpop.permute.xlu0 %3831 }
 0x92c   :  { %v3834_v15 = vunpack.i.h.bf16 %v3832_v14  ;;  %v3833_v16 = vunpack.i.l.bf16 %v3832_v14 }
 0x92e   :  { %v962_v17 = vpack.c.bf16 %v3834_v15, %v3834_v15  ;;  %v961_v18 = vpack.c.bf16 %v3833_v16, %v3833_v16 }
 0x930   :  { %3579 = vmatmul.mubr.msk.bf16.vlgmr.msra.gmra.mrb[24].mxu0 %vm251_vm2, %v961_v18  ;;  %3585 = vmatmul.mubr.msk.bf16.vlgmr.msra.gmra.mrb[32].mxu1 %vm251_vm2, %v962_v17 }
 0x931   :  { %3590 = vmatprep.mubr.msk.bf16.mxu0 %vm4212_vm0, %v4211_v0  ;;  %3596 = vmatprep.mubr.msk.bf16.mxu1 %vm4212_vm0, %v4211_v0 }
 0x98a   :  { %v1007_v19 = vpop.f32.mrb[20].mxu0 }
 0x98b   :  { %v3568_v3 = vpop.f32.mrb[21].mxu0  ;;  %v1151_v4 = vsel %vm445_vm3, %v1007_v19, -inf }
 0x98c   :  { %v1010_v20 = vpop.f32.mrb[22].mxu0  ;;  %1152 = vmax.xlane.f32.xlu1 %v1151_v4  ;;  %v1053_v21 = vpop.f32.mrb[28].mxu1 }
 0x98d   :  { %v3569_v22 = vpop.f32.mrb[23].mxu0  ;;  %v3574_v23 = vpop.f32.mrb[29].mxu1  ;;  %v1154_v24 = vsel %vm445_vm3, %v1053_v21, -inf }
 0x98e   :  { %1155 = vmax.xlane.f32.xlu0 %v1154_v24  ;;  %v1056_v25 = vpop.f32.mrb[30].mxu1 }
 0x98f   :  { %v3575_v26 = vpop.f32.mrb[31].mxu1  ;;  %v3874_v25 = vld [vmem:[#allocation11] sm:$0xff]  }
 0xa03   :  { %v1099_v27 = vpop.f32.mrb[24].mxu0  ;;  %v1145_v28 = vpop.f32.mrb[32].mxu1 }
 0xa04   :  { %v3580_v29 = vpop.f32.mrb[25].mxu0  ;;  %v3586_v31 = vpop.f32.mrb[33].mxu1  ;;  %v1157_v32 = vsel %vm445_vm3, %v1099_v27, -inf  ;;  %v1160_v33 = vsel %vm445_vm3, %v1145_v28, -inf }
 0xa05   :  { %1158 = vmax.xlane.f32.xlu1 %v1157_v32  ;;  %v1102_v35 = vpop.f32.mrb[26].mxu0  ;;  %1161 = vmax.xlane.f32.xlu0 %v1160_v33  ;;  %v1148_v36 = vpop.f32.mrb[34].mxu1  ;;  %v3875_v31 = vld [vmem:[#allocation11 + $0x8] sm:$0xff]  }
 0xa06   :  { %v3581_v37 = vpop.f32.mrb[27].mxu0  ;;  %v3587_v38 = vpop.f32.mrb[35].mxu1 }
 0xa16   :  { %1200 = vrot.lane.b32.xlu1 %v4596_v48, %s4214_s20 }
 0xa19   :  { %v1153_v44 = vpop.xlane.xlu1 %1152 }
 0xa1a   :  { %v1163_v45 = vsub.f32 %v1007_v19, %v1153_v44 }
 0xa1b   :  { %v1156_v39 = vpop.xlane.xlu0 %1155 }
 0xa1c   :  { %v1164_v42 = vsub.f32 %v1053_v21, %v1156_v39  ;;  %v1167_v46 = vmul.f32 1.442695, %v1163_v45 }
 0xa1e   :  { %v1169_v43 = vmul.f32 1.442695, %v1164_v42 }
 0xa20   :  { %3918 = vpow2.f32 %v1169_v43 }
 0xa21   :  { %3920 = vpow2.f32 %v1167_v46 }
 0xa2a   :  { %v3919_v47 = vpop.eup %3918 }
 0xa2b   :  { %v1178_v49 = vsel %vm445_vm3, %v3919_v47, 0.0  ;;  %v3921_v50 = vpop.eup %3920 }
 0xa2c   :  { %1179 = vadd.xlane.f32.xlu0 %v1178_v49  ;;  %v1175_v51 = vsel %vm445_vm3, %v3921_v50, 0.0 }
 0xa3a   :  { %1176 = vadd.xlane.f32.xlu1 %v1175_v51 }
 0xa92   :  { %v1159_v53 = vpop.xlane.xlu1 %1158  ;;  %v1162_v54 = vpop.xlane.xlu0 %1161 }
 0xa93   :  { %v1165_v55 = vsub.f32 %v1099_v27, %v1159_v53  ;;  %v1166_v48 = vsub.f32 %v1145_v28, %v1162_v54 }
 0xa95   :  { %v1171_v56 = vmul.f32 1.442695, %v1165_v55  ;;  %v1173_v57 = vmul.f32 1.442695, %v1166_v48  ;;  %v4675_v48 = vsub.s32 1, %v4539_v58 }
 0xa96   :  { %v1201_v61 = vpop.permute.xlu1 %1200 }
 0xa97   :  { %3922 = vpow2.f32 %v1171_v56  ;;  %v1206_v63 = vsel %vm499_vm4, %v1201_v61, 0  ;;  %v1413_v56 = vrot.slane %v4547_v60, %v4675_v48 }
 0xa98   :  { %3924 = vpow2.f32 %v1173_v57  ;;  %3589 = vmatpush3.bf16.msra.mxu0 %v1206_v63 }
 0xa99   :  { %3600 = vmatprep.subr.bf16.mxu0 %v4211_v0 }
 0xaa1   :  { %v3923_v1 = vpop.eup %3922 }
 0xaa2   :  { %v3925_v2 = vpop.eup %3924  ;;  %v1181_v6 = vsel %vm445_vm3, %v3923_v1, 0.0 }
 0xaa3   :  { %1182 = vadd.xlane.f32.xlu1 %v1181_v6  ;;  %v1184_v7 = vsel %vm445_vm3, %v3925_v2, 0.0 }
 0xaa4   :  { %1185 = vadd.xlane.f32.xlu0 %v1184_v7 }
 0xab4   :  { %1298 = vrot.lane.b32.xlu1 %v4607_v62, %s4214_s20 }
 0xab8   :  { %1347 = vrot.lane.b32.xlu1 %v4609_v5, %s4214_s20 }
 0xab9   :  { %v1180_v12 = vpop.xlane.xlu0 %1179 }
 0xaba   :  { %1249 = vrot.lane.b32.xlu0 %v4598_v52, %s4214_s20 }
 0xac7   :  { %v1177_v8 = vpop.xlane.xlu1 %1176 }
 0xac8   :  { %3926 = vrcp.f32 %v1177_v8 }
 0xac9   :  { %3928 = vrcp.f32 %v1180_v12 }
 0xad2   :  { %v3927_v9 = vpop.eup %3926 }
 0xad3   :  { %v1191_v10 = vmul.f32 %v3927_v9, %v3921_v50  ;;  %v3929_v62 = vpop.eup %3928 }
 0xad4   :  { %v1192_v5 = vmul.f32 %v3929_v62, %v3919_v47 }
 0xad5   :  { %v1195_v11 = vpack.c.bf16 %v1191_v10, %v1191_v10 }
 0xad6   :  { %v1196_v19 = vpack.c.bf16 %v1192_v5, %v1192_v5 }
 0xad7   :  { %3591 = vmatmul.mubr.msk.bf16.vlgmr.msra.gmra.mrb[28].mxu0 %vm445_vm3, %v1195_v11 }
 0xad8   :  { %3602 = vmatprep.mubr.msk.bf16.mxu0 %vm4212_vm0, %v4211_v0 }
 0xb30   :  { %v1183_v13 = vpop.xlane.xlu1 %1182 }
 0xb31   :  { %3930 = vrcp.f32 %v1183_v13  ;;  %v1186_v14 = vpop.xlane.xlu0 %1185 }
 0xb32   :  { %3932 = vrcp.f32 %v1186_v14 }
 0xb34   :  { %v1299_v15 = vpop.permute.xlu1 %1298 }
 0xb35   :  { %v1304_v52 = vsel %vm499_vm4, %v1299_v15, 0  ;;  %v1250_v16 = vpop.permute.xlu0 %1249 }
 0xb36   :  { %v1255_v17 = vsel %vm499_vm4, %v1250_v16, 0  ;;  %3601 = vmatpush3.bf16.msra.mxu0 %v1304_v52 }
 0xb37   :  { %3595 = vmatpush3.bf16.msra.mxu1 %v1255_v17  ;;  %3612 = vmatprep.subr.bf16.mxu0 %v4211_v0  ;;  %v3876_v17 = vld [vmem:[#allocation13] sm:$0xff]  }
 0xb38   :  { %v1348_v18 = vpop.permute.xlu1 %1347  ;;  %3606 = vmatprep.subr.bf16.mxu1 %v4211_v0 }
 0xb39   :  { %v1353_v3 = vsel %vm499_vm4, %v1348_v18, 0  ;;  %v3878_v18 = vld [vmem:[%s5033_s12] sm:$0xff]  }
 0xb3a   :  { %3597 = vmatmul.mubr.msk.bf16.vlgmr.msra.gmra.mrb[36].mxu1 %vm445_vm3, %v1196_v19  ;;  %v3879_v19 = vld [vmem:[%s5033_s12 + $0x8] sm:$0xff]  }
 0xb3b   :  { %v3931_v4 = vpop.eup %3930  ;;  %3607 = vmatpush3.bf16.msra.mxu1 %v1353_v3  ;;  %3608 = vmatprep.mubr.msk.bf16.mxu1 %vm4212_vm0, %v4211_v0 }
 0xb3c   :  { %v3933_v20 = vpop.eup %3932  ;;  %v1193_v21 = vmul.f32 %v3931_v4, %v3923_v1  ;;  %3620 = vmatprep.subr.bf16.mxu1 %v4211_v0 }
 0xb3d   :  { %v1194_v22 = vmul.f32 %v3933_v20, %v3925_v2 }
 0xb3e   :  { %v1197_v23 = vpack.c.bf16 %v1193_v21, %v1193_v21 }
 0xb3f   :  { %v1198_v24 = vpack.c.bf16 %v1194_v22, %v1194_v22 }
 0xb40   :  { %3603 = vmatmul.mubr.msk.bf16.vlgmr.msra.gmra.mrb[32].mxu0 %vm445_vm3, %v1197_v23 }
 0xb41   :  { %3616 = vmatprep.mubr.msk.bf16.mxu0 %vm4212_vm0, %v4211_v0  ;;  %3613 = vmatpush3.bf16.msra.mxu0 %v3874_v25  ;;  %v1506_v25 = vsub.s32 4, %v4539_v58 }
 0xb42   :  { %3609 = vmatmul.mubr.msk.bf16.vlgmr.msra.gmra.mrb[40].mxu1 %vm445_vm3, %v1198_v24  ;;  %3614 = vmatprep.subr.bf16.mxu0 %v4211_v0  ;;  %v1501_v24 = vrot.slane %v4579_v30, %v4675_v48 }
 0xb43   :  { %3624 = vmatprep.mubr.msk.bf16.mxu1 %vm4212_vm0, %v4211_v0  ;;  %3621 = vmatpush3.bf16.msra.mxu1 %v3876_v17  ;;  %v3883_v17 = vld [vmem:[%s5023_s2 + $0x18] sm:$0xff]  }
 0xb44   :  { %3622 = vmatprep.subr.bf16.mxu1 %v4211_v0 }
 0xb45   :  { %3615 = vmatpush3.bf16.msra.mxu0 %v3875_v31 }
 0xb46   :  { %3628 = vmatprep.subr.bf16.mxu0 %v4211_v0 }
 0xbaa   :  { %v1242_v26 = vpop.f32.mrb[28].mxu0 }
 0xbab   :  { %v3592_v27 = vpop.f32.mrb[29].mxu0 }
 0xbac   :  { %v1245_v28 = vpop.f32.mrb[30].mxu0 }
 0xbad   :  { %v3593_v29 = vpop.f32.mrb[31].mxu0 }
 0xc0d   :  { %v1291_v32 = vpop.f32.mrb[36].mxu1 }
 0xc0e   :  { %v3598_v33 = vpop.f32.mrb[37].mxu1 }
 0xc0f   :  { %v1294_v35 = vpop.f32.mrb[38].mxu1 }
 0xc10   :  { %v3599_v36 = vpop.f32.mrb[39].mxu1 }
 0xc13   :  { %v1340_v37 = vpop.f32.mrb[32].mxu0 }
 0xc14   :  { %v3604_v38 = vpop.f32.mrb[33].mxu0 }
 0xc15   :  { %v1389_v39 = vpop.f32.mrb[40].mxu1  ;;  %v1343_v42 = vpop.f32.mrb[34].mxu0  ;;  %v3880_v38 = vld [vmem:[%s5033_s12 + $0x10] sm:$0xff]  }
 0xc16   :  { %v3835_v43 = vpack.i.bf16 %v1389_v39, %v1340_v37  ;;  %v3610_v44 = vpop.f32.mrb[41].mxu1  ;;  %v3605_v45 = vpop.f32.mrb[35].mxu0  ;;  %v3881_v39 = vld [vmem:[%s5033_s12 + $0x18] sm:$0xff]  }
 0xc17   :  { %v1392_v46 = vpop.f32.mrb[42].mxu1  ;;  %v3296_v42 = vld [vmem:[#allocation14] ss:$0 sm:$0xff] }
 0xc18   :  { %3836 = vrot.lane.b32.xlu0 %v3835_v43, %s4202_s19  ;;  %v3611_v47 = vpop.f32.mrb[43].mxu1 }
 0xc8a   :  { %v3837_v49 = vpop.permute.xlu0 %3836 }
 0xc8b   :  { %v3839_v50 = vunpack.i.h.bf16 %v3837_v49  ;;  %v3838_v51 = vunpack.i.l.bf16 %v3837_v49 }
 0xc8d   :  { %v1404_v53 = vsel %vm251_vm2, %v1291_v32, %v3839_v50  ;;  %v1403_v54 = vsel %vm251_vm2, %v1242_v26, %v3838_v51  ;;  %v1507_v32 = vrot.slane %v4547_v60, %v1506_v25 }
 0xc8e   :  { %v1405_v55 = vpack.c.bf16 %v1404_v53, %v1403_v54  ;;  %v4716_v54 = vsub.s32 2, %v4539_v58 }
 0xc90   :  { %3617 = vmatmul.mubr.msk.bf16.vlgmr.msra.gmra.mrb[36].mxu0 %vm191_vm1, %v1405_v55  ;;  %v1592_v55 = vrot.slane %v4547_v60, %v4716_v54 }
 0xc91   :  { %3636 = vmatprep.mubr.msk.bf16.mxu0 %vm4212_vm0, %v4211_v0  ;;  %3629 = vmatpush3.bf16.msra.mxu0 %v3878_v18 }
 0xc92   :  { %3630 = vmatprep.subr.bf16.mxu0 %v4211_v0 }
 0xc95   :  { %3631 = vmatpush3.bf16.msra.mxu0 %v3879_v19 }
 0xc96   :  { %3632 = vmatprep.subr.bf16.mxu0 %v4211_v0 }
 0xc99   :  { %3633 = vmatpush3.bf16.msra.mxu0 %v3880_v38 }
 0xc9a   :  { %3634 = vmatprep.subr.bf16.mxu0 %v4211_v0 }
 0xc9d   :  { %3635 = vmatpush3.bf16.msra.mxu0 %v3881_v39 }
 0xc9e   :  { %3654 = vmatprep.subr.bf16.mxu0 %v4211_v0 }
 0xd63   :  { %v1463_v57 = vpop.f32.mrb[36].mxu0 }
 0xd64   :  { %v1464_v61 = vadd.f32 %v1463_v57, %v1413_v56  ;;  %v3618_v63 = vpop.f32.mrb[37].mxu0 }
 0xd65   :  { %v1466_v1 = vpop.f32.mrb[38].mxu0 }
 0xd66   :  { %v1467_v2 = vadd.f32 %v1466_v1, %v1413_v56  ;;  %v3619_v6 = vpop.f32.mrb[39].mxu0  ;;  %v1470_v7 = vadd.f32 %v1464_v61, %v4587_v40 }
 0xd68   :  { %v1472_v8 = vsel %vm191_vm1, %v1470_v7, 0.0  ;;  %v1471_v9 = vadd.f32 %v1467_v2, %v4589_v41  ;;  %v3877_v41 = vld [vmem:[#allocation13 + $0x8] sm:$0xff]  }
 0xd69   :  { %1473 = vadd.xlane.f32.xlu1 %v1472_v8  ;;  %3623 = vmatpush3.bf16.msra.mxu1 %v3877_v41 }
 0xd6a   :  { %v1475_v10 = vsel %vm191_vm1, %v1471_v9, 0.0  ;;  %3640 = vmatprep.subr.bf16.mxu1 %v4211_v0 }
 0xd6b   :  { %1476 = vadd.xlane.f32.xlu0 %v1475_v10 }
 0xdf6   :  { %v1474_v11 = vpop.xlane.xlu1 %1473 }
 0xdf7   :  { %v1478_v12 = vmul.f32 0.03125, %v1474_v11 }
 0xdf8   :  { %v1477_v13 = vpop.xlane.xlu0 %1476 }
 0xdf9   :  { %v1480_v62 = vsub.f32 %v1470_v7, %v1478_v12  ;;  %v1479_v14 = vmul.f32 0.03125, %v1477_v13 }
 0xdfb   :  { %v1481_v5 = vsub.f32 %v1471_v9, %v1479_v14  ;;  %v1482_v15 = vmul.f32 %v1480_v62, %v1480_v62 }
 0xdfd   :  { %v1484_v52 = vsel %vm191_vm1, %v1482_v15, 0.0  ;;  %v1483_v16 = vmul.f32 %v1481_v5, %v1481_v5 }
 0xdfe   :  { %1485 = vadd.xlane.f32.xlu0 %v1484_v52 }
 0xdff   :  { %v1487_v40 = vsel %vm191_vm1, %v1483_v16, 0.0 }
 0xe00   :  { %1488 = vadd.xlane.f32.xlu1 %v1487_v40  ;;  %v3882_v40 = vld [vmem:[%s5023_s2 + $0x10] sm:$0xff]  }
 0xe8b   :  { %v1486_v3 = vpop.xlane.xlu0 %1485 }
 0xe8c   :  { %v1490_v4 = vmul.f32 0.03125, %v1486_v3 }
 0xe8d   :  { %v1489_v20 = vpop.xlane.xlu1 %1488 }
 0xe8e   :  { %v1492_v21 = vadd.f32 1e-05, %v1490_v4  ;;  %v1491_v22 = vmul.f32 0.03125, %v1489_v20 }
 0xe90   :  { %3934 = vrsqrt.f32 %v1492_v21  ;;  %v1493_v23 = vadd.f32 1e-05, %v1491_v22  ;;  %v1693_v21 = vrot.slane %v4579_v30, %v4716_v54  ;;  %v1698_v22 = vsub.s32 5, %v4539_v58  ;;  %v3311_v30 = vld [vmem:[#allocation7 + $0x1] ss:$0 sm:$0xff] }
 0xe92   :  { %3936 = vrsqrt.f32 %v1493_v23 }
 0xe9a   :  { %v3935_v26 = vpop.eup %3934 }
 0xe9b   :  { %v1496_v27 = vmul.f32 %v3935_v26, %v1480_v62 }
 0xe9c   :  { %v3937_v28 = vpop.eup %3936 }
 0xe9d   :  { %v1502_v29 = vmul.f32 %v1501_v24, %v1496_v27  ;;  %v1497_v31 = vmul.f32 %v3937_v28, %v1481_v5 }
 0xe9f   :  { %v1503_v33 = vmul.f32 %v1501_v24, %v1497_v31  ;;  %v1508_v35 = vadd.f32 %v1507_v32, %v1502_v29  ;;  %v1699_v29 = vrot.slane %v4547_v60, %v1698_v22 }
 0xea1   :  { %v1509_v36 = vadd.f32 %v1507_v32, %v1503_v33 }
 0xea3   :  { %v1510_v37 = vpack.c.bf16 %v1509_v36, %v1508_v35 }
 0xea5   :  { %3625 = vmatmul.mubr.msk.bf16.vlgmr.msra.gmra.mrb[44].mxu1 %vm191_vm1, %v1510_v37 }
 0xea6   :  { %3644 = vmatprep.mubr.msk.bf16.mxu1 %vm4212_vm0, %v4211_v0  ;;  %3641 = vmatpush3.bf16.msra.mxu1 %v3882_v40 }
 0xea7   :  { %3642 = vmatprep.subr.bf16.mxu1 %v4211_v0 }
 0xeaa   :  { %3643 = vmatpush3.bf16.msra.mxu1 %v3883_v17 }
 0xeab   :  { %3648 = vmatprep.subr.bf16.mxu1 %v4211_v0 }
 0xf78   :  { %v1571_v43 = vpop.f32.mrb[44].mxu1 }
 0xf79   :  { %v1572_v44 = vadd.f32 %v3296_v42, %v1571_v43  ;;  %v3626_v45 = vpop.f32.mrb[45].mxu1 }
 0xf7a   :  { %v1574_v46 = vpop.f32.mrb[46].mxu1 }
 0xf7b   :  { %v1575_v47 = vadd.f32 %v3296_v42, %v1574_v46  ;;  %v3627_v49 = vpop.f32.mrb[47].mxu1  ;;  %v1578_v50 = vmax.f32 %v1572_v44, 0.0 }
 0xf7d   :  { %v1579_v51 = vmax.f32 %v1575_v47, 0.0 }
 0xf7f   :  { %v1580_v53 = vpack.c.bf16 %v1579_v51, %v1578_v50 }
 0xf81   :  { %3637 = vmatmul.mubr.msk.bf16.vlgmr.msra.gmra.mrb[40].mxu0 %vm1617_vm5, %v1580_v53 }
 0xf82   :  { %3656 = vmatprep.mubr.msk.bf16.mxu0 %vm4212_vm0, %v4211_v0 }
0x1054   :  { %v1655_v56 = vpop.f32.mrb[40].mxu0 }
0x1055   :  { %v1656_v57 = vadd.f32 %v1655_v56, %v1592_v55  ;;  %v3638_v61 = vpop.f32.mrb[41].mxu0 }
0x1056   :  { %v1658_v63 = vpop.f32.mrb[42].mxu0 }
0x1057   :  { %v1659_v1 = vadd.f32 %v1658_v63, %v1592_v55  ;;  %v3639_v2 = vpop.f32.mrb[43].mxu0  ;;  %v1662_v6 = vadd.f32 %v1656_v57, %v1508_v35 }
0x1059   :  { %v1664_v7 = vsel %vm191_vm1, %v1662_v6, 0.0  ;;  %v1663_v8 = vadd.f32 %v1659_v1, %v1509_v36 }
0x105a   :  { %1665 = vadd.xlane.f32.xlu0 %v1664_v7 }
0x105b   :  { %v1667_v9 = vsel %vm191_vm1, %v1663_v8, 0.0 }
0x105c   :  { %1668 = vadd.xlane.f32.xlu1 %v1667_v9 }
0x10e7   :  { %v1666_v10 = vpop.xlane.xlu0 %1665 }
0x10e8   :  { %v1670_v11 = vmul.f32 0.03125, %v1666_v10 }
0x10e9   :  { %v1669_v12 = vpop.xlane.xlu1 %1668 }
0x10ea   :  { %v1672_v13 = vsub.f32 %v1662_v6, %v1670_v11  ;;  %v1671_v62 = vmul.f32 0.03125, %v1669_v12 }
0x10ec   :  { %v1673_v14 = vsub.f32 %v1663_v8, %v1671_v62  ;;  %v1674_v5 = vmul.f32 %v1672_v13, %v1672_v13 }
0x10ee   :  { %v1676_v15 = vsel %vm191_vm1, %v1674_v5, 0.0  ;;  %v1675_v52 = vmul.f32 %v1673_v14, %v1673_v14 }
0x10ef   :  { %1677 = vadd.xlane.f32.xlu0 %v1676_v15 }
0x10f0   :  { %v1679_v16 = vsel %vm191_vm1, %v1675_v52, 0.0 }
0x10f1   :  { %1680 = vadd.xlane.f32.xlu1 %v1679_v16 }
0x117c   :  { %v1678_v41 = vpop.xlane.xlu0 %1677 }
0x117d   :  { %v1682_v18 = vmul.f32 0.03125, %v1678_v41 }
0x117e   :  { %v1681_v19 = vpop.xlane.xlu1 %1680 }
0x117f   :  { %v1684_v3 = vadd.f32 1e-05, %v1682_v18  ;;  %v1683_v4 = vmul.f32 0.03125, %v1681_v19 }
0x1181   :  { %3938 = vrsqrt.f32 %v1684_v3  ;;  %v1685_v20 = vadd.f32 1e-05, %v1683_v4 }
0x1183   :  { %3940 = vrsqrt.f32 %v1685_v20 }
0x118b   :  { %v3939_v23 = vpop.eup %3938 }
0x118c   :  { %v1688_v24 = vmul.f32 %v3939_v23, %v1672_v13 }
0x118d   :  { %v3941_v26 = vpop.eup %3940 }
0x118e   :  { %v1694_v27 = vmul.f32 %v1693_v21, %v1688_v24  ;;  %v1689_v28 = vmul.f32 %v3941_v26, %v1673_v14 }
0x1190   :  { %v1695_v31 = vmul.f32 %v1693_v21, %v1689_v28  ;;  %v4738_v32 = vadd.f32 %v1699_v29, %v1694_v27 }
0x1192   :  { %v4740_v33 = vadd.f32 %v1699_v29, %v1695_v31 }
0x1194   :  { %v1706_v35 = vpack.c.bf16 %v4740_v33, %v4738_v32 }
0x1196   :  { %3645 = vmatmul.mubr.msk.bf16.vlgmr.msra.gmra.mrb[48].mxu1 %vm191_vm1, %v1706_v35 }
0x1197   :  { %3650 = vmatprep.mubr.msk.bf16.mxu1 %vm4212_vm0, %v4211_v0 }
0x1269   :  { %v1769_v36 = vpop.f32.mrb[48].mxu1 }
0x126a   :  { %v1770_v37 = vadd.f32 %v3311_v30, %v1769_v36  ;;  %v3646_v38 = vpop.f32.mrb[49].mxu1 }
0x126b   :  { %v1772_v39 = vpop.f32.mrb[50].mxu1 }
0x126c   :  { %v1784_v42 = vpack.c.bf16 %v1770_v37, %v1770_v37  ;;  %v1773_v60 = vadd.f32 %v3311_v30, %v1772_v39  ;;  %v3647_v43 = vpop.f32.mrb[51].mxu1 }
0x126e   :  { %v3840_v44 = vpack.i.bf16 %v1773_v60, %v1770_v37  ;;  %1789 = vrot.lane.b32.xlu1 %v1784_v42, %s4214_s20  ;;  %v4748_v45 = vpack.c.bf16 %v1773_v60, %v1773_v60 }
0x1270   :  { %3841 = vrot.lane.b32.xlu0 %v3840_v44, %s4213_s17 }
0x1272   :  { %1838 = vrot.lane.b32.xlu1 %v4748_v45, %s4214_s20 }
0x12e0   :  { %v1790_v46 = vpop.permute.xlu1 %1789 }
0x12e1   :  { %v1795_v47 = vsel %vm251_vm2, %v1790_v46, 0 }
0x12e2   :  { %3649 = vmatpush3.bf16.xpose.msra.mxu1 %v1795_v47  ;;  %v3842_v49 = vpop.permute.xlu0 %3841 }
0x12e3   :  { %v3844_v50 = vunpack.i.h.bf16 %v3842_v49  ;;  %v3843_v51 = vunpack.i.l.bf16 %v3842_v49  ;;  %3660 = vmatprep.subr.bf16.mxu1 %v4211_v0 }
0x12e4   :  { %v1839_v53 = vpop.permute.xlu1 %1838 }
0x12e5   :  { %v4755_v55 = vpack.c.bf16 %v3844_v50, %v3844_v50  ;;  %v4757_v56 = vpack.c.bf16 %v3843_v51, %v3843_v51  ;;  %v1844_v57 = vsel %vm251_vm2, %v1839_v53, 0 }
0x12e6   :  { %3655 = vmatpush3.bf16.xpose.msra.mxu0 %v1844_v57 }
0x12e7   :  { %1887 = vrot.lane.b32.xlu0 %v4757_v56, %s4214_s20  ;;  %1936 = vrot.lane.b32.xlu1 %v4755_v55, %s4214_s20 }
0x12e8   :  { %3666 = vmatprep.subr.bf16.mxu0 %v4211_v0 }
0x12e9   :  { %3651 = vmatmul.mubr.msk.bf16.vlgmr.msra.gmra.mrb[52].mxu1 %vm251_vm2, %v1784_v42 }
0x12ea   :  { %3662 = vmatprep.mubr.msk.bf16.mxu1 %vm4212_vm0, %v4211_v0 }
0x12ed   :  { %3657 = vmatmul.mubr.msk.bf16.vlgmr.msra.gmra.mrb[44].mxu0 %vm251_vm2, %v4748_v45 }
0x12ee   :  { %3668 = vmatprep.mubr.msk.bf16.mxu0 %vm4212_vm0, %v4211_v0 }
0x1359   :  { %v1888_v61 = vpop.permute.xlu0 %1887  ;;  %v1937_v63 = vpop.permute.xlu1 %1936 }
0x135a   :  { %v1893_v1 = vsel %vm251_vm2, %v1888_v61, 0  ;;  %v1942_v2 = vsel %vm251_vm2, %v1937_v63, 0 }
0x135b   :  { %3661 = vmatpush3.bf16.xpose.msra.mxu1 %v1893_v1  ;;  %3667 = vmatpush3.bf16.xpose.msra.mxu0 %v1942_v2 }
0x135c   :  { %3672 = vmatprep.subr.bf16.mxu1 %v4211_v0  ;;  %3678 = vmatprep.subr.bf16.mxu0 %v4211_v0 }
0x1362   :  { %3663 = vmatmul.mubr.msk.bf16.vlgmr.msra.gmra.mrb[56].mxu1 %vm251_vm2, %v4757_v56  ;;  %3669 = vmatmul.mubr.msk.bf16.vlgmr.msra.gmra.mrb[48].mxu0 %vm251_vm2, %v4755_v55 }
0x1363   :  { %3674 = vmatprep.mubr.msk.bf16.mxu1 %vm4212_vm0, %v4211_v0  ;;  %3680 = vmatprep.mubr.msk.bf16.mxu0 %vm4212_vm0, %v4211_v0 }
0x13bc   :  { %v1831_v6 = vpop.f32.mrb[52].mxu1 }
0x13bd   :  { %v3652_v7 = vpop.f32.mrb[53].mxu1  ;;  %v1984_v8 = vsel %vm445_vm3, %v1831_v6, -inf }
0x13be   :  { %1985 = vmax.xlane.f32.xlu0 %v1984_v8  ;;  %v1834_v9 = vpop.f32.mrb[54].mxu1 }
0x13bf   :  { %v3653_v10 = vpop.f32.mrb[55].mxu1 }
0x13c0   :  { %v1880_v11 = vpop.f32.mrb[44].mxu0 }
0x13c1   :  { %v3658_v12 = vpop.f32.mrb[45].mxu0  ;;  %v1987_v13 = vsel %vm445_vm3, %v1880_v11, -inf }
0x13c2   :  { %1988 = vmax.xlane.f32.xlu1 %v1987_v13  ;;  %v1883_v62 = vpop.f32.mrb[46].mxu0 }
0x13c3   :  { %v3659_v14 = vpop.f32.mrb[47].mxu0 }
0x13d3   :  { %2032 = vrot.lane.b32.xlu1 %v1784_v42, %s5041_s15 }
0x1435   :  { %v1929_v5 = vpop.f32.mrb[56].mxu1  ;;  %v1978_v15 = vpop.f32.mrb[48].mxu0 }
0x1436   :  { %v3664_v52 = vpop.f32.mrb[57].mxu1  ;;  %v3670_v16 = vpop.f32.mrb[49].mxu0  ;;  %v1990_v40 = vsel %vm445_vm3, %v1929_v5, -inf  ;;  %v1993_v3 = vsel %vm445_vm3, %v1978_v15, -inf }
0x1437   :  { %v1981_v17 = vpop.f32.mrb[50].mxu0  ;;  %1991 = vmax.xlane.f32.xlu0 %v1990_v40  ;;  %v1932_v41 = vpop.f32.mrb[58].mxu1  ;;  %v3884_v52 = vld [vmem:[%s5025_s4 + $0x10] sm:$0xff]  }
0x1438   :  { %v3665_v18 = vpop.f32.mrb[59].mxu1  ;;  %v3671_v19 = vpop.f32.mrb[51].mxu0  ;;  %v3885_v17 = vld [vmem:[%s5025_s4 + $0x18] sm:$0xff]  }
0x143b   :  { %1994 = vmax.xlane.f32.xlu0 %v1993_v3 }
0x144b   :  { %v1986_v4 = vpop.xlane.xlu0 %1985 }
0x144c   :  { %v1996_v20 = vsub.f32 %v1831_v6, %v1986_v4 }
0x144e   :  { %v2000_v21 = vmul.f32 1.442695, %v1996_v20 }
0x144f   :  { %v1989_v23 = vpop.xlane.xlu1 %1988 }
0x1450   :  { %3942 = vpow2.f32 %v2000_v21  ;;  %v1997_v24 = vsub.f32 %v1880_v11, %v1989_v23 }
0x1452   :  { %v2002_v26 = vmul.f32 1.442695, %v1997_v24 }
0x1453   :  { %v2033_v27 = vpop.permute.xlu1 %2032 }
0x1454   :  { %3944 = vpow2.f32 %v2002_v26  ;;  %v2038_v28 = vsel %vm499_vm4, %v2033_v27, 0 }
0x1455   :  { %3673 = vmatpush3.bf16.msra.mxu1 %v2038_v28 }
0x1456   :  { %3684 = vmatprep.subr.bf16.mxu1 %v4211_v0 }
0x145a   :  { %v3943_v29 = vpop.eup %3942 }
0x145b   :  { %v2008_v31 = vsel %vm445_vm3, %v3943_v29, 0.0 }
0x145c   :  { %2009 = vadd.xlane.f32.xlu1 %v2008_v31 }
0x145e   :  { %v3945_v35 = vpop.eup %3944 }
0x145f   :  { %v2011_v30 = vsel %vm445_vm3, %v3945_v35, 0.0 }
0x1460   :  { %2012 = vadd.xlane.f32.xlu0 %v2011_v30 }
0x14c4   :  { %v1992_v36 = vpop.xlane.xlu0 %1991 }
0x14c5   :  { %v1998_v37 = vsub.f32 %v1929_v5, %v1992_v36 }
0x14c7   :  { %v2004_v38 = vmul.f32 1.442695, %v1998_v37 }
0x14c8   :  { %v1995_v39 = vpop.xlane.xlu0 %1994 }
0x14c9   :  { %3946 = vpow2.f32 %v2004_v38  ;;  %v1999_v42 = vsub.f32 %v1978_v15, %v1995_v39  ;;  %v4836_v39 = vld [vmem:[%s5034_s13 + $0x8] sm:$0x3f] }
0x14cb   :  { %v2006_v60 = vmul.f32 1.442695, %v1999_v42  ;;  %v2243_v42 = vrot.slane %v4836_v39, %v4542_v59 }
0x14cd   :  { %3948 = vpow2.f32 %v2006_v60 }
0x14d3   :  { %v3947_v43 = vpop.eup %3946 }
0x14d4   :  { %v2014_v44 = vsel %vm445_vm3, %v3947_v43, 0.0 }
0x14d5   :  { %2015 = vadd.xlane.f32.xlu1 %v2014_v44 }
0x14d7   :  { %v3949_v46 = vpop.eup %3948 }
0x14d8   :  { %v2017_v47 = vsel %vm445_vm3, %v3949_v46, 0.0 }
0x14d9   :  { %2018 = vadd.xlane.f32.xlu0 %v2017_v47 }
0x14e6   :  { %2128 = vrot.lane.b32.xlu1 %v4757_v56, %s5041_s15 }
0x14e9   :  { %v2010_v49 = vpop.xlane.xlu1 %2009 }
0x14ea   :  { %3950 = vrcp.f32 %v2010_v49  ;;  %2176 = vrot.lane.b32.xlu1 %v4755_v55, %s5041_s15 }
0x14ed   :  { %v2013_v57 = vpop.xlane.xlu0 %2012 }
0x14ee   :  { %3952 = vrcp.f32 %v2013_v57 }
0x14ef   :  { %2080 = vrot.lane.b32.xlu0 %v4748_v45, %s5041_s15 }
0x14f4   :  { %v3951_v50 = vpop.eup %3950 }
0x14f5   :  { %v2024_v51 = vmul.f32 %v3951_v50, %v3943_v29 }
0x14f7   :  { %v2028_v53 = vpack.c.bf16 %v2024_v51, %v2024_v51 }
0x14f8   :  { %v3953_v56 = vpop.eup %3952 }
0x14f9   :  { %3675 = vmatmul.mubr.msk.bf16.vlgmr.msra.gmra.mrb[60].mxu1 %vm445_vm3, %v2028_v53  ;;  %v2025_v45 = vmul.f32 %v3953_v56, %v3945_v35 }
0x14fa   :  { %3686 = vmatprep.mubr.msk.bf16.mxu1 %vm4212_vm0, %v4211_v0 }
0x14fb   :  { %v2029_v9 = vpack.c.bf16 %v2025_v45, %v2025_v45 }
0x1562   :  { %v2016_v61 = vpop.xlane.xlu1 %2015 }
0x1563   :  { %3954 = vrcp.f32 %v2016_v61 }
0x1566   :  { %v2129_v63 = vpop.permute.xlu1 %2128  ;;  %v2019_v1 = vpop.xlane.xlu0 %2018 }
0x1567   :  { %v2134_v55 = vsel %vm499_vm4, %v2129_v63, 0  ;;  %3956 = vrcp.f32 %v2019_v1 }
0x1568   :  { %3685 = vmatpush3.bf16.msra.mxu1 %v2134_v55 }
0x1569   :  { %3696 = vmatprep.subr.bf16.mxu1 %v4211_v0 }
0x156a   :  { %v2081_v2 = vpop.permute.xlu0 %2080  ;;  %v2177_v7 = vpop.permute.xlu1 %2176 }
0x156b   :  { %v2086_v6 = vsel %vm499_vm4, %v2081_v2, 0  ;;  %v2182_v11 = vsel %vm499_vm4, %v2177_v7, 0 }
0x156c   :  { %3679 = vmatpush3.bf16.msra.mxu0 %v2086_v6 }
0x156d   :  { %v3955_v8 = vpop.eup %3954  ;;  %3690 = vmatprep.subr.bf16.mxu0 %v4211_v0 }
0x156e   :  { %v2026_v10 = vmul.f32 %v3955_v8, %v3947_v43  ;;  %v3887_v8 = vld [vmem:[%s5028_s7 + $0x18] sm:$0xff]  }
0x156f   :  { %3681 = vmatmul.mubr.msk.bf16.vlgmr.msra.gmra.mrb[52].mxu0 %vm445_vm3, %v2029_v9  ;;  %v3986_v9 = vld [vmem:[#allocation5] sm:$0xff]  }
0x1570   :  { %3691 = vmatpush3.bf16.msra.mxu0 %v2182_v11  ;;  %v2030_v12 = vpack.c.bf16 %v2026_v10, %v2026_v10  ;;  %3692 = vmatprep.mubr.msk.bf16.mxu0 %vm4212_vm0, %v4211_v0  ;;  %v3888_v10 = vld [vmem:[%s5026_s5 + $0x10] sm:$0xff]   ;;  %v3889_v11 = vld [vmem:[%s5026_s5 + $0x18] sm:$0xff]  }
0x1571   :  { %v3957_v13 = vpop.eup %3956  ;;  %3704 = vmatprep.subr.bf16.mxu0 %v4211_v0 }
0x1572   :  { %v2027_v62 = vmul.f32 %v3957_v13, %v3949_v46  ;;  %3687 = vmatmul.mubr.msk.bf16.vlgmr.msra.gmra.mrb[64].mxu1 %vm445_vm3, %v2030_v12 }
0x1573   :  { %3700 = vmatprep.mubr.msk.bf16.mxu1 %vm4212_vm0, %v4211_v0  ;;  %3697 = vmatpush3.bf16.msra.mxu1 %v3884_v52  ;;  %v4868_v52 = vld [vmem:[%s5035_s14 + $0x4] sm:$0x7] }
0x1574   :  { %v2031_v14 = vpack.c.bf16 %v2027_v62, %v2027_v62  ;;  %3698 = vmatprep.subr.bf16.mxu1 %v4211_v0 }
0x1577   :  { %3693 = vmatmul.mubr.msk.bf16.vlgmr.msra.gmra.mrb[56].mxu0 %vm445_vm3, %v2031_v14  ;;  %3699 = vmatpush3.bf16.msra.mxu1 %v3885_v17 }
0x1578   :  { %3708 = vmatprep.mubr.msk.bf16.mxu0 %vm4212_vm0, %v4211_v0  ;;  %3712 = vmatprep.subr.bf16.mxu1 %v4211_v0 }
0x1579   :  { %3705 = vmatpush3.bf16.msra.mxu0 %v3888_v10 }
0x157a   :  { %3706 = vmatprep.subr.bf16.mxu0 %v4211_v0 }
0x157d   :  { %3707 = vmatpush3.bf16.msra.mxu0 %v3889_v11 }
0x157e   :  { %3720 = vmatprep.subr.bf16.mxu0 %v4211_v0 }
0x15cc   :  { %v2074_v5 = vpop.f32.mrb[60].mxu1 }
0x15cd   :  { %v3676_v15 = vpop.f32.mrb[61].mxu1 }
0x15ce   :  { %v2077_v16 = vpop.f32.mrb[62].mxu1 }
0x15cf   :  { %v3677_v40 = vpop.f32.mrb[63].mxu1  ;;  %v2331_v16 = vrot.slane %v4868_v52, %v4542_v59  ;;  %v3342_v59 = vld [vmem:[#allocation10 + $0x1] ss:$0 sm:$0xff] }
0x1642   :  { %v2122_v41 = vpop.f32.mrb[52].mxu0 }
0x1643   :  { %v3682_v18 = vpop.f32.mrb[53].mxu0 }
0x1644   :  { %v2125_v19 = vpop.f32.mrb[54].mxu0 }
0x1645   :  { %v3683_v3 = vpop.f32.mrb[55].mxu0  ;;  %v2170_v4 = vpop.f32.mrb[64].mxu1 }
0x1646   :  { %v3688_v20 = vpop.f32.mrb[65].mxu1  ;;  %v2337_v3 = vrot.slane %v4836_v39, %v799_v34 }
0x1647   :  { %v2173_v21 = vpop.f32.mrb[66].mxu1 }
0x1648   :  { %v3689_v23 = vpop.f32.mrb[67].mxu1 }
0x164a   :  { %v2218_v24 = vpop.f32.mrb[56].mxu0 }
0x164b   :  { %v3845_v26 = vpack.i.bf16 %v2218_v24, %v2170_v4  ;;  %v3694_v27 = vpop.f32.mrb[57].mxu0 }
0x164c   :  { %v2221_v28 = vpop.f32.mrb[58].mxu0 }
0x164d   :  { %v3695_v29 = vpop.f32.mrb[59].mxu0  ;;  %3846 = vrot.lane.b32.xlu0 %v3845_v26, %s4202_s19 }
0x16bf   :  { %v3847_v31 = vpop.permute.xlu0 %3846 }
0x16c0   :  { %v3849_v35 = vunpack.i.h.bf16 %v3847_v31  ;;  %v3848_v30 = vunpack.i.l.bf16 %v3847_v31 }
0x16c2   :  { %v2233_v36 = vsel %vm251_vm2, %v2122_v41, %v3849_v35  ;;  %v2232_v37 = vsel %vm251_vm2, %v2074_v5, %v3848_v30 }
0x16c3   :  { %v2234_v38 = vpack.c.bf16 %v2233_v36, %v2232_v37 }
0x16c5   :  { %3701 = vmatmul.mubr.msk.bf16.vlgmr.msra.gmra.mrb[68].mxu1 %vm191_vm1, %v2234_v38 }
0x16c6   :  { %3716 = vmatprep.mubr.msk.bf16.mxu1 %vm4212_vm0, %v4211_v0 }
0x1798   :  { %v2293_v60 = vpop.f32.mrb[68].mxu1 }
0x1799   :  { %v2294_v43 = vadd.f32 %v2293_v60, %v2243_v42  ;;  %v3702_v44 = vpop.f32.mrb[69].mxu1 }
0x179a   :  { %v2296_v46 = vpop.f32.mrb[70].mxu1 }
0x179b   :  { %v2297_v47 = vadd.f32 %v2296_v46, %v2243_v42  ;;  %v3703_v49 = vpop.f32.mrb[71].mxu1  ;;  %v2300_v50 = vadd.f32 %v2294_v43, %v4738_v32  ;;  %v3334_v43 = vld [vmem:[#allocation8 + $0x1] ss:$0 sm:$0xff] }
0x179d   :  { %v2302_v51 = vsel %vm191_vm1, %v2300_v50, 0.0  ;;  %v2301_v53 = vadd.f32 %v2297_v47, %v4740_v33  ;;  %v3886_v33 = vld [vmem:[%s5028_s7 + $0x10] sm:$0xff]  }
0x179e   :  { %2303 = vadd.xlane.f32.xlu1 %v2302_v51  ;;  %3713 = vmatpush3.bf16.msra.mxu1 %v3886_v33 }
0x179f   :  { %v2305_v57 = vsel %vm191_vm1, %v2301_v53, 0.0  ;;  %3714 = vmatprep.subr.bf16.mxu1 %v4211_v0 }
0x17a0   :  { %2306 = vadd.xlane.f32.xlu0 %v2305_v57 }
0x17a2   :  { %3715 = vmatpush3.bf16.msra.mxu1 %v3887_v8 }
0x17a3   :  { %3726 = vmatprep.subr.bf16.mxu1 %v4211_v0 }
0x17a5   :  { %3717 = vmatmul.mubr.msk.bf16.vlgmr.msra.gmra.mrb[72].mxu1 %vm191_vm1, %v3986_v9 }
0x17a6   :  { %3728 = vmatprep.mubr.msk.bf16.mxu1 %vm4212_vm0, %v4211_v0 }
0x182b   :  { %v2304_v61 = vpop.xlane.xlu1 %2303 }
0x182c   :  { %v2308_v56 = vmul.f32 0.03125, %v2304_v61 }
0x182d   :  { %v2307_v63 = vpop.xlane.xlu0 %2306 }
0x182e   :  { %v2310_v1 = vsub.f32 %v2300_v50, %v2308_v56  ;;  %v2309_v55 = vmul.f32 0.03125, %v2307_v63 }
0x1830   :  { %v2311_v45 = vsub.f32 %v2301_v53, %v2309_v55  ;;  %v2312_v2 = vmul.f32 %v2310_v1, %v2310_v1 }
0x1832   :  { %v2314_v6 = vsel %vm191_vm1, %v2312_v2, 0.0  ;;  %v2313_v7 = vmul.f32 %v2311_v45, %v2311_v45 }
0x1833   :  { %2315 = vadd.xlane.f32.xlu0 %v2314_v6 }
0x1834   :  { %v2317_v32 = vsel %vm191_vm1, %v2313_v7, 0.0 }
0x1835   :  { %2318 = vadd.xlane.f32.xlu1 %v2317_v32 }
0x1878   :  { %v2469_v24 = vpop.f32.mrb[72].mxu1 }
0x1879   :  { %v2470_v26 = vadd.f32 %v3342_v59, %v2469_v24  ;;  %v3718_v27 = vpop.f32.mrb[73].mxu1 }
0x187a   :  { %v2472_v28 = vpop.f32.mrb[74].mxu1 }
0x187b   :  { %v4884_v29 = vpack.c.bf16 %v2470_v26, %v2470_v26  ;;  %v2473_v34 = vadd.f32 %v3342_v59, %v2472_v28  ;;  %v3719_v31 = vpop.f32.mrb[75].mxu1 }
0x187d   :  { %v3850_v35 = vpack.i.bf16 %v2473_v34, %v2470_v26  ;;  %v4886_v30 = vpack.c.bf16 %v2473_v34, %v2473_v34  ;;  %v2504_v36 = vsel %vm251_vm2, %v4884_v29, 0 }
0x187f   :  { %3851 = vrot.lane.b32.xlu0 %v3850_v35, %s4213_s17  ;;  %v2550_v37 = vsel %vm251_vm2, %v4886_v30, 0 }
0x1880   :  { %3727 = vmatpush3.bf16.xpose.msra.mxu1 %v2550_v37 }
0x1881   :  { %3738 = vmatprep.subr.bf16.mxu1 %v4211_v0 }
0x18c0   :  { %v2316_v12 = vpop.xlane.xlu0 %2315 }
0x18c1   :  { %v2320_v13 = vmul.f32 0.03125, %v2316_v12 }
0x18c2   :  { %v2319_v62 = vpop.xlane.xlu1 %2318 }
0x18c3   :  { %v2322_v14 = vadd.f32 1e-05, %v2320_v13  ;;  %v2321_v5 = vmul.f32 0.03125, %v2319_v62 }
0x18c5   :  { %3958 = vrsqrt.f32 %v2322_v14  ;;  %v2323_v15 = vadd.f32 1e-05, %v2321_v5 }
0x18c7   :  { %3960 = vrsqrt.f32 %v2323_v15 }
0x18cf   :  { %v3959_v40 = vpop.eup %3958 }
0x18d0   :  { %v2326_v17 = vmul.f32 %v3959_v40, %v2310_v1 }
0x18d1   :  { %v3961_v41 = vpop.eup %3960 }
0x18d2   :  { %v2332_v18 = vmul.f32 %v2331_v16, %v2326_v17  ;;  %v2327_v19 = vmul.f32 %v3961_v41, %v2311_v45 }
0x18d4   :  { %v2333_v4 = vmul.f32 %v2331_v16, %v2327_v19  ;;  %v4875_v20 = vadd.f32 %v2337_v3, %v2332_v18 }
0x18d6   :  { %v4877_v21 = vadd.f32 %v2337_v3, %v2333_v4 }
0x18d8   :  { %v2340_v23 = vpack.c.bf16 %v4877_v21, %v4875_v20 }
0x18da   :  { %3709 = vmatmul.mubr.msk.bf16.vlgmr.msra.gmra.mrb[60].mxu0 %vm191_vm1, %v2340_v23 }
0x18db   :  { %3722 = vmatprep.mubr.msk.bf16.mxu0 %vm4212_vm0, %v4211_v0  ;;  %3721 = vmatpush3.bf16.xpose.msra.mxu0 %v2504_v36 }
0x18dc   :  { %3732 = vmatprep.subr.bf16.mxu0 %v4211_v0 }
0x18f1   :  { %v3852_v38 = vpop.permute.xlu0 %3851 }
0x18f2   :  { %v3853_v42 = vunpack.i.l.bf16 %v3852_v38  ;;  %v3854_v60 = vunpack.i.h.bf16 %v3852_v38 }
0x18f4   :  { %v4895_v44 = vpack.c.bf16 %v3853_v42, %v3853_v42  ;;  %v4897_v50 = vpack.c.bf16 %v3854_v60, %v3854_v60 }
0x18f6   :  { %v2596_v56 = vsel %vm251_vm2, %v4895_v44, 0  ;;  %v2642_v55 = vsel %vm251_vm2, %v4897_v50, 0 }
0x19ad   :  { %v2403_v46 = vpop.f32.mrb[60].mxu0 }
0x19ae   :  { %v2404_v47 = vadd.f32 %v3334_v43, %v2403_v46  ;;  %v3710_v49 = vpop.f32.mrb[61].mxu0 }
0x19af   :  { %v2406_v51 = vpop.f32.mrb[62].mxu0 }
0x19b0   :  { %v2492_v53 = vpack.c.bf16 %v2404_v47, %v2404_v47  ;;  %v2407_v57 = vadd.f32 %v3334_v43, %v2406_v51  ;;  %v3711_v61 = vpop.f32.mrb[63].mxu0 }
0x19b2   :  { %v3855_v63 = vpack.i.bf16 %v2407_v57, %v2404_v47  ;;  %v2493_v1 = vpack.c.bf16 %v2407_v57, %v2407_v57  ;;  %3723 = vmatmul.mubr.msk.bf16.vlgmr.msra.gmra.mrb[64].mxu0 %vm251_vm2, %v2492_v53 }
0x19b3   :  { %3733 = vmatpush3.bf16.xpose.msra.mxu0 %v2596_v56  ;;  %3734 = vmatprep.mubr.msk.bf16.mxu0 %vm4212_vm0, %v4211_v0 }
0x19b4   :  { %3856 = vrot.lane.b32.xlu1 %v3855_v63, %s4213_s17  ;;  %3729 = vmatmul.mubr.msk.bf16.vlgmr.msra.gmra.mrb[76].mxu1 %vm251_vm2, %v2493_v1 }
0x19b5   :  { %3739 = vmatpush3.bf16.xpose.msra.mxu1 %v2642_v55  ;;  %3740 = vmatprep.mubr.msk.bf16.mxu1 %vm4212_vm0, %v4211_v0 }
0x19b6   :  { %3744 = vmatprep.subr.bf16.mxu0 %v4211_v0  ;;  %3750 = vmatprep.subr.bf16.mxu1 %v4211_v0 }
0x1a26   :  { %v3857_v45 = vpop.permute.xlu1 %3856 }
0x1a27   :  { %v3859_v2 = vunpack.i.h.bf16 %v3857_v45  ;;  %v3858_v6 = vunpack.i.l.bf16 %v3857_v45 }
0x1a29   :  { %v2495_v7 = vpack.c.bf16 %v3859_v2, %v3859_v2  ;;  %v2494_v32 = vpack.c.bf16 %v3858_v6, %v3858_v6 }
0x1a2b   :  { %3735 = vmatmul.mubr.msk.bf16.vlgmr.msra.gmra.mrb[68].mxu0 %vm251_vm2, %v2494_v32  ;;  %3741 = vmatmul.mubr.msk.bf16.vlgmr.msra.gmra.mrb[80].mxu1 %vm251_vm2, %v2495_v7 }
0x1a2c   :  { %3746 = vmatprep.mubr.msk.bf16.mxu0 %vm4212_vm0, %v4211_v0  ;;  %3752 = vmatprep.mubr.msk.bf16.mxu1 %vm4212_vm0, %v4211_v0 }
0x1a85   :  { %v2540_v33 = vpop.f32.mrb[64].mxu0 }
0x1a86   :  { %v3724_v8 = vpop.f32.mrb[65].mxu0  ;;  %v2684_v9 = vsel %vm445_vm3, %v2540_v33, -inf }
0x1a87   :  { %2685 = vmax.xlane.f32.xlu1 %v2684_v9  ;;  %v2543_v10 = vpop.f32.mrb[66].mxu0  ;;  %v2586_v11 = vpop.f32.mrb[76].mxu1 }
0x1a88   :  { %v3725_v12 = vpop.f32.mrb[67].mxu0  ;;  %v3730_v13 = vpop.f32.mrb[77].mxu1  ;;  %v2687_v62 = vsel %vm445_vm3, %v2586_v11, -inf }
0x1a89   :  { %2688 = vmax.xlane.f32.xlu0 %v2687_v62  ;;  %v2589_v14 = vpop.f32.mrb[78].mxu1 }
0x1a8a   :  { %v3731_v5 = vpop.f32.mrb[79].mxu1 }
0x1afe   :  { %v2632_v15 = vpop.f32.mrb[68].mxu0  ;;  %v2678_v16 = vpop.f32.mrb[80].mxu1 }
0x1aff   :  { %v3736_v40 = vpop.f32.mrb[69].mxu0  ;;  %v3742_v17 = vpop.f32.mrb[81].mxu1  ;;  %v2690_v41 = vsel %vm445_vm3, %v2632_v15, -inf  ;;  %v2693_v18 = vsel %vm445_vm3, %v2678_v16, -inf }
0x1b00   :  { %v2635_v19 = vpop.f32.mrb[70].mxu0  ;;  %2691 = vmax.xlane.f32.xlu0 %v2690_v41  ;;  %2694 = vmax.xlane.f32.xlu1 %v2693_v18  ;;  %v2681_v3 = vpop.f32.mrb[82].mxu1 }
0x1b01   :  { %v3737_v4 = vpop.f32.mrb[71].mxu0  ;;  %v3743_v23 = vpop.f32.mrb[83].mxu1 }
0x1b02   :  { %v3891_v23 = vld [vmem:[#allocation11 + $0x18] sm:$0xff]  }
0x1b11   :  { %2782 = vrot.lane.b32.xlu1 %v4886_v30, %s4214_s20 }
0x1b14   :  { %v2686_v59 = vpop.xlane.xlu1 %2685 }
0x1b15   :  { %v2696_v26 = vsub.f32 %v2540_v33, %v2686_v59 }
0x1b16   :  { %2733 = vrot.lane.b32.xlu0 %v4884_v29, %s4214_s20  ;;  %v2689_v24 = vpop.xlane.xlu0 %2688 }
0x1b17   :  { %v2697_v27 = vsub.f32 %v2586_v11, %v2689_v24  ;;  %v2700_v28 = vmul.f32 1.442695, %v2696_v26 }
0x1b19   :  { %v2702_v34 = vmul.f32 1.442695, %v2697_v27  ;;  %3962 = vpow2.f32 %v2700_v28 }
0x1b1b   :  { %3964 = vpow2.f32 %v2702_v34 }
0x1b23   :  { %v3963_v31 = vpop.eup %3962 }
0x1b24   :  { %v2708_v36 = vsel %vm445_vm3, %v3963_v31, 0.0 }
0x1b25   :  { %v3965_v35 = vpop.eup %3964 }
0x1b26   :  { %v2711_v37 = vsel %vm445_vm3, %v3965_v35, 0.0 }
0x1b35   :  { %2709 = vadd.xlane.f32.xlu0 %v2708_v36  ;;  %2712 = vadd.xlane.f32.xlu1 %v2711_v37 }
0x1b8d   :  { %v2692_v30 = vpop.xlane.xlu0 %2691  ;;  %v2695_v38 = vpop.xlane.xlu1 %2694 }
0x1b8e   :  { %v2698_v42 = vsub.f32 %v2632_v15, %v2692_v30  ;;  %v2699_v29 = vsub.f32 %v2678_v16, %v2695_v38  ;;  %v3890_v15 = vld [vmem:[#allocation11 + $0x10] sm:$0xff]  }
0x1b90   :  { %v2704_v60 = vmul.f32 1.442695, %v2698_v42  ;;  %v2706_v43 = vmul.f32 1.442695, %v2699_v29 }
0x1b91   :  { %v2734_v46 = vpop.permute.xlu0 %2733  ;;  %v2783_v47 = vpop.permute.xlu1 %2782 }
0x1b92   :  { %3966 = vpow2.f32 %v2704_v60  ;;  %v2739_v49 = vsel %vm499_vm4, %v2734_v46, 0  ;;  %v2788_v51 = vsel %vm499_vm4, %v2783_v47, 0 }
0x1b93   :  { %3968 = vpow2.f32 %v2706_v43  ;;  %3745 = vmatpush3.bf16.msra.mxu0 %v2739_v49  ;;  %3751 = vmatpush3.bf16.msra.mxu1 %v2788_v51  ;;  %v2947_v43 = vrot.slane %v4836_v39, %v4675_v48 }
0x1b94   :  { %3756 = vmatprep.subr.bf16.mxu0 %v4211_v0  ;;  %3762 = vmatprep.subr.bf16.mxu1 %v4211_v0 }
0x1b9c   :  { %v3967_v53 = vpop.eup %3966 }
0x1b9d   :  { %v3969_v57 = vpop.eup %3968  ;;  %v2714_v61 = vsel %vm445_vm3, %v3967_v53, 0.0 }
0x1b9e   :  { %2715 = vadd.xlane.f32.xlu0 %v2714_v61  ;;  %v2717_v56 = vsel %vm445_vm3, %v3969_v57, 0.0 }
0x1b9f   :  { %2718 = vadd.xlane.f32.xlu1 %v2717_v56 }
0x1bb0   :  { %2831 = vrot.lane.b32.xlu1 %v4895_v44, %s4214_s20 }
0x1bb4   :  { %2880 = vrot.lane.b32.xlu0 %v4897_v50, %s4214_s20 }
0x1bc2   :  { %v2710_v63 = vpop.xlane.xlu0 %2709  ;;  %v2713_v1 = vpop.xlane.xlu1 %2712 }
0x1bc3   :  { %3970 = vrcp.f32 %v2710_v63 }
0x1bc4   :  { %3972 = vrcp.f32 %v2713_v1 }
0x1bcd   :  { %v3971_v55 = vpop.eup %3970 }
0x1bce   :  { %v3973_v45 = vpop.eup %3972  ;;  %v2724_v2 = vmul.f32 %v3971_v55, %v3963_v31 }
0x1bcf   :  { %v2725_v6 = vmul.f32 %v3973_v45, %v3965_v35 }
0x1bd0   :  { %v2728_v7 = vpack.c.bf16 %v2724_v2, %v2724_v2 }
0x1bd1   :  { %v2729_v32 = vpack.c.bf16 %v2725_v6, %v2725_v6 }
0x1bd2   :  { %3747 = vmatmul.mubr.msk.bf16.vlgmr.msra.gmra.mrb[72].mxu0 %vm445_vm3, %v2728_v7 }
0x1bd3   :  { %3753 = vmatmul.mubr.msk.bf16.vlgmr.msra.gmra.mrb[84].mxu1 %vm445_vm3, %v2729_v32  ;;  %3758 = vmatprep.mubr.msk.bf16.mxu0 %vm4212_vm0, %v4211_v0 }
0x1bd4   :  { %3764 = vmatprep.mubr.msk.bf16.mxu1 %vm4212_vm0, %v4211_v0 }
0x1c2b   :  { %v2716_v44 = vpop.xlane.xlu0 %2715 }
0x1c2c   :  { %3974 = vrcp.f32 %v2716_v44  ;;  %v2719_v50 = vpop.xlane.xlu1 %2718 }
0x1c2d   :  { %3976 = vrcp.f32 %v2719_v50 }
0x1c2f   :  { %v2881_v33 = vpop.permute.xlu0 %2880 }
0x1c30   :  { %v2886_v8 = vsel %vm499_vm4, %v2881_v33, 0  ;;  %v2832_v9 = vpop.permute.xlu1 %2831 }
0x1c31   :  { %v2837_v10 = vsel %vm499_vm4, %v2832_v9, 0  ;;  %3763 = vmatpush3.bf16.msra.mxu1 %v2886_v8  ;;  %v3892_v8 = vld [vmem:[#allocation13 + $0x10] sm:$0xff]   ;;  %v3894_v9 = vld [vmem:[%s5033_s12 + $0x20] sm:$0xff]  }
0x1c32   :  { %3757 = vmatpush3.bf16.msra.mxu0 %v2837_v10  ;;  %3776 = vmatprep.subr.bf16.mxu1 %v4211_v0  ;;  %v3895_v10 = vld [vmem:[%s5033_s12 + $0x28] sm:$0xff]  }
0x1c33   :  { %3768 = vmatprep.subr.bf16.mxu0 %v4211_v0 }
0x1c36   :  { %v3975_v11 = vpop.eup %3974 }
0x1c37   :  { %v3977_v12 = vpop.eup %3976  ;;  %v2726_v13 = vmul.f32 %v3975_v11, %v3967_v53 }
0x1c38   :  { %v2727_v62 = vmul.f32 %v3977_v12, %v3969_v57 }
0x1c39   :  { %v2730_v14 = vpack.c.bf16 %v2726_v13, %v2726_v13 }
0x1c3a   :  { %v2731_v5 = vpack.c.bf16 %v2727_v62, %v2727_v62 }
0x1c3b   :  { %3759 = vmatmul.mubr.msk.bf16.vlgmr.msra.gmra.mrb[76].mxu0 %vm445_vm3, %v2730_v14 }
0x1c3c   :  { %3765 = vmatmul.mubr.msk.bf16.vlgmr.msra.gmra.mrb[88].mxu1 %vm445_vm3, %v2731_v5  ;;  %3772 = vmatprep.mubr.msk.bf16.mxu0 %vm4212_vm0, %v4211_v0 }
0x1c3d   :  { %3780 = vmatprep.mubr.msk.bf16.mxu1 %vm4212_vm0, %v4211_v0  ;;  %3769 = vmatpush3.bf16.msra.mxu0 %v3890_v15 }
0x1c3e   :  { %3770 = vmatprep.subr.bf16.mxu0 %v4211_v0  ;;  %3777 = vmatpush3.bf16.msra.mxu1 %v3892_v8 }
0x1c3f   :  { %3778 = vmatprep.subr.bf16.mxu1 %v4211_v0 }
0x1c41   :  { %3771 = vmatpush3.bf16.msra.mxu0 %v3891_v23 }
0x1c42   :  { %3784 = vmatprep.subr.bf16.mxu0 %v4211_v0 }
0x1ca5   :  { %v2775_v16 = vpop.f32.mrb[72].mxu0 }
0x1ca6   :  { %v2824_v40 = vpop.f32.mrb[84].mxu1  ;;  %v3748_v17 = vpop.f32.mrb[73].mxu0 }
0x1ca7   :  { %v3754_v41 = vpop.f32.mrb[85].mxu1  ;;  %v2778_v18 = vpop.f32.mrb[74].mxu0 }
0x1ca8   :  { %v2827_v19 = vpop.f32.mrb[86].mxu1  ;;  %v3749_v3 = vpop.f32.mrb[75].mxu0 }
0x1ca9   :  { %v3755_v4 = vpop.f32.mrb[87].mxu1  ;;  %v3041_v19 = vrot.slane %v4836_v39, %v1506_v25 }
0x1d0e   :  { %v2873_v59 = vpop.f32.mrb[76].mxu0 }
0x1d0f   :  { %v2922_v24 = vpop.f32.mrb[88].mxu1  ;;  %v3760_v26 = vpop.f32.mrb[77].mxu0 }
0x1d10   :  { %v3860_v27 = vpack.i.bf16 %v2922_v24, %v2873_v59  ;;  %v3766_v28 = vpop.f32.mrb[89].mxu1  ;;  %v2876_v34 = vpop.f32.mrb[78].mxu0  ;;  %v3896_v24 = vld [vmem:[%s5033_s12 + $0x30] sm:$0xff]   ;;  %v3357_v26 = vld [vmem:[#allocation14 + $0x1] ss:$0 sm:$0xff] }
0x1d11   :  { %v2925_v31 = vpop.f32.mrb[90].mxu1  ;;  %v3761_v35 = vpop.f32.mrb[79].mxu0 }
0x1d12   :  { %3861 = vrot.lane.b32.xlu1 %v3860_v27, %s4202_s19  ;;  %v3767_v36 = vpop.f32.mrb[91].mxu1 }
0x1d84   :  { %v3862_v37 = vpop.permute.xlu1 %3861 }
0x1d85   :  { %v3864_v30 = vunpack.i.h.bf16 %v3862_v37  ;;  %v3863_v38 = vunpack.i.l.bf16 %v3862_v37 }
0x1d87   :  { %v2937_v42 = vsel %vm251_vm2, %v2824_v40, %v3864_v30  ;;  %v2936_v29 = vsel %vm251_vm2, %v2775_v16, %v3863_v38  ;;  %v3035_v16 = vrot.slane %v4868_v52, %v4675_v48  ;;  %v3897_v48 = vld [vmem:[%s5033_s12 + $0x38] sm:$0xff]   ;;  %s4215_s12 = smov [#allocation16]  }
0x1d88   :  { %v2938_v60 = vpack.c.bf16 %v2937_v42, %v2936_v29  ;;  %s3245_s25 = sshll.u32 %s4215_s12, 4  ;;  %s3246_s25 = int_to_ptr.vmem [resolvable:$true] %s3245_s25 }
0x1d89   :  { %s4163_s0 = scalar_lea.vmem %s3246_s25, 256  ;;  %p4168_p9 = scmp.lt.s32.totalorder %s3246_s25, %s3246_s25 }
0x1d8a   :  { %3773 = vmatmul.mubr.msk.bf16.vlgmr.msra.gmra.mrb[80].mxu0 %vm191_vm1, %v2938_v60  ;;  %p4164_p8 = scmp.ne.s32.totalorder %s3246_s25, %s4163_s0  ;;  %p4169_p10 = scmp.lt.s32.totalorder %s4163_s0, %s4163_s0 }
0x1d8b   :  { %3792 = vmatprep.mubr.msk.bf16.mxu0 %vm4212_vm0, %v4211_v0  ;;  %3785 = vmatpush3.bf16.msra.mxu0 %v3894_v9 }
0x1d8c   :  { %3786 = vmatprep.subr.bf16.mxu0 %v4211_v0  ;;  %p4170_p11 = por %p4169_p10, %p4168_p9 }
0x1d8e   :  { %p4171_p12 = pnand %p4170_p11, %p4164_p8 }
0x1d8f   :  { %3787 = vmatpush3.bf16.msra.mxu0 %v3895_v10 }
0x1d90   :  { %3788 = vmatprep.subr.bf16.mxu0 %v4211_v0 }
0x1d93   :  { %3789 = vmatpush3.bf16.msra.mxu0 %v3896_v24 }
0x1d94   :  { %3790 = vmatprep.subr.bf16.mxu0 %v4211_v0  ;;  %v3129_v0 = vrot.slane %v4836_v39, %v4716_v54 }
0x1d97   :  { %3791 = vmatpush3.bf16.msra.mxu0 %v3897_v48 }
0x1e5d   :  { %v2997_v46 = vpop.f32.mrb[80].mxu0 }
0x1e5e   :  { %v2998_v47 = vadd.f32 %v2997_v46, %v2947_v43  ;;  %v3774_v49 = vpop.f32.mrb[81].mxu0 }
0x1e5f   :  { %v3000_v51 = vpop.f32.mrb[82].mxu0 }
0x1e60   :  { %v3001_v53 = vadd.f32 %v3000_v51, %v2947_v43  ;;  %v3775_v57 = vpop.f32.mrb[83].mxu0  ;;  %v3004_v61 = vadd.f32 %v2998_v47, %v4875_v20 }
0x1e62   :  { %v3006_v56 = vsel %vm191_vm1, %v3004_v61, 0.0  ;;  %v3005_v63 = vadd.f32 %v3001_v53, %v4877_v21  ;;  %v3893_v21 = vld [vmem:[#allocation13 + $0x18] sm:$0xff]  }
0x1e63   :  { %3007 = vadd.xlane.f32.xlu0 %v3006_v56  ;;  %3779 = vmatpush3.bf16.msra.mxu1 %v3893_v21  ;;  %v3229_v21 = vrot.slane %v4868_v52, %v4716_v54 }
0x1e64   :  { %v3009_v1 = vsel %vm191_vm1, %v3005_v63, 0.0 }
0x1e65   :  { %3010 = vadd.xlane.f32.xlu1 %v3009_v1 }
0x1ef0   :  { %v3008_v55 = vpop.xlane.xlu0 %3007 }
0x1ef1   :  { %v3012_v45 = vmul.f32 0.03125, %v3008_v55 }
0x1ef2   :  { %v3011_v2 = vpop.xlane.xlu1 %3010 }
0x1ef3   :  { %v3014_v6 = vsub.f32 %v3004_v61, %v3012_v45  ;;  %v3013_v7 = vmul.f32 0.03125, %v3011_v2 }
0x1ef5   :  { %v3015_v32 = vsub.f32 %v3005_v63, %v3013_v7  ;;  %v3016_v44 = vmul.f32 %v3014_v6, %v3014_v6 }
0x1ef7   :  { %v3018_v50 = vsel %vm191_vm1, %v3016_v44, 0.0  ;;  %v3017_v33 = vmul.f32 %v3015_v32, %v3015_v32 }
0x1ef8   :  { %3019 = vadd.xlane.f32.xlu0 %v3018_v50 }
0x1ef9   :  { %v3021_v20 = vsel %vm191_vm1, %v3017_v33, 0.0 }
0x1efc   :  { %3022 = vadd.xlane.f32.xlu0 %v3021_v20 }
0x1f85   :  { %v3020_v11 = vpop.xlane.xlu0 %3019 }
0x1f86   :  { %v3024_v12 = vmul.f32 0.03125, %v3020_v11  ;;  %v3235_v11 = vrot.slane %v4836_v39, %v1698_v22 }
0x1f88   :  { %v3026_v13 = vadd.f32 1e-05, %v3024_v12 }
0x1f89   :  { %v3023_v62 = vpop.xlane.xlu0 %3022 }
0x1f8a   :  { %3978 = vrsqrt.f32 %v3026_v13  ;;  %v3025_v14 = vmul.f32 0.03125, %v3023_v62 }
0x1f8c   :  { %v3027_v5 = vadd.f32 1e-05, %v3025_v14 }
0x1f8e   :  { %3980 = vrsqrt.f32 %v3027_v5 }
0x1f94   :  { %v3979_v15 = vpop.eup %3978 }
0x1f95   :  { %v3030_v40 = vmul.f32 %v3979_v15, %v3014_v6 }
0x1f97   :  { %v3036_v41 = vmul.f32 %v3035_v16, %v3030_v40 }
0x1f98   :  { %v3981_v17 = vpop.eup %3980 }
0x1f99   :  { %v3031_v18 = vmul.f32 %v3981_v17, %v3015_v32  ;;  %v3042_v4 = vadd.f32 %v3041_v19, %v3036_v41 }
0x1f9b   :  { %v3037_v3 = vmul.f32 %v3035_v16, %v3031_v18 }
0x1f9d   :  { %v3043_v23 = vadd.f32 %v3041_v19, %v3037_v3 }
0x1f9f   :  { %v3044_v59 = vpack.c.bf16 %v3043_v23, %v3042_v4 }
0x1fa1   :  { %3781 = vmatmul.mubr.msk.bf16.vlgmr.msra.gmra.mrb[92].mxu1 %vm191_vm1, %v3044_v59 }
0x2074   :  { %v3107_v25 = vpop.f32.mrb[92].mxu1 }
0x2075   :  { %v3108_v27 = vadd.f32 %v3357_v26, %v3107_v25  ;;  %v3782_v28 = vpop.f32.mrb[93].mxu1 }
0x2076   :  { %v3110_v34 = vpop.f32.mrb[94].mxu1 }
0x2077   :  { %v3111_v31 = vadd.f32 %v3357_v26, %v3110_v34  ;;  %v3783_v35 = vpop.f32.mrb[95].mxu1  ;;  %v3114_v36 = vmax.f32 %v3108_v27, 0.0 }
0x2079   :  { %v3115_v37 = vmax.f32 %v3111_v31, 0.0 }
0x207b   :  { %v3116_v30 = vpack.c.bf16 %v3115_v37, %v3114_v36 }
0x207d   :  { %3793 = vmatmul.mubr.msk.bf16.vlgmr.msra.gmra.mrb[84].mxu0 %vm1617_vm5, %v3116_v30 }
0x2150   :  { %v3191_v38 = vpop.f32.mrb[84].mxu0 }
0x2151   :  { %v3192_v42 = vadd.f32 %v3191_v38, %v3129_v0  ;;  %v3794_v29 = vpop.f32.mrb[85].mxu0 }
0x2152   :  { %v3194_v60 = vpop.f32.mrb[86].mxu0 }
0x2153   :  { %v3195_v43 = vadd.f32 %v3194_v60, %v3129_v0  ;;  %v3795_v46 = vpop.f32.mrb[87].mxu0  ;;  %v3198_v47 = vadd.f32 %v3192_v42, %v3042_v4 }
0x2155   :  { %v3200_v49 = vsel %vm191_vm1, %v3198_v47, 0.0  ;;  %v3199_v51 = vadd.f32 %v3195_v43, %v3043_v23 }
0x2156   :  { %3201 = vadd.xlane.f32.xlu1 %v3200_v49 }
0x2157   :  { %v3203_v53 = vsel %vm191_vm1, %v3199_v51, 0.0 }
0x2158   :  { %3204 = vadd.xlane.f32.xlu0 %v3203_v53 }
0x21e3   :  { %v3202_v57 = vpop.xlane.xlu1 %3201 }
0x21e4   :  { %v3206_v61 = vmul.f32 0.03125, %v3202_v57 }
0x21e5   :  { %v3205_v56 = vpop.xlane.xlu0 %3204 }
0x21e6   :  { %v3208_v63 = vsub.f32 %v3198_v47, %v3206_v61  ;;  %v3207_v1 = vmul.f32 0.03125, %v3205_v56 }
0x21e8   :  { %v3209_v55 = vsub.f32 %v3199_v51, %v3207_v1  ;;  %v3210_v45 = vmul.f32 %v3208_v63, %v3208_v63 }
0x21ea   :  { %v3212_v2 = vsel %vm191_vm1, %v3210_v45, 0.0  ;;  %v3211_v6 = vmul.f32 %v3209_v55, %v3209_v55 }
0x21eb   :  { %3213 = vadd.xlane.f32.xlu1 %v3212_v2 }
0x21ec   :  { %v3215_v7 = vsel %vm191_vm1, %v3211_v6, 0.0 }
0x21ed   :  { %3216 = vadd.xlane.f32.xlu0 %v3215_v7 }
0x2278   :  { %v3214_v32 = vpop.xlane.xlu1 %3213 }
0x2279   :  { %v3218_v44 = vmul.f32 0.03125, %v3214_v32 }
0x227a   :  { %v3217_v50 = vpop.xlane.xlu0 %3216 }
0x227b   :  { %v3220_v33 = vadd.f32 1e-05, %v3218_v44  ;;  %v3219_v20 = vmul.f32 0.03125, %v3217_v50 }
0x227d   :  { %3982 = vrsqrt.f32 %v3220_v33  ;;  %v3221_v8 = vadd.f32 1e-05, %v3219_v20 }
0x227f   :  { %3984 = vrsqrt.f32 %v3221_v8 }
0x2287   :  { %v3983_v9 = vpop.eup %3982 }
0x2288   :  { %v3224_v10 = vmul.f32 %v3983_v9, %v3208_v63 }
0x2289   :  { %v3985_v12 = vpop.eup %3984 }
0x228a   :  { %v3225_v13 = vmul.f32 %v3985_v12, %v3209_v55  ;;  %v3230_v62 = vmul.f32 %v3229_v21, %v3224_v10 }
0x228c   :  { %v3231_v14 = vmul.f32 %v3229_v21, %v3225_v13  ;;  %v3236_v5 = vadd.f32 %v3235_v11, %v3230_v62 }
0x228e   :  { %v3237_v15 = vadd.f32 %v3235_v11, %v3231_v14  ;;  %3238 = vst.msk [vmem:[#allocation16] sm:$0xff] %vm191_vm1, %v3236_v5 }
0x2290   :  { %3239 = vst.msk [vmem:[#allocation16 + $0x8] sm:$0xff] %vm191_vm1, %v3237_v15 }
0x2291   :  { %4174 = shalt.err (!%p4171_p12)
}
0x2292   :  { %s5042_s2 = sld [smem:[#allocation23_spill]] }
0x2298   :  { %s4175_s15 = scalar_lea.hbm %s5042_s2, 256 }
0x2299   :  { %p4176_p13 = scmp.ne.s32.totalorder %s5042_s2, %s4175_s15  ;;  %p4179_p0 = scmp.lt.u32.totalorder %s4175_s15, %s5042_s2 }
0x229b   :  { %p4181_p1 = pnand %p4179_p0, %p4176_p13 }
0x229d   :  { %4184 = shalt.err (!%p4181_p1)
}
0x229e   :  { %3251 = dma.vmem_to_hbm [thread:$0]  %s3246_s25, 256, %s5042_s2, [#allocation4], %s4205_s9, %s4205_s9, %s4206_s21  }
0x229f   :  { %4195 = dma.done.wait [#allocation4], 256  }
0x22a0   :  { %4196 = vsyncadd [#allocation4], 4294967040 }
0x22a1   :  { %3255 = vsyncpa [#allocation3], 1 }
0x22a2   :  { %3256 = vsyncpa [#allocation6], 1 }
0x22a3   :  { %3257 = vsyncpa [#allocation9], 1 }
0x22a4   :  { %3258 = vsyncpa [#allocation12], 1 }
0x22a5   :  { %3259 = vsyncpa [#allocation15], 1 }
0x22a6   :  { %3260 = vsyncpa [#allocation4], 1 }

</bundles_post_ra>
